<compile_context>
chip_gen: v5e
topology: v5e:2x2
jax: 0.10.0
libtpu: 0.0.40
codegen_flags: <defaults>
</compile_context>

<pallas_src>
import jax
import jax.numpy as jnp
import numpy as np
from jax.experimental import pallas as pl
from jax.experimental.pallas import tpu as pltpu

# ----------------------------- model dims (match the PyTorch module) ---------
CRV_EMB_DIM = 64
SRF_EMB_DIM = 64
GRAPH_EMB_DIM = 128
NUM_CLASSES = 8
IN_DIM = GRAPH_EMB_DIM + SRF_EMB_DIM   # 192
H1 = 512
H2 = 256
OUT_PAD = 128                          # lane-dense padded logits width
BN_EPS = 1e-5
ROW_TILE = 256                         # max rows per grid step (sweep 128..1024)


def _round_up(x, m):
    return (x + m - 1) // m * m


# ----------------------------- Pallas kernel ---------------------------------
def seg_mlp_kernel(xn_ref, xg_ref, w1n_ref, w1g_ref, t1_ref,
                   w2_ref, t2_ref, w3_ref, b3_ref, out_ref):
    """Fused 3-layer MLP head.

    BN scales are pre-folded into w1/w2 (so only the shifts t1/t2 appear);
    all matmul operands are bf16, accumulation and bias/shift math in f32.
    """
    # Layer 1, split over the [node | graph] feature halves (no HBM concat).
    h = jnp.dot(xn_ref[...], w1n_ref[...], preferred_element_type=jnp.float32)
    h = h + jnp.dot(xg_ref[...], w1g_ref[...], preferred_element_type=jnp.float32)
    h = jnp.maximum(h + t1_ref[...], 0.0)                       # BN1 shift + ReLU
    h = h.astype(jnp.bfloat16)
    # Layer 2
    h = jnp.dot(h, w2_ref[...], preferred_element_type=jnp.float32)
    h = jnp.maximum(h + t2_ref[...], 0.0)                       # BN2 shift + ReLU
    h = h.astype(jnp.bfloat16)
    # Layer 3 (output padded to OUT_PAD lanes for lane-dense stores)
    o = jnp.dot(h, w3_ref[...], preferred_element_type=jnp.float32)
    out_ref[...] = (o + b3_ref[...]).astype(out_ref.dtype)


def _choose_tiling(n, max_tile):
    """Pick (row_tile, n_pad) minimizing padded rows with balanced tiles."""
    n8 = _round_up(max(n, 8), 8)
    steps = max(1, pl.cdiv(n8, max_tile))
    row_tile = _round_up(pl.cdiv(n8, steps), 8)
    n_pad = steps * row_tile
    return row_tile, n_pad


def seg_head_pallas(x_node, x_graph, kp, row_tile=ROW_TILE):
    """x_node: (N, SRF_EMB_DIM) bf16; x_graph: (N, GRAPH_EMB_DIM) bf16."""
    n = x_node.shape[0]
    row_tile, n_pad = _choose_tiling(n, row_tile)
    if n_pad != n:
        x_node = jnp.pad(x_node, ((0, n_pad - n), (0, 0)))
        x_graph = jnp.pad(x_graph, ((0, n_pad - n), (0, 0)))

    grid = (n_pad // row_tile,)

    def rows_map(i):     # tiled over rows
        return (i, 0)

    def bcast_map(i):    # weights / shifts resident across the grid
        return (0, 0)

    grid_spec = pltpu.PrefetchScalarGridSpec(
        num_scalar_prefetch=0,
        grid=grid,
        in_specs=[
            pl.BlockSpec((row_tile, SRF_EMB_DIM), rows_map),
            pl.BlockSpec((row_tile, GRAPH_EMB_DIM), rows_map),
            pl.BlockSpec((SRF_EMB_DIM, H1), bcast_map),
            pl.BlockSpec((GRAPH_EMB_DIM, H1), bcast_map),
            pl.BlockSpec((1, H1), bcast_map),
            pl.BlockSpec((H1, H2), bcast_map),
            pl.BlockSpec((1, H2), bcast_map),
            pl.BlockSpec((H2, OUT_PAD), bcast_map),
            pl.BlockSpec((1, OUT_PAD), bcast_map),
        ],
        out_specs=pl.BlockSpec((row_tile, OUT_PAD), rows_map),
    )

    flops = 2 * n_pad * (SRF_EMB_DIM * H1 + GRAPH_EMB_DIM * H1
                         + H1 * H2 + H2 * OUT_PAD)
    weight_bytes = 2 * (IN_DIM * H1 + H1 * H2 + H2 * OUT_PAD) \
        + 4 * (H1 + H2 + OUT_PAD)
    bytes_accessed = (n_pad * (SRF_EMB_DIM + GRAPH_EMB_DIM) * 2
                      + n_pad * OUT_PAD * 4 + weight_bytes)

    out = pl.pallas_call(
        seg_mlp_kernel,
        out_shape=jax.ShapeDtypeStruct((n_pad, OUT_PAD), jnp.float32),
        grid_spec=grid_spec,
        compiler_params=pltpu.CompilerParams(
            dimension_semantics=("parallel",)),
        cost_estimate=pl.CostEstimate(
            flops=flops, transcendentals=0, bytes_accessed=bytes_accessed),
    )(x_node, x_graph, kp["w1n"], kp["w1g"], kp["t1"],
      kp["w2"], kp["t2"], kp["w3"], kp["b3"])

    return out[:n, :NUM_CLASSES]


# ----------------------------- parameter init --------------------------------
def kaiming_uniform_t(key, fan_in, fan_out):
    """PyTorch kaiming_uniform_ (gain=sqrt(2)), stored transposed (in, out)."""
    bound = float(np.sqrt(6.0 / fan_in))
    return jax.random.uniform(key, (fan_in, fan_out), jnp.float32, -bound, bound)


def make_bn_fold(key, dim):
    """Deterministic BatchNorm1d params folded to eval-mode scale/shift."""
    k1, k2, k3, k4 = jax.random.split(key, 4)
    gamma = jax.random.uniform(k1, (1, dim), jnp.float32, 0.5, 1.5)
    beta = 0.1 * jax.random.normal(k2, (1, dim), jnp.float32)
    mean = 0.1 * jax.random.normal(k3, (1, dim), jnp.float32)
    var = jax.random.uniform(k4, (1, dim), jnp.float32, 0.5, 1.5)
    scale = gamma / jnp.sqrt(var + BN_EPS)
    shift = beta - mean * scale
    return scale, shift


def init_params(key):
    """Raw (f32, unfused) parameters matching the PyTorch module."""
    ks = jax.random.split(key, 5)
    s1, t1 = make_bn_fold(ks[3], H1)
    s2, t2 = make_bn_fold(ks[4], H2)
    return {
        "w1": kaiming_uniform_t(ks[0], IN_DIM, H1),
        "w2": kaiming_uniform_t(ks[1], H1, H2),
        "w3": kaiming_uniform_t(ks[2], H2, NUM_CLASSES),
        "b3": jnp.zeros((1, NUM_CLASSES), jnp.float32),  # bias filled with 0
        "s1": s1, "t1": t1, "s2": s2, "t2": t2,
    }


def prepare_kernel_params(p):
    """Fold BN scales into weights, split w1, pad logits to 128 lanes, bf16."""
    w1s = (p["w1"] * p["s1"]).astype(jnp.bfloat16)      # (192, 512)
    w2s = (p["w2"] * p["s2"]).astype(jnp.bfloat16)      # (512, 256)
    w3p = jnp.pad(p["w3"].astype(jnp.bfloat16),
                  ((0, 0), (0, OUT_PAD - NUM_CLASSES)))  # (256, 128)
    b3p = jnp.pad(p["b3"], ((0, 0), (0, OUT_PAD - NUM_CLASSES)))  # (1, 128) f32
    return {
        "w1n": w1s[:SRF_EMB_DIM],        # node-feature half of layer 1
        "w1g": w1s[SRF_EMB_DIM:],        # graph-feature half of layer 1
        "t1": p["t1"], "w2": w2s, "t2": p["t2"], "w3": w3p, "b3": b3p,
    }


# ----------------------------- full forward (glue + kernel) ------------------
def uvnet_segmenter_forward(node_emb, graph_emb, num_nodes_per_graph, kp,
                            row_tile=ROW_TILE):
    """
    node_emb:  (total_nodes, SRF_EMB_DIM)   -- from the (stubbed) graph encoder
    graph_emb: (num_graphs, GRAPH_EMB_DIM)  -- from the (stubbed) graph encoder
    num_nodes_per_graph: (num_graphs,) int  -- batched_graph.batch_num_nodes()
    returns:   (total_nodes, NUM_CLASSES) logits (f32)
    """
    total_nodes = node_emb.shape[0]
    # graph_emb.repeat_interleave(num_nodes_per_graph, dim=0) -- indexing glue.
    # The concat with node_emb is NOT materialized; layer 1 is split in-kernel.
    graph_rep = jnp.repeat(graph_emb.astype(jnp.bfloat16), num_nodes_per_graph,
                           axis=0, total_repeat_length=total_nodes)
    return seg_head_pallas(node_emb.astype(jnp.bfloat16), graph_rep, kp,
                           row_tile=row_tile)


# ----------------------------- references ------------------------------------
def reference_forward_f32(node_emb, graph_emb, num_nodes_per_graph, params):
    """Exact eval-mode math of the PyTorch module, all in f32."""
    total_nodes = node_emb.shape[0]
    graph_rep = jnp.repeat(graph_emb, num_nodes_per_graph, axis=0,
                           total_repeat_length=total_nodes)
    x = jnp.concatenate([node_emb, graph_rep], axis=1)
    h = jnp.maximum(x @ params["w1"] * params["s1"] + params["t1"], 0.0)
    h = jnp.maximum(h @ params["w2"] * params["s2"] + params["t2"], 0.0)
    return h @ params["w3"] + params["b3"]


def reference_forward_bf16(node_emb, graph_emb, num_nodes_per_graph, kp):
    """Same math with the kernel's precision handling (bf16 operands, f32 acc)."""
    total_nodes = node_emb.shape[0]
    xg = jnp.repeat(graph_emb.astype(jnp.bfloat16), num_nodes_per_graph, axis=0,
                    total_repeat_length=total_nodes)
    xn = node_emb.astype(jnp.bfloat16)
    h = jnp.dot(xn, kp["w1n"], preferred_element_type=jnp.float32)
    h = h + jnp.dot(xg, kp["w1g"], preferred_element_type=jnp.float32)
    h = jnp.maximum(h + kp["t1"], 0.0).astype(jnp.bfloat16)
    h = jnp.dot(h, kp["w2"], preferred_element_type=jnp.float32)
    h = jnp.maximum(h + kp["t2"], 0.0).astype(jnp.bfloat16)
    o = jnp.dot(h, kp["w3"], preferred_element_type=jnp.float32) + kp["b3"]
    return o[:, :NUM_CLASSES]


# ----------------------------- main -------------------------------------------
if __name__ == "__main__":
    key = jax.random.PRNGKey(0)
    k_params, k_node, k_graph = jax.random.split(key, 3)

    params = init_params(k_params)
    kparams = prepare_kernel_params(params)

    # Small example batch: 3 graphs, 600 total faces. With ROW_TILE=256 the
    # adaptive tiler picks 3 balanced tiles of 200 rows (zero padded rows).
    num_graphs = 3
    num_nodes_per_graph = jnp.array([250, 200, 150], dtype=jnp.int32)
    total_nodes = 600

    node_emb = jax.random.normal(k_node, (total_nodes, SRF_EMB_DIM), jnp.float32)
    graph_emb = jax.random.normal(k_graph, (num_graphs, GRAPH_EMB_DIM), jnp.float32)

    out = uvnet_segmenter_forward(node_emb, graph_emb, num_nodes_per_graph, kparams)
    out = jax.block_until_ready(out)
    assert out.shape == (total_nodes, NUM_CLASSES)

    # Primary check: matching-precision reference (bf16 operands, f32 accumulate).
    ref_bf16 = reference_forward_bf16(node_emb, graph_emb, num_nodes_per_graph,
                                      kparams)
    np.testing.assert_allclose(np.asarray(out), np.asarray(ref_bf16),
                               rtol=2e-2, atol=2e-2)

    # Sanity check vs the exact f32 module math (loose: bounds bf16 quantization).
    ref_f32 = reference_forward_f32(node_emb, graph_emb, num_nodes_per_graph,
                                    params)
    np.testing.assert_allclose(np.asarray(out), np.asarray(ref_f32),
                               rtol=5e-2, atol=1.5e-1)

    print("KERNEL_OK")
</pallas_src>

<mosaic_0001>
module attributes {stable_mosaic.version = 11 : i64} {
  func.func @seg_mlp_kernel(%arg0: i32, %arg1: memref<200x64xbf16, #tpu.memory_space<vmem>>, %arg2: memref<200x128xbf16, #tpu.memory_space<vmem>>, %arg3: memref<64x512xbf16, #tpu.memory_space<vmem>>, %arg4: memref<128x512xbf16, #tpu.memory_space<vmem>>, %arg5: memref<1x512xf32, #tpu.memory_space<vmem>>, %arg6: memref<512x256xbf16, #tpu.memory_space<vmem>>, %arg7: memref<1x256xf32, #tpu.memory_space<vmem>>, %arg8: memref<256x128xbf16, #tpu.memory_space<vmem>>, %arg9: memref<1x128xf32, #tpu.memory_space<vmem>>, %arg10: memref<200x128xf32, #tpu.memory_space<vmem>>) attributes {dimension_semantics = [#tpu.dimension_semantics<parallel>], iteration_bounds = array<i64: 3>, scalar_prefetch = 0 : i64, scratch_operands = 0 : i64, tpu.core_type = #tpu.core_type<tc>, window_params = [{transform_indices = @transform_0, window_bounds = array<i64: 200, 64>}, {transform_indices = @transform_1, window_bounds = array<i64: 200, 128>}, {pipeline_mode = #tpu.pipeline_mode<synchronous>, transform_indices = @transform_2, window_bounds = array<i64: 64, 512>}, {pipeline_mode = #tpu.pipeline_mode<synchronous>, transform_indices = @transform_3, window_bounds = array<i64: 128, 512>}, {pipeline_mode = #tpu.pipeline_mode<synchronous>, transform_indices = @transform_4, window_bounds = array<i64: 1, 512>}, {pipeline_mode = #tpu.pipeline_mode<synchronous>, transform_indices = @transform_5, window_bounds = array<i64: 512, 256>}, {pipeline_mode = #tpu.pipeline_mode<synchronous>, transform_indices = @transform_6, window_bounds = array<i64: 1, 256>}, {pipeline_mode = #tpu.pipeline_mode<synchronous>, transform_indices = @transform_7, window_bounds = array<i64: 256, 128>}, {pipeline_mode = #tpu.pipeline_mode<synchronous>, transform_indices = @transform_8, window_bounds = array<i64: 1, 128>}, {transform_indices = @transform_9, window_bounds = array<i64: 200, 128>}]} {
    %c0 = arith.constant 0 : index
    %c0_0 = arith.constant 0 : index
    %0 = vector.load %arg1[%c0, %c0_0] : memref<200x64xbf16, #tpu.memory_space<vmem>>, vector<200x64xbf16>
    %c0_1 = arith.constant 0 : index
    %c0_2 = arith.constant 0 : index
    %1 = vector.load %arg3[%c0_1, %c0_2] : memref<64x512xbf16, #tpu.memory_space<vmem>>, vector<64x512xbf16>
    %cst = arith.constant dense<0.000000e+00> : vector<200x512xf32>
    %2 = tpu.matmul %0, %1, %cst {dimension_numbers = #tpu.dot_dimension_numbers<[1], [0], [0], [1], [0, 0, 1, 1], [], []>} : vector<200x64xbf16>, vector<64x512xbf16>, vector<200x512xf32> -> vector<200x512xf32>
    %c0_3 = arith.constant 0 : index
    %c0_4 = arith.constant 0 : index
    %3 = vector.load %arg2[%c0_3, %c0_4] : memref<200x128xbf16, #tpu.memory_space<vmem>>, vector<200x128xbf16>
    %c0_5 = arith.constant 0 : index
    %c0_6 = arith.constant 0 : index
    %4 = vector.load %arg4[%c0_5, %c0_6] : memref<128x512xbf16, #tpu.memory_space<vmem>>, vector<128x512xbf16>
    %cst_7 = arith.constant dense<0.000000e+00> : vector<200x512xf32>
    %5 = tpu.matmul %3, %4, %cst_7 {dimension_numbers = #tpu.dot_dimension_numbers<[1], [0], [0], [1], [0, 0, 1, 1], [], []>} : vector<200x128xbf16>, vector<128x512xbf16>, vector<200x512xf32> -> vector<200x512xf32>
    %6 = arith.addf %2, %5 : vector<200x512xf32>
    %c0_8 = arith.constant 0 : index
    %c0_9 = arith.constant 0 : index
    %7 = vector.load %arg5[%c0_8, %c0_9] : memref<1x512xf32, #tpu.memory_space<vmem>>, vector<1x512xf32>
    %8 = vector.broadcast %7 : vector<1x512xf32> to vector<200x512xf32>
    %9 = arith.addf %6, %8 : vector<200x512xf32>
    %cst_10 = arith.constant 0.000000e+00 : f32
    %10 = vector.broadcast %cst_10 : f32 to vector<200x512xf32>
    %11 = arith.maximumf %9, %10 : vector<200x512xf32>
    %12 = arith.truncf %11 : vector<200x512xf32> to vector<200x512xbf16>
    %c0_11 = arith.constant 0 : index
    %c0_12 = arith.constant 0 : index
    %13 = vector.load %arg6[%c0_11, %c0_12] : memref<512x256xbf16, #tpu.memory_space<vmem>>, vector<512x256xbf16>
    %cst_13 = arith.constant dense<0.000000e+00> : vector<200x256xf32>
    %14 = tpu.matmul %12, %13, %cst_13 {dimension_numbers = #tpu.dot_dimension_numbers<[1], [0], [0], [1], [0, 0, 1, 1], [], []>} : vector<200x512xbf16>, vector<512x256xbf16>, vector<200x256xf32> -> vector<200x256xf32>
    %c0_14 = arith.constant 0 : index
    %c0_15 = arith.constant 0 : index
    %15 = vector.load %arg7[%c0_14, %c0_15] : memref<1x256xf32, #tpu.memory_space<vmem>>, vector<1x256xf32>
    %16 = vector.broadcast %15 : vector<1x256xf32> to vector<200x256xf32>
    %17 = arith.addf %14, %16 : vector<200x256xf32>
    %cst_16 = arith.constant 0.000000e+00 : f32
    %18 = vector.broadcast %cst_16 : f32 to vector<200x256xf32>
    %19 = arith.maximumf %17, %18 : vector<200x256xf32>
    %20 = arith.truncf %19 : vector<200x256xf32> to vector<200x256xbf16>
    %c0_17 = arith.constant 0 : index
    %c0_18 = arith.constant 0 : index
    %21 = vector.load %arg8[%c0_17, %c0_18] : memref<256x128xbf16, #tpu.memory_space<vmem>>, vector<256x128xbf16>
    %cst_19 = arith.constant dense<0.000000e+00> : vector<200x128xf32>
    %22 = tpu.matmul %20, %21, %cst_19 {dimension_numbers = #tpu.dot_dimension_numbers<[1], [0], [0], [1], [0, 0, 1, 1], [], []>} : vector<200x256xbf16>, vector<256x128xbf16>, vector<200x128xf32> -> vector<200x128xf32>
    %c0_20 = arith.constant 0 : index
    %c0_21 = arith.constant 0 : index
    %23 = vector.load %arg9[%c0_20, %c0_21] : memref<1x128xf32, #tpu.memory_space<vmem>>, vector<1x128xf32>
    %24 = vector.broadcast %23 : vector<1x128xf32> to vector<200x128xf32>
    %25 = arith.addf %22, %24 : vector<200x128xf32>
    %c0_22 = arith.constant 0 : index
    %c0_23 = arith.constant 0 : index
    %26 = vector.load %arg10[%c0_22, %c0_23] : memref<200x128xf32, #tpu.memory_space<vmem>>, vector<200x128xf32>
    tpu.vector_store %arg10[%c0_22, %c0_23], %25 {strides = array<i32>} : memref<200x128xf32, #tpu.memory_space<vmem>>, vector<200x128xf32>,
    return
  }
  func.func @transform_0(%arg0: i32) -> (i32, i32) {
    %c0_i32 = arith.constant 0 : i32
    %c0_i32_0 = arith.constant 0 : i32
    return %arg0, %c0_i32 : i32, i32
  }
  func.func @transform_1(%arg0: i32) -> (i32, i32) {
    %c0_i32 = arith.constant 0 : i32
    %c0_i32_0 = arith.constant 0 : i32
    return %arg0, %c0_i32 : i32, i32
  }
  func.func @transform_2(%arg0: i32) -> (i32, i32) {
    %c0_i32 = arith.constant 0 : i32
    %c0_i32_0 = arith.constant 0 : i32
    %c0_i32_1 = arith.constant 0 : i32
    return %c0_i32, %c0_i32_0 : i32, i32
  }
  func.func @transform_3(%arg0: i32) -> (i32, i32) {
    %c0_i32 = arith.constant 0 : i32
    %c0_i32_0 = arith.constant 0 : i32
    %c0_i32_1 = arith.constant 0 : i32
    return %c0_i32, %c0_i32_0 : i32, i32
  }
  func.func @transform_4(%arg0: i32) -> (i32, i32) {
    %c0_i32 = arith.constant 0 : i32
    %c0_i32_0 = arith.constant 0 : i32
    %c0_i32_1 = arith.constant 0 : i32
    return %c0_i32, %c0_i32_0 : i32, i32
  }
  func.func @transform_5(%arg0: i32) -> (i32, i32) {
    %c0_i32 = arith.constant 0 : i32
    %c0_i32_0 = arith.constant 0 : i32
    %c0_i32_1 = arith.constant 0 : i32
    return %c0_i32, %c0_i32_0 : i32, i32
  }
  func.func @transform_6(%arg0: i32) -> (i32, i32) {
    %c0_i32 = arith.constant 0 : i32
    %c0_i32_0 = arith.constant 0 : i32
    %c0_i32_1 = arith.constant 0 : i32
    return %c0_i32, %c0_i32_0 : i32, i32
  }
  func.func @transform_7(%arg0: i32) -> (i32, i32) {
    %c0_i32 = arith.constant 0 : i32
    %c0_i32_0 = arith.constant 0 : i32
    %c0_i32_1 = arith.constant 0 : i32
    return %c0_i32, %c0_i32_0 : i32, i32
  }
  func.func @transform_8(%arg0: i32) -> (i32, i32) {
    %c0_i32 = arith.constant 0 : i32
    %c0_i32_0 = arith.constant 0 : i32
    %c0_i32_1 = arith.constant 0 : i32
    return %c0_i32, %c0_i32_0 : i32, i32
  }
  func.func @transform_9(%arg0: i32) -> (i32, i32) {
    %c0_i32 = arith.constant 0 : i32
    %c0_i32_0 = arith.constant 0 : i32
    return %arg0, %c0_i32 : i32, i32
  }
}

</mosaic_0001>

<bundles_post_ra>
// kernel: tpu_custom_call.1
= control target key start
LH: loop header
LB: loop body
LE: loop exit
PB: predicated region body
PF: predicated region fallthrough
CT: control target
= control target key end

     0   :  { %s6056_s0 = inlined_call_operand.vmem [shape: bf16[600,64], index: 0, kind: input, shape index: {}]   ;;  %s6057_s1 = inlined_call_operand.vmem [shape: bf16[600,128], index: 1, kind: input, shape index: {}]   ;;  %s6058_s2 = inlined_call_operand.vmem [shape: bf16[64,512], index: 2, kind: input, shape index: {}]   ;;  %s6059_s3 = inlined_call_operand.hbm [shape: bf16[128,512], index: 3, kind: input, shape index: {}]   ;;  %s6060_s4 = inlined_call_operand.vmem [shape: f32[1,512], index: 4, kind: input, shape index: {}]   ;;  %s6061_s5 = inlined_call_operand.hbm [shape: bf16[512,256], index: 5, kind: input, shape index: {}]   ;;  %s6062_s6 = inlined_call_operand.vmem [shape: f32[1,256], index: 6, kind: input, shape index: {}]   ;;  %s6063_s7 = inlined_call_operand.hbm [shape: bf16[256,128], index: 7, kind: input, shape index: {}]   ;;  %s6064_s8 = inlined_call_operand.vmem [shape: f32[1,128], index: 8, kind: input, shape index: {}]   ;;  %s6065_s9 = inlined_call_operand.hbm [shape: f32[600,128], index: 9, kind: output, shape index: {}]  }
   0x1   :  { %6098 = sst [smem:[#allocation77_spill]] %s6059_s3 }
   0x2   :  { %6099 = sst [smem:[#allocation78_spill]] %s6061_s5 }
   0x3   :  { %14 = vsyncpa [#allocation3], 0 }
   0x4   :  { %15 = vsyncpa [#allocation6], 0 }
   0x5   :  { %16 = vsyncpa [#allocation4], 0 }
   0x6   :  { %18 = vsyncpa [#allocation4 + $0x1], 0  ;;  %s4392_s30 = smov 0   ;;  %s4394_s10 = smov 0  }
   0x7   :  { %s4396_s11 = smov 0   ;;  %s4398_s12 = smov 0  }
   0x8 LB: > { %6100 = sst [smem:[#allocation12_spill]] %s4325_s11  ;;  %s4413_s13 = sadd.s32 4294967295, %s4329_s12   ;;  %s4329_s12 = sphi %s4398_s12, %s6287_s12   ;;  %s4325_s11 = sphi %s4396_s11, %s6289_s11   ;;  %s4321_s10 = sphi %s4394_s10, %s6291_s10   ;;  %s4317_s30 = sphi %s4392_s30, %s6290_s30  }
   0x9   : > { %s3244_s14 = sadd.s32 4294967294, %s4329_s12   ;;  %s4417_s15 = sadd.s32 1, %s4329_s12  }
   0xa   : > { %6101 = sst [smem:[#allocation13_spill]] %s4417_s15  ;;  %s230_s16 = sadd.s32 1, %s4325_s11 }
   0xb   : > { %s227_s17 = ssub.s32 %s4329_s12, %s4417_s15  ;;  %p240_p0 = scmp.ne.s32.totalorder %s4325_s11, %s4321_s10 }
   0xc   : > { %p228_p1 = scmp.eq.s32.totalorder %s227_s17, 0  ;;  %p241_p2 = scmp.eq.s32.totalorder %s4413_s13, 2 }
   0xd   : > { %p246_p3 = scmp.ne.s32.totalorder %s4321_s10, %s4317_s30  ;;  %p247_p4 = scmp.eq.s32.totalorder %s3244_s14, 2 }
   0xe   : > { %s4428_s18 = scalar_select %p228_p1, %s4325_s11, %s230_s16  }
   0xf   : > { %p4430_p5 = por %p241_p2, %p240_p0  ;;  %p4434_p6 = por %p247_p4, %p246_p3 }
  0x10   : > { %6102 = sst [smem:[#allocation14_spill]] %s4428_s18  ;;  %p3245_p7 = scmp.ge.s32.totalorder %s4329_s12, 1 }
  0x11   : > { %s6104_s20 = scalar_select %p4434_p6, 1, 0 }
  0x12   : > { %p254_p8 = scmp.lt.s32.totalorder %s4329_s12, 4  ;;  %p4117_p9 = scmp.eq.s32.totalorder %s4413_s13, 0 }
  0x13   : > { %6105 = sst [smem:[#allocation15_spill]] %s6104_s20  ;;  %s4331_s25 = smov [#allocation5]  }
  0x14   : > { %p4441_p10 = pnand %p3245_p7, %p254_p8  ;;  %s6107_s5 = sld [smem:[#allocation78_spill]] }
  0x15   : > { %s287_s26 = sshll.u32 %s4331_s25, 4  ;;  %s6109_s3 = sld [smem:[#allocation77_spill]]  ;;  %s288_s26 = int_to_ptr.vmem [resolvable:$true] %s287_s26 }
  0x16   : > { %p4103_p11 = pneg %p4441_p10  ;;  %s4332_s16 = smov 128  }
  0x17   : > { %s4333_s17 = smov 8   ;;  %s4334_s22 = smov [#allocation2]  }
  0x18   : > { %p4452_p12 = pnand %p4117_p9, %p4103_p11  ;;  %s270_s23 = sshll.u32 %s4334_s22, 4  ;;  %s271_s23 = int_to_ptr.vmem [resolvable:$true] %s270_s23 }
  0x19   : > { %s4335_s25 = smov 256   ;;  %s302_s28 = sshll.u32 %s6063_s7, 4  ;;  %s303_s28 = int_to_ptr.hbm [resolvable:$true] %s302_s28 }
  0x1a   : > { %s285_s24 = sshll.u32 %s6107_s5, 4  ;;  %s4336_s5 = smov 16   ;;  %s286_s24 = int_to_ptr.hbm [resolvable:$true] %s285_s24 }
  0x1b   : > { %s268_s14 = sshll.u32 %s6109_s3, 4  ;;  %s4337_s29 = smov [#allocation7]   ;;  %s269_s14 = int_to_ptr.hbm [resolvable:$true] %s268_s14 }
  0x1c   : > { %4109 = dma.hbm_to_vmem [thread:$0]  (!%p4452_p12), %s286_s24, 8192, %s288_s26, [#allocation6], %s4332_s16, %s4332_s16, %s4333_s17  }
  0x1d   : > { %4106 = dma.hbm_to_vmem [thread:$0]  (!%p4452_p12), %s269_s14, 4096, %s271_s23, [#allocation3], %s4335_s25, %s4335_s25, %s4336_s5  }
  0x1e   : > { %s304_s3 = sshll.u32 %s4337_s29, 4  ;;  %s4338_s15 = smov 64   ;;  %s305_s3 = int_to_ptr.vmem [resolvable:$true] %s304_s3 }
  0x1f   : > { %s4339_s20 = smov 4   ;;  %341 = sbr.rel (%p4441_p10) target bundleno = 1268 (0x4f4), region = 56 }
  0x20   : > { %4112 = dma.hbm_to_vmem [thread:$0]  (!%p4452_p12), %s303_s28, 2048, %s305_s3, [#allocation6], %s4338_s15, %s4338_s15, %s4339_s20  }
  0x24   : > { %4304 = dma.done.wait (%p4117_p9), [#allocation3], 4096  }
  0x25   : > { %4306 = vsyncadd (%p4117_p9), [#allocation3], 4294963200 }
  0x26   : > { %4308 = dma.done.wait (%p4117_p9), [#allocation6], 10240  }
  0x27   : > { %4310 = vsyncadd (%p4117_p9), [#allocation6], 4294957056  ;;  %v3418_v0 = vld [vmem:[#allocation2 + $0xe0] sm:$0xf]  ;;  %v3989_v1 = vld [vmem:[#allocation2 + $0xec] sm:$0xf0] }
  0x28   : > { %v3987_v2 = vld [vmem:[#allocation2 + $0xe4] sm:$0xf]  ;;  %v3419_v3 = vor.u32 %v3989_v1, %v3418_v0  ;;  %v3420_v4 = vld [vmem:[#allocation2 + $0xf0] sm:$0xf0]  ;;  %v3402_v5 = vld [vmem:[#allocation2 + $0xc0] sm:$0xf] }
  0x29   : > { %v3985_v6 = vld [vmem:[#allocation2 + $0xcc] sm:$0xf0]  ;;  %v3423_v7 = vor.u32 %v3987_v2, %v3420_v4  ;;  %v3983_v8 = vld [vmem:[#allocation2 + $0xc4] sm:$0xf]  ;;  %v3404_v9 = vld [vmem:[#allocation2 + $0xd0] sm:$0xf0] }
  0x2a   : > { %741 = vmatpush.bf16.msra.mxu0 %v3419_v3  ;;  %4072 = vmatpush.bf16.msra.mxu2 %v3419_v3  ;;  %v3403_v10 = vor.u32 %v3985_v6, %v3402_v5  ;;  %v3407_v11 = vor.u32 %v3983_v8, %v3404_v9  ;;  %v3386_v12 = vld [vmem:[#allocation2 + $0xa0] sm:$0xf]  ;;  %v3981_v13 = vld [vmem:[#allocation2 + $0xac] sm:$0xf0]  ;;  %v3979_v14 = vld [vmem:[#allocation2 + $0xa4] sm:$0xf] }
  0x2b   : > { %814 = vmatpush.bf16.msra.mxu1 %v3423_v7  ;;  %4080 = vmatpush.bf16.msra.mxu3 %v3423_v7  ;;  %v3388_v15 = vld [vmem:[#allocation2 + $0xb0] sm:$0xf0]  ;;  %v3387_v16 = vor.u32 %v3981_v13, %v3386_v12  ;;  %v3370_v18 = vld [vmem:[#allocation2 + $0x80] sm:$0xf]  ;;  %v3977_v19 = vld [vmem:[#allocation2 + $0x8c] sm:$0xf0] }
  0x2c   : > { %v3391_v17 = vor.u32 %v3979_v14, %v3388_v15  ;;  %v3975_v20 = vld [vmem:[#allocation2 + $0x84] sm:$0xf]  ;;  %v3372_v21 = vld [vmem:[#allocation2 + $0x90] sm:$0xf0]  ;;  %v3371_v22 = vor.u32 %v3977_v19, %v3370_v18  ;;  %s393_s3 = smul.u32 25, %s4413_s13  ;;  %vm1176_vm0 = vcmask 523264  }
  0x2d   : > { %v3375_v23 = vor.u32 %v3975_v20, %v3372_v21  ;;  %v3354_v24 = vld [vmem:[#allocation2 + $0x60] sm:$0xf]  ;;  %v3973_v25 = vld [vmem:[#allocation2 + $0x6c] sm:$0xf0]  ;;  %v3971_v26 = vld [vmem:[#allocation2 + $0x64] sm:$0xf] }
  0x2e   : > { %742 = vmatpush.bf16.msra.mxu0 %v3403_v10  ;;  %4073 = vmatpush.bf16.msra.mxu2 %v3403_v10  ;;  %v3356_v27 = vld [vmem:[#allocation2 + $0x70] sm:$0xf0]  ;;  %v3355_v28 = vor.u32 %v3973_v25, %v3354_v24  ;;  %p394_p13 = scmp.lt.s32.totalorder %s393_s3, 74  ;;  %v3338_v30 = vld [vmem:[#allocation2 + $0x40] sm:$0xf]  ;;  %s390_s17 = sand.u32 1, %s4321_s10  }
  0x2f   : > { %815 = vmatpush.bf16.msra.mxu1 %v3407_v11  ;;  %4081 = vmatpush.bf16.msra.mxu3 %v3407_v11  ;;  %v3359_v29 = vor.u32 %v3971_v26, %v3356_v27  ;;  %v3969_v31 = vld [vmem:[#allocation2 + $0x4c] sm:$0xf0]  ;;  %v3967_v32 = vld [vmem:[#allocation2 + $0x44] sm:$0xf]  ;;  %v3340_v33 = vld [vmem:[#allocation2 + $0x50] sm:$0xf0] }
  0x30   : > { %v3339_v34 = vor.u32 %v3969_v31, %v3338_v30  ;;  %s6293_s3 = smov (!%p394_p13, %s393_s3), 74  ;;  %v3343_v35 = vor.u32 %v3967_v32, %v3340_v33  ;;  %v3322_v36 = vld [vmem:[#allocation2 + $0x20] sm:$0xf]  ;;  %v3965_v37 = vld [vmem:[#allocation2 + $0x2c] sm:$0xf0]  ;;  %s4088_s25 = smul.u32 200, %s390_s17 }
  0x31   : > { %v3963_v38 = vld [vmem:[#allocation2 + $0x24] sm:$0xf]  ;;  %v3324_v39 = vld [vmem:[#allocation2 + $0x30] sm:$0xf0]  ;;  %v3323_v40 = vor.u32 %v3965_v37, %v3322_v36  ;;  %s3254_s5 = sshll.u32 %s6293_s3, 2  ;;  %s4071_s3 = smul.u32 200, %s4413_s13 }
  0x32   : > { %743 = vmatpush.bf16.msra.mxu0 %v3387_v16  ;;  %4074 = vmatpush.bf16.msra.mxu2 %v3387_v16  ;;  %v3327_v41 = vor.u32 %v3963_v38, %v3324_v39  ;;  %v3306_v42 = vld [vmem:[#allocation2] sm:$0xf]  ;;  %v3961_v43 = vld [vmem:[#allocation2 + $0xc] sm:$0xf0]  ;;  %v3959_v44 = vld [vmem:[#allocation2 + $0x4] sm:$0xf]  ;;  %s4487_s18 = scalar_lea.vmem %s6057_s1, %s3254_s5  ;;  %s4621_s29 = scalar_lea.vmem %s6056_s0, %s3254_s5 }
  0x33   : > { %816 = vmatpush.bf16.msra.mxu1 %v3391_v17  ;;  %4082 = vmatpush.bf16.msra.mxu3 %v3391_v17  ;;  %v3308_v45 = vld [vmem:[#allocation2 + $0x10] sm:$0xf0]  ;;  %v3426_v46 = vld [vmem:[#allocation2 + $0xe8] sm:$0xf]  ;;  %v3990_v47 = vld [vmem:[#allocation2 + $0xf4] sm:$0xf0]  ;;  %v3307_v50 = vor.u32 %v3961_v43, %v3306_v42  ;;  %s3135_s11 = scalar_lea.hbm %s6065_s9, %s4071_s3 }
  0x34   : > { %v3988_v48 = vld [vmem:[#allocation2 + $0xec] sm:$0xf]  ;;  %v3428_v49 = vld [vmem:[#allocation2 + $0xf8] sm:$0xf0]  ;;  %v3311_v51 = vor.u32 %v3959_v44, %v3308_v45  ;;  %v4490_v52 = vld [vmem:[%s4487_s18] sm:$0xff]  ;;  %v3427_v54 = vor.u32 %v3990_v47, %v3426_v46  ;;  %s5918_s28 = scalar_lea.vmem [#allocation8], %s4088_s25 }
  0x35   : > { %v4493_v53 = vld [vmem:[%s4487_s18 + $0x38] sm:$0xff]  ;;  %v3431_v55 = vor.u32 %v3988_v48, %v3428_v49  ;;  %v3410_v56 = vld [vmem:[#allocation2 + $0xc8] sm:$0xf]  ;;  %v3984_v58 = vld [vmem:[#allocation2 + $0xcc] sm:$0xf]  ;;  %s3136_s15 = sshll.u32 %s5918_s28, 4  ;;  %s3137_s15 = int_to_ptr.vmem [resolvable:$true] %s3136_s15 }
  0x36   : > { %744 = vmatpush.bf16.msra.mxu0 %v3371_v22  ;;  %4075 = vmatpush.bf16.msra.mxu2 %v3371_v22  ;;  %v3986_v57 = vld [vmem:[#allocation2 + $0xd4] sm:$0xf0]  ;;  %v3412_v59 = vld [vmem:[#allocation2 + $0xd8] sm:$0xf0]  ;;  %v3394_v62 = vld [vmem:[#allocation2 + $0xa8] sm:$0xf] }
  0x37   : > { %817 = vmatpush.bf16.msra.mxu1 %v3375_v23  ;;  %4083 = vmatpush.bf16.msra.mxu3 %v3375_v23  ;;  %v3411_v60 = vor.u32 %v3986_v57, %v3410_v56  ;;  %v3415_v61 = vor.u32 %v3984_v58, %v3412_v59  ;;  %v3982_v63 = vld [vmem:[#allocation2 + $0xb4] sm:$0xf0]  ;;  %v3980_v0 = vld [vmem:[#allocation2 + $0xac] sm:$0xf]  ;;  %v3396_v1 = vld [vmem:[#allocation2 + $0xb8] sm:$0xf0] }
  0x38   : > { %v3395_v2 = vor.u32 %v3982_v63, %v3394_v62  ;;  %v3399_v3 = vor.u32 %v3980_v0, %v3396_v1  ;;  %v3378_v4 = vld [vmem:[#allocation2 + $0x88] sm:$0xf]  ;;  %v3978_v5 = vld [vmem:[#allocation2 + $0x94] sm:$0xf0]  ;;  %v3976_v6 = vld [vmem:[#allocation2 + $0x8c] sm:$0xf] }
  0x39   : > { %v3380_v7 = vld [vmem:[#allocation2 + $0x98] sm:$0xf0]  ;;  %v3379_v8 = vor.u32 %v3978_v5, %v3378_v4  ;;  %v4500_v10 = vld [vmem:[%s4487_s18 + $0x8] sm:$0xff]  ;;  %v4503_v11 = vld [vmem:[%s4487_s18 + $0x40] sm:$0xff]  ;;  %s3138_s20 = sshll.u32 %s3135_s11, 4  ;;  %s3124_s13 = scalar_lea.sflag [#allocation4], %s390_s17  ;;  %s3139_s20 = int_to_ptr.hbm [resolvable:$true] %s3138_s20 }
  0x3a   : > { %745 = vmatpush.bf16.msra.mxu0 %v3355_v28  ;;  %4076 = vmatpush.bf16.msra.mxu2 %v3355_v28  ;;  %v3383_v9 = vor.u32 %v3976_v6, %v3380_v7  ;;  %v3362_v12 = vld [vmem:[#allocation2 + $0x68] sm:$0xf]  ;;  %v3974_v13 = vld [vmem:[#allocation2 + $0x74] sm:$0xf0]  ;;  %v3972_v14 = vld [vmem:[#allocation2 + $0x6c] sm:$0xf] }
  0x3b   : > { %818 = vmatpush.bf16.msra.mxu1 %v3359_v29  ;;  %4084 = vmatpush.bf16.msra.mxu3 %v3359_v29  ;;  %v3363_v15 = vor.u32 %v3974_v13, %v3362_v12  ;;  %v3364_v16 = vld [vmem:[#allocation2 + $0x78] sm:$0xf0]  ;;  %v3346_v17 = vld [vmem:[#allocation2 + $0x48] sm:$0xf]  ;;  %v3970_v18 = vld [vmem:[#allocation2 + $0x54] sm:$0xf0] }
  0x3c   : > { %v3367_v19 = vor.u32 %v3972_v14, %v3364_v16  ;;  %v3968_v20 = vld [vmem:[#allocation2 + $0x4c] sm:$0xf]  ;;  %v3348_v21 = vld [vmem:[#allocation2 + $0x58] sm:$0xf0]  ;;  %v3347_v22 = vor.u32 %v3970_v18, %v3346_v17  ;;  %v4510_v24 = vld [vmem:[%s4487_s18 + $0x10] sm:$0xff]  ;;  %s4273_s21 = sshra.s32 %s3139_s20, 4  ;;  %s4274_s21 = int_to_ptr.hbm [resolvable:$true] %s4273_s21 }
  0x3d   : > { %v3351_v23 = vor.u32 %v3968_v20, %v3348_v21  ;;  %v4513_v25 = vld [vmem:[%s4487_s18 + $0x48] sm:$0xff]  ;;  %v3966_v27 = vld [vmem:[#allocation2 + $0x34] sm:$0xf0]  ;;  %v3332_v30 = vld [vmem:[#allocation2 + $0x38] sm:$0xf0]  ;;  %s4275_s24 = scalar_lea.hbm %s4274_s21, 200  ;;  %p4280_p3 = scmp.lt.s32.totalorder %s4274_s21, %s6065_s9 }
  0x3e   : > { %746 = vmatpush.bf16.msra.mxu0 %v3339_v34  ;;  %4077 = vmatpush.bf16.msra.mxu2 %v3339_v34  ;;  %v3330_v26 = vld [vmem:[#allocation2 + $0x28] sm:$0xf]  ;;  %v3964_v28 = vld [vmem:[#allocation2 + $0x2c] sm:$0xf]  ;;  %v4520_v32 = vld [vmem:[%s4487_s18 + $0x18] sm:$0xff]  ;;  %p4276_p0 = scmp.ne.s32.totalorder %s4274_s21, %s4275_s24  ;;  %s4279_s27 = scalar_lea.hbm %s6065_s9, 600 }
  0x3f   : > { %819 = vmatpush.bf16.msra.mxu1 %v3343_v35  ;;  %4085 = vmatpush.bf16.msra.mxu3 %v3343_v35  ;;  %v3331_v29 = vor.u32 %v3966_v27, %v3330_v26  ;;  %v3335_v31 = vor.u32 %v3964_v28, %v3332_v30  ;;  %v4523_v33 = vld [vmem:[%s4487_s18 + $0x50] sm:$0xff]  ;;  %v3314_v34 = vld [vmem:[#allocation2 + $0x8] sm:$0xf]  ;;  %v3962_v35 = vld [vmem:[#allocation2 + $0x14] sm:$0xf0]  ;;  %p4281_p4 = scmp.lt.s32.totalorder %s4279_s27, %s4275_s24 }
  0x40   : > { %v3960_v36 = vld [vmem:[#allocation2 + $0xc] sm:$0xf]  ;;  %v3315_v37 = vor.u32 %v3962_v35, %v3314_v34  ;;  %v3316_v38 = vld [vmem:[#allocation2 + $0x18] sm:$0xf0]  ;;  %v3530_v42 = vld [vmem:[%s6058_s2 + $0x60] sm:$0xf]  ;;  %p4277_p1 = pnand %p4276_p0, %p4430_p5 }
  0x41   : > { %v3319_v39 = vor.u32 %v3960_v36, %v3316_v38  ;;  %v3945_v43 = vld [vmem:[%s6058_s2 + $0x6c] sm:$0xf0]  ;;  %v3943_v44 = vld [vmem:[%s6058_s2 + $0x64] sm:$0xf]  ;;  %v3532_v46 = vld [vmem:[%s6058_s2 + $0x70] sm:$0xf0]  ;;  %p4282_p7 = por %p4281_p4, %p4280_p3 }
  0x42   : > { %747 = vmatpush.bf16.msra.mxu0 %v3323_v40  ;;  %4078 = vmatpush.bf16.msra.mxu2 %v3323_v40  ;;  %v4530_v40 = vld [vmem:[%s4487_s18 + $0x20] sm:$0xff]  ;;  %v3531_v45 = vor.u32 %v3945_v43, %v3530_v42  ;;  %v3538_v47 = vld [vmem:[%s6058_s2 + $0x68] sm:$0xf]  ;;  %v3946_v48 = vld [vmem:[%s6058_s2 + $0x74] sm:$0xf0]  ;;  %v3535_v49 = vor.u32 %v3943_v44, %v3532_v46  ;;  %p4278_p2 = pneg %p4277_p1 }
  0x43   : > { %820 = vmatpush.bf16.msra.mxu1 %v3327_v41  ;;  %4086 = vmatpush.bf16.msra.mxu3 %v3327_v41  ;;  %v4533_v41 = vld [vmem:[%s4487_s18 + $0x58] sm:$0xff]  ;;  %v3941_v56 = vld [vmem:[%s6058_s2 + $0x4c] sm:$0xf0]  ;;  %v3939_v59 = vld [vmem:[%s6058_s2 + $0x44] sm:$0xf] }
  0x44   : > { %v3937_v63 = vld [vmem:[%s6058_s2 + $0x2c] sm:$0xf0]  ;;  %v3935_v0 = vld [vmem:[%s6058_s2 + $0x24] sm:$0xf]  ;;  %v3500_v1 = vld [vmem:[%s6058_s2 + $0x30] sm:$0xf0]  ;;  %p4283_p8 = pnand %p4282_p7, %p4278_p2 }
  0x45   : > { %v3503_v4 = vor.u32 %v3935_v0, %v3500_v1  ;;  %v3482_v5 = vld [vmem:[%s6058_s2] sm:$0xf]  ;;  %v3933_v6 = vld [vmem:[%s6058_s2 + $0xc] sm:$0xf0]  ;;  %v4601_v14 = vld [vmem:[%s4487_s18 + $0x28] sm:$0xff] }
  0x46   : > { %748 = vmatpush.bf16.msra.mxu0 %v3307_v50  ;;  %4079 = vmatpush.bf16.msra.mxu2 %v3307_v50  ;;  %v3944_v50 = vld [vmem:[%s6058_s2 + $0x6c] sm:$0xf]  ;;  %v3483_v12 = vor.u32 %v3933_v6, %v3482_v5  ;;  %v4610_v16 = vld [vmem:[%s4487_s18 + $0x30] sm:$0xff]  ;;  %v4624_v17 = vld [vmem:[%s4621_s29] sm:$0xff] }
  0x47   : > { %821 = vmatpush.bf16.msra.mxu1 %v3311_v51  ;;  %4087 = vmatpush.bf16.msra.mxu3 %v3311_v51  ;;  %v3539_v51 = vor.u32 %v3946_v48, %v3538_v47  ;;  %v3942_v18 = vld [vmem:[%s6058_s2 + $0x54] sm:$0xf0]  ;;  %v3940_v20 = vld [vmem:[%s6058_s2 + $0x4c] sm:$0xf]  ;;  %v4670_v35 = vld [vmem:[%s4621_s29 + $0x10] sm:$0xff] }
  0x48   : > { %v4757_v5 = vld [vmem:[%s4621_s29 + $0x28] sm:$0xff] }
  0x49   : > { %749 = vmatmul.bf16.vlgmr.msra.gmra.mxu0 %v4490_v52  ;;  %784 = vmatmul.bf16.vlgmr.msra.gmra.mxu2 %v4493_v53 }
  0x4a   : > { %887 = vmatpush.bf16.msrb.mxu2 %v3427_v54  ;;  %822 = vmatmul.bf16.vlgmr.msra.gmra.mxu1 %v4490_v52  ;;  %v3540_v54 = vld [vmem:[%s6058_s2 + $0x78] sm:$0xf0] }
  0x4b   : > { %960 = vmatpush.bf16.msrb.mxu3 %v3431_v55  ;;  %1220 = vmatpush.bf16.msrb.mxu0 %v3531_v45  ;;  %v3514_v55 = vld [vmem:[%s6058_s2 + $0x40] sm:$0xf]  ;;  %v3543_v57 = vor.u32 %v3944_v50, %v3540_v54  ;;  %v4695_v45 = vld [vmem:[%s4621_s29 + $0x18] sm:$0xff]  ;;  %v3936_v54 = vld [vmem:[%s6058_s2 + $0x2c] sm:$0xf] }
  0x4c   : > { %857 = vmatmul.bf16.vlgmr.msra.gmra.mxu3 %v4493_v53  ;;  %1293 = vmatpush.bf16.msrb.mxu1 %v3535_v49  ;;  %v3515_v58 = vor.u32 %v3941_v56, %v3514_v55  ;;  %v3508_v56 = vld [vmem:[%s6058_s2 + $0x38] sm:$0xf0] }
  0x4e   : > { %888 = vmatpush.bf16.msrb.mxu2 %v3411_v60  ;;  %v3516_v60 = vld [vmem:[%s6058_s2 + $0x50] sm:$0xf0] }
  0x4f   : > { %961 = vmatpush.bf16.msrb.mxu3 %v3415_v61  ;;  %v3498_v61 = vld [vmem:[%s6058_s2 + $0x20] sm:$0xf]  ;;  %v3519_v62 = vor.u32 %v3939_v59, %v3516_v60  ;;  %1221 = vmatpush.bf16.msrb.mxu0 %v3515_v58 }
  0x50   : > { %v4732_v60 = vld [vmem:[%s4621_s29 + $0x20] sm:$0xff] }
  0x51   : > { %1294 = vmatpush.bf16.msrb.mxu1 %v3519_v62 }
  0x52   : > { %889 = vmatpush.bf16.msrb.mxu2 %v3395_v2  ;;  %v472_v2 = vld [vmem:[%s4487_s18 + $0x60] sm:$0xf] }
  0x53   : > { %962 = vmatpush.bf16.msrb.mxu3 %v3399_v3  ;;  %v3499_v3 = vor.u32 %v3937_v63, %v3498_v61  ;;  %v554_v7 = vunpack.c.l.b16 %v472_v2 }
  0x55   : > { %1222 = vmatpush.bf16.msrb.mxu0 %v3499_v3  ;;  %1295 = vmatpush.bf16.msrb.mxu1 %v3503_v4 }
  0x56   : > { %890 = vmatpush.bf16.msrb.mxu2 %v3379_v8  ;;  %v3931_v8 = vld [vmem:[%s6058_s2 + $0x4] sm:$0xf] }
  0x57   : > { %963 = vmatpush.bf16.msrb.mxu3 %v3383_v9  ;;  %v3484_v9 = vld [vmem:[%s6058_s2 + $0x10] sm:$0xf0] }
  0x58   : > { %v3487_v13 = vor.u32 %v3931_v8, %v3484_v9 }
  0x59   : > { %754 = vmatmul.bf16.gmra.mxu0 %v4500_v10  ;;  %789 = vmatmul.bf16.gmra.mxu2 %v4503_v11 }
  0x5a   : > { %827 = vmatmul.bf16.gmra.mxu1 %v4500_v10  ;;  %891 = vmatpush.bf16.msrb.mxu2 %v3363_v15  ;;  %v4603_v15 = vpack.c.b16 %v554_v7, %v554_v7 }
  0x5b   : > { %964 = vmatpush.bf16.msrb.mxu3 %v3367_v19  ;;  %1223 = vmatpush.bf16.msrb.mxu0 %v3483_v12 }
  0x5c   : > { %862 = vmatmul.bf16.gmra.mxu3 %v4503_v11  ;;  %1296 = vmatpush.bf16.msrb.mxu1 %v3487_v13 }
  0x5e   : > { %892 = vmatpush.bf16.msrb.mxu2 %v3347_v22  ;;  %v4645_v22 = vld [vmem:[%s4621_s29 + $0x8] sm:$0xff] }
  0x5f   : > { %965 = vmatpush.bf16.msrb.mxu3 %v3351_v23 }
  0x62   : > { %893 = vmatpush.bf16.msrb.mxu2 %v3331_v29 }
  0x63   : > { %966 = vmatpush.bf16.msrb.mxu3 %v3335_v31 }
  0x66   : > { %894 = vmatpush.bf16.msrb.mxu2 %v3315_v37 }
  0x67   : > { %967 = vmatpush.bf16.msrb.mxu3 %v3319_v39 }
  0x69   : > { %759 = vmatmul.bf16.gmra.mxu0 %v4510_v24  ;;  %794 = vmatmul.bf16.gmra.mxu2 %v4513_v25 }
  0x6a   : > { %832 = vmatmul.bf16.gmra.mxu1 %v4510_v24  ;;  %1366 = vmatpush.bf16.msra.mxu2 %v3539_v51  ;;  %v3506_v51 = vld [vmem:[%s6058_s2 + $0x28] sm:$0xf] }
  0x6b   : > { %1439 = vmatpush.bf16.msra.mxu3 %v3543_v57  ;;  %v3511_v57 = vor.u32 %v3936_v54, %v3508_v56  ;;  %v4022_v56 = vld [vmem:[#allocation5 + $0xf4] sm:$0xf0] }
  0x6c   : > { %867 = vmatmul.bf16.gmra.mxu3 %v4513_v25 }
  0x79   : > { %764 = vmatmul.bf16.gmra.mxu0 %v4520_v32  ;;  %799 = vmatmul.bf16.gmra.mxu2 %v4523_v33 }
  0x7a   : > { %837 = vmatmul.bf16.gmra.mxu1 %v4520_v32 }
  0x7c   : > { %872 = vmatmul.bf16.gmra.mxu3 %v4523_v33 }
  0x89   : > { %769 = vmatmul.bf16.gmra.mxu0 %v4530_v40  ;;  %804 = vmatmul.bf16.gmra.mxu2 %v4533_v41 }
  0x8a   : > { %842 = vmatmul.bf16.gmra.mxu1 %v4530_v40 }
  0x8c   : > { %877 = vmatmul.bf16.gmra.mxu3 %v4533_v41 }
  0x99   : > { %774 = vmatmul.bf16.gmra.mxu0 %v4601_v14  ;;  %809 = vmatmul.bf16.gmra.mxu2 %v4603_v15 }
  0x9a   : > { %847 = vmatmul.bf16.gmra.mxu1 %v4601_v14 }
  0x9c   : > { %882 = vmatmul.bf16.gmra.mxu3 %v4603_v15 }
  0xa9   : > { %779 = vmatmul.bf16.gmra.mxu0 %v4610_v16  ;;  %895 = vmatmul.bf16.vlgmr.msrb.gmra.mxu2 %v4490_v52 }
  0xaa   : > { %852 = vmatmul.bf16.gmra.mxu1 %v4610_v16 }
  0xac   : > { %968 = vmatmul.bf16.vlgmr.msrb.gmra.mxu3 %v4490_v52  ;;  %v3522_v52 = vld [vmem:[%s6058_s2 + $0x48] sm:$0xf] }
  0xad   : > { %v3523_v19 = vor.u32 %v3942_v18, %v3522_v52  ;;  %v4782_v18 = vld [vmem:[%s4621_s29 + $0x30] sm:$0xff] }
  0xae   : > { %6121 = vst [vmem:[#allocation27_spill] sm:$0xff] %v4782_v18 }
  0xaf   : > { %1367 = vmatpush.bf16.msra.mxu2 %v3523_v19 }
  0xb9   : > { %900 = vmatmul.bf16.gmra.mxu2 %v4500_v10  ;;  %3544 = vmatmul.msk.bf16.vlgmr.msrb.gmra.mxu0 %vm1176_vm0, %v4624_v17 }
  0xba   : > { %3557 = vmatmul.msk.bf16.vlgmr.msrb.gmra.mxu1 %vm1176_vm0, %v4624_v17 }
  0xbc   : > { %973 = vmatmul.bf16.gmra.mxu3 %v4500_v10  ;;  %v3524_v10 = vld [vmem:[%s6058_s2 + $0x58] sm:$0xf0] }
  0xbd   : > { %v3527_v21 = vor.u32 %v3940_v20, %v3524_v10 }
  0xbf   : > { %1440 = vmatpush.bf16.msra.mxu3 %v3527_v21  ;;  %v3654_v21 = vld [vmem:[#allocation5 + $0x70] sm:$0xf] }
  0xc3   : > { %1441 = vmatpush.bf16.msra.mxu3 %v3511_v57 }
  0xc6   : > { %v4647_v23 = vpop.f32.mrf.mxu0 }
  0xc7   : > { %v4649_v26 = vpop.f32.mrf.mxu1 }
  0xc9   : > { %905 = vmatmul.bf16.gmra.mxu2 %v4510_v24  ;;  %3545 = vmatmul.msk.bf16.gmra.mxu0 %vm1176_vm0, %v4645_v22 }
  0xca   : > { %3558 = vmatmul.msk.bf16.gmra.mxu1 %vm1176_vm0, %v4645_v22 }
  0xcc   : > { %978 = vmatmul.bf16.gmra.mxu3 %v4510_v24  ;;  %v4657_v27 = vpop.f32.mrf.mxu2 }
  0xce   : > { %v4661_v29 = vpop.f32.mrf.mxu0 }
  0xcf   : > { %v4659_v28 = vpop.f32.mrf.mxu3  ;;  %v4663_v30 = vpop.f32.mrf.mxu1 }
  0xd4   : > { %v4665_v31 = vpop.f32.mrf.mxu2 }
  0xd6   : > { %v4672_v36 = vpop.f32.mrf.mxu0 }
  0xd7   : > { %v4667_v34 = vpop.f32.mrf.mxu3  ;;  %v4674_v24 = vpop.f32.mrf.mxu1 }
  0xd9   : > { %910 = vmatmul.bf16.gmra.mxu2 %v4520_v32  ;;  %3546 = vmatmul.msk.bf16.gmra.mxu0 %vm1176_vm0, %v4670_v35 }
  0xda   : > { %3559 = vmatmul.msk.bf16.gmra.mxu1 %vm1176_vm0, %v4670_v35 }
  0xdc   : > { %983 = vmatmul.bf16.gmra.mxu3 %v4520_v32  ;;  %v4682_v37 = vpop.f32.mrf.mxu2 }
  0xde   : > { %v4686_v39 = vpop.f32.mrf.mxu0 }
  0xdf   : > { %v4684_v38 = vpop.f32.mrf.mxu3  ;;  %v4688_v42 = vpop.f32.mrf.mxu1 }
  0xe4   : > { %v4690_v43 = vpop.f32.mrf.mxu2 }
  0xe6   : > { %v4697_v46 = vpop.f32.mrf.mxu0 }
  0xe7   : > { %v4692_v44 = vpop.f32.mrf.mxu3  ;;  %v4699_v32 = vpop.f32.mrf.mxu1 }
  0xe9   : > { %915 = vmatmul.bf16.gmra.mxu2 %v4530_v40  ;;  %3547 = vmatmul.msk.bf16.gmra.mxu0 %vm1176_vm0, %v4695_v45 }
  0xea   : > { %3560 = vmatmul.msk.bf16.gmra.mxu1 %vm1176_vm0, %v4695_v45 }
  0xec   : > { %988 = vmatmul.bf16.gmra.mxu3 %v4530_v40  ;;  %v4707_v47 = vpop.f32.mrf.mxu2  ;;  %v3938_v40 = vld [vmem:[%s6058_s2 + $0x34] sm:$0xf0] }
  0xed   : > { %v3507_v55 = vor.u32 %v3938_v40, %v3506_v51  ;;  %v4006_v51 = vld [vmem:[#allocation5 + $0x74] sm:$0xf0]  ;;  %v3718_v40 = vld [vmem:[#allocation5 + $0xf0] sm:$0xf] }
  0xee   : > { %v4711_v49 = vpop.f32.mrf.mxu0 }
  0xef   : > { %v4709_v48 = vpop.f32.mrf.mxu3  ;;  %v4713_v50 = vpop.f32.mrf.mxu1  ;;  %1368 = vmatpush.bf16.msra.mxu2 %v3507_v55  ;;  %v3655_v55 = vor.u32 %v4006_v51, %v3654_v21  ;;  %v3934_v21 = vld [vmem:[%s6058_s2 + $0x14] sm:$0xf0] }
  0xf0   : > { %6110 = vst [vmem:[#allocation16_spill] sm:$0xff] %v4709_v48 }
  0xf1   : > { %2160 = vmatpush.bf16.msra.mxu0 %v3655_v55 }
  0xf4   : > { %v4727_v58 = vpop.f32.mrf.mxu2 }
  0xf5   : > { %6111 = vst [vmem:[#allocation17_spill] sm:$0xff] %v4727_v58 }
  0xf6   : > { %v4734_v61 = vpop.f32.mrf.mxu0 }
  0xf7   : > { %v4729_v59 = vpop.f32.mrf.mxu3  ;;  %v4736_v62 = vpop.f32.mrf.mxu1 }
  0xf8   : > { %6112 = vst [vmem:[#allocation18_spill] sm:$0xff] %v4729_v59 }
  0xf9   : > { %920 = vmatmul.bf16.gmra.mxu2 %v4601_v14  ;;  %3548 = vmatmul.msk.bf16.gmra.mxu0 %vm1176_vm0, %v4732_v60 }
  0xfa   : > { %3561 = vmatmul.msk.bf16.gmra.mxu1 %vm1176_vm0, %v4732_v60 }
  0xfc   : > { %993 = vmatmul.bf16.gmra.mxu3 %v4601_v14  ;;  %v4744_v63 = vpop.f32.mrf.mxu2 }
  0xfd   : > { %6113 = vst [vmem:[#allocation19_spill] sm:$0xff] %v4744_v63  ;;  %v3710_v63 = vld [vmem:[#allocation5 + $0xe0] sm:$0xf] }
  0xfe   : > { %v4748_v1 = vpop.f32.mrf.mxu0 }
  0xff   : > { %v4746_v0 = vpop.f32.mrf.mxu3  ;;  %v4750_v2 = vpop.f32.mrf.mxu1 }
 0x100   : > { %6114 = vst [vmem:[#allocation20_spill] sm:$0xff] %v4746_v0 }
 0x104   : > { %v4752_v3 = vpop.f32.mrf.mxu2 }
 0x105   : > { %6115 = vst [vmem:[#allocation21_spill] sm:$0xff] %v4752_v3 }
 0x106   : > { %v4759_v6 = vpop.f32.mrf.mxu0 }
 0x107   : > { %v4754_v4 = vpop.f32.mrf.mxu3  ;;  %v4761_v7 = vpop.f32.mrf.mxu1 }
 0x108   : > { %6116 = vst [vmem:[#allocation22_spill] sm:$0xff] %v4754_v4 }
 0x109   : > { %925 = vmatmul.bf16.gmra.mxu2 %v4610_v16  ;;  %3549 = vmatmul.msk.bf16.gmra.mxu0 %vm1176_vm0, %v4757_v5 }
 0x10a   : > { %3562 = vmatmul.msk.bf16.gmra.mxu1 %vm1176_vm0, %v4757_v5 }
 0x10c   : > { %998 = vmatmul.bf16.gmra.mxu3 %v4610_v16  ;;  %v4769_v8 = vpop.f32.mrf.mxu2 }
 0x10d   : > { %6117 = vst [vmem:[#allocation23_spill] sm:$0xff] %v4769_v8 }
 0x10e   : > { %v4773_v12 = vpop.f32.mrf.mxu0 }
 0x10f   : > { %v4771_v9 = vpop.f32.mrf.mxu3  ;;  %v4775_v13 = vpop.f32.mrf.mxu1 }
 0x110   : > { %6118 = vst [vmem:[#allocation24_spill] sm:$0xff] %v4771_v9  ;;  %v4803_v9 = vld [vmem:[%s4621_s29 + $0x38] sm:$0xff] }
 0x111   : > { %6124 = vst [vmem:[#allocation30_spill] sm:$0xff] %v4803_v9 }
 0x114   : > { %v4777_v14 = vpop.f32.mrf.mxu2 }
 0x115   : > { %6119 = vst [vmem:[#allocation25_spill] sm:$0xff] %v4777_v14 }
 0x116   : > { %v4784_v19 = vpop.f32.mrf.mxu0 }
 0x117   : > { %v4779_v52 = vpop.f32.mrf.mxu3  ;;  %v4786_v16 = vpop.f32.mrf.mxu1 }
 0x118   : > { %6120 = vst [vmem:[#allocation26_spill] sm:$0xff] %v4779_v52  ;;  %v3719_v52 = vor.u32 %v4022_v56, %v3718_v40 }
 0x119   : > { %930 = vmatmul.bf16.gmra.mxu2 %v4493_v53  ;;  %3550 = vmatmul.msk.bf16.gmra.mxu0 %vm1176_vm0, %v4782_v18 }
 0x11a   : > { %3563 = vmatmul.msk.bf16.gmra.mxu1 %vm1176_vm0, %v4782_v18  ;;  %v4020_v18 = vld [vmem:[#allocation5 + $0xe4] sm:$0xf0] }
 0x11b   : > { %2233 = vmatpush.bf16.msra.mxu1 %v3719_v52  ;;  %v3932_v52 = vld [vmem:[%s6058_s2 + $0xc] sm:$0xf] }
 0x11c   : > { %1003 = vmatmul.bf16.gmra.mxu3 %v4493_v53  ;;  %v4794_v20 = vpop.f32.mrf.mxu2 }
 0x11d   : > { %6122 = vst [vmem:[#allocation28_spill] sm:$0xff] %v4794_v20 }
 0x11e   : > { %v4798_v54 = vpop.f32.mrf.mxu0 }
 0x11f   : > { %v4796_v10 = vpop.f32.mrf.mxu3  ;;  %v4800_v57 = vpop.f32.mrf.mxu1 }
 0x120   : > { %6123 = vst [vmem:[#allocation29_spill] sm:$0xff] %v4796_v10  ;;  %v3490_v10 = vld [vmem:[%s6058_s2 + $0x8] sm:$0xf] }
 0x121   : > { %v3491_v20 = vor.u32 %v3934_v21, %v3490_v10  ;;  %v3492_v10 = vld [vmem:[%s6058_s2 + $0x18] sm:$0xf0]  ;;  %v4840_v21 = vld [vmem:[%s4621_s29 + $0x40] sm:$0xff] }
 0x122   : > { %v3495_v55 = vor.u32 %v3932_v52, %v3492_v10  ;;  %6129 = vst [vmem:[#allocation35_spill] sm:$0xff] %v4840_v21 }
 0x123   : > { %1369 = vmatpush.bf16.msra.mxu2 %v3491_v20 }
 0x124   : > { %v812_v53 = vpop.f32.mrf.mxu2  ;;  %1442 = vmatpush.bf16.msra.mxu3 %v3495_v55 }
 0x126   : > { %v4805_v8 = vpop.f32.mrf.mxu0 }
 0x127   : > { %v885_v14 = vpop.f32.mrf.mxu3  ;;  %v4813_v51 = vpop.f32.mrf.mxu1 }
 0x129   : > { %935 = vmatmul.bf16.gmra.mxu2 %v4503_v11  ;;  %3551 = vmatmul.msk.bf16.gmra.mxu0 %vm1176_vm0, %v4803_v9 }
 0x12a   : > { %3564 = vmatmul.msk.bf16.gmra.mxu1 %vm1176_vm0, %v4803_v9  ;;  %v1508_v9 = vld [vmem:[%s6060_s4] sm:$0xf] }
 0x12b   : > { %v4846_v52 = vperm.slane %v1508_v9, 0  ;;  %v4852_v55 = vperm.slane %v1508_v9, 1  ;;  %v3711_v9 = vor.u32 %v4020_v18, %v3710_v63 }
 0x12c   : > { %1008 = vmatmul.bf16.gmra.mxu3 %v4503_v11  ;;  %v4821_v14 = vpop.f32.mrf.mxu2 }
 0x12d   : > { %6125 = vst [vmem:[#allocation31_spill] sm:$0xff] %v4821_v14  ;;  %2234 = vmatpush.bf16.msra.mxu1 %v3711_v9 }
 0x12e   : > { %v4831_v56 = vpop.f32.mrf.mxu0 }
 0x12f   : > { %v4829_v40 = vpop.f32.mrf.mxu3  ;;  %v4833_v11 = vpop.f32.mrf.mxu1 }
 0x130   : > { %6126 = vst [vmem:[#allocation32_spill] sm:$0xff] %v4829_v40 }
 0x134   : > { %v4835_v53 = vpop.f32.mrf.mxu2 }
 0x135   : > { %6127 = vst [vmem:[#allocation33_spill] sm:$0xff] %v4835_v53  ;;  %v3646_v53 = vld [vmem:[#allocation5 + $0x60] sm:$0xf] }
 0x136   : > { %v1225_v14 = vpop.f32.mrf.mxu0 }
 0x137   : > { %v4837_v20 = vpop.f32.mrf.mxu3  ;;  %v1298_v4 = vpop.f32.mrf.mxu1  ;;  %v1226_v40 = vadd.f32 %v1225_v14, %v4647_v23  ;;  %v4004_v23 = vld [vmem:[#allocation5 + $0x64] sm:$0xf0] }
 0x138   : > { %6128 = vst [vmem:[#allocation34_spill] sm:$0xff] %v4837_v20  ;;  %v1299_v10 = vadd.f32 %v1298_v4, %v4649_v26  ;;  %v3647_v0 = vor.u32 %v4004_v23, %v3646_v53 }
 0x139   : > { %940 = vmatmul.bf16.gmra.mxu2 %v4513_v25  ;;  %3552 = vmatmul.msk.bf16.gmra.mxu0 %vm1176_vm0, %v4840_v21  ;;  %v1518_v14 = vadd.f32 %v4846_v52, %v1226_v40 }
 0x13a   : > { %3565 = vmatmul.msk.bf16.gmra.mxu1 %vm1176_vm0, %v4840_v21  ;;  %v1519_v26 = vadd.f32 %v4852_v55, %v1299_v10  ;;  %2161 = vmatpush.bf16.msra.mxu0 %v3647_v0 }
 0x13b   : > { %v1618_v21 = vmax.f32 %v1518_v14, 0.0 }
 0x13c   : > { %1013 = vmatmul.bf16.gmra.mxu3 %v4513_v25  ;;  %v4857_v20 = vpop.f32.mrf.mxu2  ;;  %v1619_v58 = vmax.f32 %v1519_v26, 0.0 }
 0x13d   : > { %6130 = vst [vmem:[#allocation36_spill] sm:$0xff] %v4857_v20 }
 0x13e   : > { %v1227_v4 = vpop.f32.mrf.mxu0 }
 0x13f   : > { %v4860_v3 = vpop.f32.mrf.mxu3  ;;  %v1228_v25 = vadd.f32 %v1227_v4, %v4661_v29  ;;  %v1300_v59 = vpop.f32.mrf.mxu1  ;;  %v4874_v29 = vld [vmem:[%s4621_s29 + $0x48] sm:$0xff] }
 0x140   : > { %6131 = vst [vmem:[#allocation37_spill] sm:$0xff] %v4860_v3  ;;  %v1301_v20 = vadd.f32 %v1300_v59, %v4663_v30 }
 0x141   : > { %v1522_v40 = vadd.f32 %v4846_v52, %v1228_v25  ;;  %v4002_v25 = vld [vmem:[#allocation5 + $0x54] sm:$0xf0] }
 0x142   : > { %v1523_v53 = vadd.f32 %v4852_v55, %v1301_v20 }
 0x143   : > { %v1622_v23 = vmax.f32 %v1522_v40, 0.0 }
 0x144   : > { %v1623_v3 = vmax.f32 %v1523_v53, 0.0  ;;  %v4867_v48 = vpop.f32.mrf.mxu2 }
 0x145   : > { %6132 = vst [vmem:[#allocation38_spill] sm:$0xff] %v4867_v48  ;;  %v4869_v10 = vpack.c.bf16 %v1622_v23, %v1618_v21 }
 0x146   : > { %v4876_v0 = vpack.c.bf16 %v1623_v3, %v1619_v58  ;;  %v1230_v30 = vpop.f32.mrf.mxu0 }
 0x147   : > { %v4871_v63 = vpop.f32.mrf.mxu3  ;;  %v1303_v59 = vpop.f32.mrf.mxu1  ;;  %v1231_v18 = vadd.f32 %v1230_v30, %v4672_v36  ;;  %v4018_v30 = vld [vmem:[#allocation5 + $0xd4] sm:$0xf0] }
 0x148   : > { %6133 = vst [vmem:[#allocation39_spill] sm:$0xff] %v4871_v63  ;;  %v1304_v20 = vadd.f32 %v1303_v59, %v4674_v24  ;;  %v3638_v24 = vld [vmem:[#allocation5 + $0x50] sm:$0xf] }
 0x149   : > { %945 = vmatmul.bf16.gmra.mxu2 %v4523_v33  ;;  %3553 = vmatmul.msk.bf16.gmra.mxu0 %vm1176_vm0, %v4874_v29  ;;  %v1526_v58 = vadd.f32 %v4846_v52, %v1231_v18  ;;  %v3639_v23 = vor.u32 %v4002_v25, %v3638_v24  ;;  %v4901_v63 = vld [vmem:[%s4621_s29 + $0x50] sm:$0xff]  ;;  %v4016_v24 = vld [vmem:[#allocation5 + $0xc4] sm:$0xf0] }
 0x14a   : > { %3566 = vmatmul.msk.bf16.gmra.mxu1 %vm1176_vm0, %v4874_v29  ;;  %v1527_v36 = vadd.f32 %v4852_v55, %v1304_v20 }
 0x14b   : > { %v1626_v40 = vmax.f32 %v1526_v58, 0.0  ;;  %2162 = vmatpush.bf16.msra.mxu0 %v3639_v23  ;;  %v3622_v23 = vld [vmem:[#allocation5 + $0x30] sm:$0xf] }
 0x14c   : > { %1018 = vmatmul.bf16.gmra.mxu3 %v4523_v33  ;;  %v4886_v21 = vpop.f32.mrf.mxu2  ;;  %v3702_v33 = vld [vmem:[#allocation5 + $0xd0] sm:$0xf]  ;;  %v1627_v59 = vmax.f32 %v1527_v36, 0.0 }
 0x14d   : > { %6134 = vst [vmem:[#allocation40_spill] sm:$0xff] %v4886_v21 }
 0x14e   : > { %v1232_v14 = vpop.f32.mrf.mxu0 }
 0x14f   : > { %v4889_v3 = vpop.f32.mrf.mxu3  ;;  %v1233_v26 = vadd.f32 %v1232_v14, %v4686_v39  ;;  %v1305_v4 = vpop.f32.mrf.mxu1  ;;  %v4000_v14 = vld [vmem:[#allocation5 + $0x44] sm:$0xf0] }
 0x150   : > { %6135 = vst [vmem:[#allocation41_spill] sm:$0xff] %v4889_v3  ;;  %v1306_v9 = vadd.f32 %v1305_v4, %v4688_v42  ;;  %v3703_v3 = vor.u32 %v4018_v30, %v3702_v33  ;;  %v3630_v42 = vld [vmem:[#allocation5 + $0x40] sm:$0xf]  ;;  %v3686_v30 = vld [vmem:[#allocation5 + $0xb0] sm:$0xf] }
 0x151   : > { %v1530_v53 = vadd.f32 %v4846_v52, %v1233_v26  ;;  %v3631_v58 = vor.u32 %v4000_v14, %v3630_v42  ;;  %v3694_v26 = vld [vmem:[#allocation5 + $0xc0] sm:$0xf]  ;;  %v3782_v14 = vld [vmem:[#allocation5 + $0x170] sm:$0xf] }
 0x152   : > { %v1531_v18 = vadd.f32 %v4852_v55, %v1306_v9  ;;  %2235 = vmatpush.bf16.msra.mxu1 %v3703_v3  ;;  %v3695_v9 = vor.u32 %v4016_v24, %v3694_v26  ;;  %v3998_v3 = vld [vmem:[#allocation5 + $0x34] sm:$0xf0] }
 0x153   : > { %v1630_v20 = vmax.f32 %v1530_v53, 0.0  ;;  %2163 = vmatpush.bf16.msra.mxu0 %v3631_v58  ;;  %v3623_v42 = vor.u32 %v3998_v3, %v3622_v23  ;;  %v3996_v3 = vld [vmem:[#allocation5 + $0x24] sm:$0xf0] }
 0x154   : > { %v1631_v21 = vmax.f32 %v1531_v18, 0.0  ;;  %v4896_v39 = vpop.f32.mrf.mxu2 }
 0x155   : > { %6136 = vst [vmem:[#allocation42_spill] sm:$0xff] %v4896_v39  ;;  %v4903_v25 = vpack.c.bf16 %v1630_v20, %v1626_v40  ;;  %v4014_v40 = vld [vmem:[#allocation5 + $0xb4] sm:$0xf0] }
 0x156   : > { %v1235_v36 = vpop.f32.mrf.mxu0  ;;  %v4905_v33 = vpack.c.bf16 %v1631_v21, %v1627_v59  ;;  %2236 = vmatpush.bf16.msra.mxu1 %v3695_v9  ;;  %v3687_v21 = vor.u32 %v4014_v40, %v3686_v30  ;;  %v4054_v9 = vld [vmem:[#allocation5 + $0x1f4] sm:$0xf0]  ;;  %v3678_v30 = vld [vmem:[#allocation5 + $0xa0] sm:$0xf] }
 0x157   : > { %v4898_v4 = vpop.f32.mrf.mxu3  ;;  %v1308_v53 = vpop.f32.mrf.mxu1  ;;  %v1236_v18 = vadd.f32 %v1235_v36, %v4697_v46  ;;  %2164 = vmatpush.bf16.msra.mxu0 %v3623_v42  ;;  %v4038_v46 = vld [vmem:[#allocation5 + $0x174] sm:$0xf0]  ;;  %v3846_v36 = vld [vmem:[#allocation5 + $0x1f0] sm:$0xf]  ;;  %v4012_v42 = vld [vmem:[#allocation5 + $0xa4] sm:$0xf0] }
 0x158   : > { %6137 = vst [vmem:[#allocation43_spill] sm:$0xff] %v4898_v4  ;;  %v1309_v20 = vadd.f32 %v1308_v53, %v4699_v32  ;;  %v3783_v24 = vor.u32 %v4038_v46, %v3782_v14  ;;  %v3614_v32 = vld [vmem:[#allocation5 + $0x20] sm:$0xf]  ;;  %v3847_v23 = vor.u32 %v4054_v9, %v3846_v36  ;;  %v3679_v4 = vor.u32 %v4012_v42, %v3678_v30  ;;  %v3606_v14 = vld [vmem:[#allocation5 + $0x10] sm:$0xf]  ;;  %v4930_v30 = vld [vmem:[%s4621_s29 + $0x58] sm:$0xff] }
 0x159   : > { %950 = vmatmul.bf16.gmra.mxu2 %v4533_v41  ;;  %3554 = vmatmul.msk.bf16.gmra.mxu0 %vm1176_vm0, %v4901_v63  ;;  %v1534_v58 = vadd.f32 %v4846_v52, %v1236_v18  ;;  %v3994_v46 = vld [vmem:[#allocation5 + $0x14] sm:$0xf0] }
 0x15a   : > { %3567 = vmatmul.msk.bf16.gmra.mxu1 %vm1176_vm0, %v4901_v63  ;;  %2306 = vmatpush.bf16.msrb.mxu2 %v3783_v24  ;;  %v3607_v36 = vor.u32 %v3994_v46, %v3606_v14  ;;  %v4010_v9 = vld [vmem:[#allocation5 + $0x94] sm:$0xf0] }
 0x15b   : > { %2237 = vmatpush.bf16.msra.mxu1 %v3687_v21  ;;  %v3615_v21 = vor.u32 %v3996_v3, %v3614_v32  ;;  %2379 = vmatpush.bf16.msrb.mxu3 %v3847_v23  ;;  %v1634_v39 = vmax.f32 %v1534_v58, 0.0  ;;  %v3662_v58 = vld [vmem:[#allocation5 + $0x80] sm:$0xf] }
 0x15c   : > { %1023 = vmatmul.bf16.gmra.mxu3 %v4533_v41  ;;  %v4915_v59 = vpop.f32.mrf.mxu2  ;;  %v1535_v41 = vadd.f32 %v4852_v55, %v1309_v20 }
 0x15d   : > { %6138 = vst [vmem:[#allocation44_spill] sm:$0xff] %v4915_v59  ;;  %2165 = vmatpush.bf16.msra.mxu0 %v3615_v21 }
 0x15e   : > { %v1237_v53 = vpop.f32.mrf.mxu0  ;;  %v1635_v48 = vmax.f32 %v1535_v41, 0.0 }
 0x15f   : > { %v4918_v26 = vpop.f32.mrf.mxu3  ;;  %v1238_v40 = vadd.f32 %v1237_v53, %v4711_v49  ;;  %v1310_v59 = vpop.f32.mrf.mxu1  ;;  %2238 = vmatpush.bf16.msra.mxu1 %v3679_v4  ;;  %v4008_v4 = vld [vmem:[#allocation5 + $0x84] sm:$0xf0] }
 0x160   : > { %6139 = vst [vmem:[#allocation45_spill] sm:$0xff] %v4918_v26  ;;  %v1311_v18 = vadd.f32 %v1310_v59, %v4713_v50  ;;  %v3670_v26 = vld [vmem:[#allocation5 + $0x90] sm:$0xf]  ;;  %v3598_v50 = vld [vmem:[#allocation5] sm:$0xf] }
 0x161   : > { %v1538_v20 = vadd.f32 %v4846_v52, %v1238_v40  ;;  %v3671_v24 = vor.u32 %v4010_v9, %v3670_v26  ;;  %v3992_v59 = vld [vmem:[#allocation5 + $0x4] sm:$0xf0]  ;;  %2166 = vmatpush.bf16.msra.mxu0 %v3607_v36  ;;  %v431_v9 = vld [vmem:[%s4621_s29 + $0x60] sm:$0xf] }
 0x162   : > { %v1539_v49 = vadd.f32 %v4852_v55, %v1311_v18  ;;  %v3599_v21 = vor.u32 %v3992_v59, %v3598_v50  ;;  %v3663_v18 = vor.u32 %v4008_v4, %v3662_v58 }
 0x163   : > { %v1638_v32 = vmax.f32 %v1538_v20, 0.0  ;;  %2239 = vmatpush.bf16.msra.mxu1 %v3671_v24 }
 0x164   : > { %v1639_v53 = vmax.f32 %v1539_v49, 0.0  ;;  %v4925_v3 = vpop.f32.mrf.mxu2 }
 0x165   : > { %v4932_v42 = vpack.c.bf16 %v1638_v32, %v1634_v39  ;;  %2167 = vmatpush.bf16.msra.mxu0 %v3599_v21  ;;  %v4036_v21 = vld [vmem:[#allocation5 + $0x164] sm:$0xf0] }
 0x166   : > { %v1240_v41 = vpop.f32.mrf.mxu0  ;;  %v4934_v40 = vpack.c.bf16 %v1639_v53, %v1635_v48  ;;  %v1082_v53 = vunpack.c.l.b16 %v431_v9 }
 0x167   : > { %v4927_v23 = vpop.f32.mrf.mxu3  ;;  %v1313_v26 = vpop.f32.mrf.mxu1  ;;  %v1241_v14 = vadd.f32 %v1240_v41, %v4734_v61  ;;  %2240 = vmatpush.bf16.msra.mxu1 %v3663_v18 }
 0x168   : > { %v1314_v46 = vadd.f32 %v1313_v26, %v4736_v62  ;;  %v3774_v26 = vld [vmem:[#allocation5 + $0x160] sm:$0xf] }
 0x169   : > { %955 = vmatmul.bf16.gmra.mxu2 %v4603_v15  ;;  %3555 = vmatmul.msk.bf16.gmra.mxu0 %vm1176_vm0, %v4930_v30  ;;  %v1542_v39 = vadd.f32 %v4846_v52, %v1241_v14  ;;  %v4959_v14 = vpack.c.b16 %v1082_v53, %v1082_v53 }
 0x16a   : > { %3568 = vmatmul.msk.bf16.gmra.mxu1 %vm1176_vm0, %v4930_v30  ;;  %v1543_v61 = vadd.f32 %v4852_v55, %v1314_v46  ;;  %v3838_v46 = vld [vmem:[#allocation5 + $0x1e0] sm:$0xf] }
 0x16b   : > { %v1642_v24 = vmax.f32 %v1542_v39, 0.0 }
 0x16c   : > { %1028 = vmatmul.bf16.gmra.mxu3 %v4603_v15  ;;  %v4944_v48 = vpop.f32.mrf.mxu2  ;;  %v1643_v50 = vmax.f32 %v1543_v61, 0.0 }
 0x16e   : > { %v1242_v36 = vpop.f32.mrf.mxu0 }
 0x16f   : > { %v4947_v20 = vpop.f32.mrf.mxu3  ;;  %v1243_v49 = vadd.f32 %v1242_v36, %v4748_v1  ;;  %v1315_v62 = vpop.f32.mrf.mxu1  ;;  %v3775_v1 = vor.u32 %v4036_v21, %v3774_v26 }
 0x170   : > { %v1316_v15 = vadd.f32 %v1315_v62, %v4750_v2  ;;  %v4052_v2 = vld [vmem:[#allocation5 + $0x1e4] sm:$0xf0] }
 0x171   : > { %v1546_v32 = vadd.f32 %v4846_v52, %v1243_v49  ;;  %v3839_v9 = vor.u32 %v4052_v2, %v3838_v46  ;;  %2307 = vmatpush.bf16.msrb.mxu2 %v3775_v1 }
 0x172   : > { %v1547_v59 = vadd.f32 %v4852_v55, %v1316_v15 }
 0x173   : > { %v1646_v58 = vmax.f32 %v1546_v32, 0.0  ;;  %2380 = vmatpush.bf16.msrb.mxu3 %v3839_v9 }
 0x174   : > { %v1647_v4 = vmax.f32 %v1547_v59, 0.0  ;;  %v4955_v41 = vpop.f32.mrf.mxu2 }
 0x175   : > { %v4961_v39 = vpack.c.bf16 %v1646_v58, %v1642_v24 }
 0x176   : > { %v1245_v36 = vpop.f32.mrf.mxu0  ;;  %v4963_v61 = vpack.c.bf16 %v1647_v4, %v1643_v50 }
 0x177   : > { %v4957_v18 = vpop.f32.mrf.mxu3  ;;  %v1318_v49 = vpop.f32.mrf.mxu1  ;;  %v1246_v62 = vadd.f32 %v1245_v36, %v4759_v6 }
 0x178   : > { %v1319_v15 = vadd.f32 %v1318_v49, %v4761_v7 }
 0x179   : > { %3556 = vmatmul.msk.bf16.gmra.mxu0 %vm1176_vm0, %v4959_v14  ;;  %3570 = vmatmul.msk.bf16.vlgmr.msra.gmra.mxu2 %vm1176_vm0, %v4624_v17  ;;  %v1550_v32 = vadd.f32 %v4846_v52, %v1246_v62 }
 0x17a   : > { %3569 = vmatmul.msk.bf16.gmra.mxu1 %vm1176_vm0, %v4959_v14  ;;  %v1551_v6 = vadd.f32 %v4852_v55, %v1319_v15 }
 0x17b   : > { %v1650_v4 = vmax.f32 %v1550_v32, 0.0 }
 0x17c   : > { %3583 = vmatmul.msk.bf16.vlgmr.msra.gmra.mxu3 %vm1176_vm0, %v4624_v17  ;;  %v4975_v24 = vpop.f32.mrf.mxu2  ;;  %v1651_v21 = vmax.f32 %v1551_v6, 0.0 }
 0x17e   : > { %v1247_v50 = vpop.f32.mrf.mxu0 }
 0x17f   : > { %v4978_v53 = vpop.f32.mrf.mxu3  ;;  %v1248_v59 = vadd.f32 %v1247_v50, %v4773_v12  ;;  %v1320_v58 = vpop.f32.mrf.mxu1 }
 0x180   : > { %v1321_v7 = vadd.f32 %v1320_v58, %v4775_v13 }
 0x181   : > { %v1554_v26 = vadd.f32 %v4846_v52, %v1248_v59  ;;  %v3766_v59 = vld [vmem:[#allocation5 + $0x150] sm:$0xf] }
 0x182   : > { %v1555_v17 = vadd.f32 %v4852_v55, %v1321_v7 }
 0x183   : > { %v1654_v1 = vmax.f32 %v1554_v26, 0.0 }
 0x184   : > { %v1655_v46 = vmax.f32 %v1555_v17, 0.0  ;;  %v4985_v2 = vpop.f32.mrf.mxu2 }
 0x185   : > { %v4989_v9 = vpack.c.bf16 %v1654_v1, %v1650_v4 }
 0x186   : > { %v1250_v49 = vpop.f32.mrf.mxu0  ;;  %v4991_v62 = vpack.c.bf16 %v1655_v46, %v1651_v21 }
 0x187   : > { %v4987_v36 = vpop.f32.mrf.mxu3  ;;  %v1323_v12 = vpop.f32.mrf.mxu1  ;;  %v1251_v13 = vadd.f32 %v1250_v49, %v4784_v19  ;;  %v4034_v19 = vld [vmem:[#allocation5 + $0x154] sm:$0xf0] }
 0x188   : > { %v1324_v15 = vadd.f32 %v1323_v12, %v4786_v16  ;;  %v3767_v4 = vor.u32 %v4034_v19, %v3766_v59 }
 0x189   : > { %3571 = vmatmul.msk.bf16.gmra.mxu2 %vm1176_vm0, %v4645_v22  ;;  %2168 = vmatmul.bf16.vlgmr.msra.gmra.mxu0 %v4869_v10  ;;  %v1558_v6 = vadd.f32 %v4846_v52, %v1251_v13 }
 0x18a   : > { %2241 = vmatmul.bf16.vlgmr.msra.gmra.mxu1 %v4876_v0  ;;  %v1559_v58 = vadd.f32 %v4852_v55, %v1324_v15  ;;  %2308 = vmatpush.bf16.msrb.mxu2 %v3767_v4  ;;  %v4050_v15 = vld [vmem:[#allocation5 + $0x1d4] sm:$0xf0] }
 0x18c   : > { %3584 = vmatmul.msk.bf16.gmra.mxu3 %vm1176_vm0, %v4645_v22  ;;  %v5001_v32 = vpop.f32.mrf.mxu2  ;;  %v1658_v22 = vmax.f32 %v1558_v6, 0.0  ;;  %v1659_v1 = vmax.f32 %v1559_v58, 0.0 }
 0x18d   : > { %6140 = vst [vmem:[#allocation46_spill] sm:$0xff] %v5001_v32 }
 0x18e   : > { %v1252_v7 = vpop.f32.mrf.mxu0 }
 0x18f   : > { %v5004_v50 = vpop.f32.mrf.mxu3  ;;  %v1253_v26 = vadd.f32 %v1252_v7, %v4798_v54  ;;  %v1325_v16 = vpop.f32.mrf.mxu1 }
 0x190   : > { %6141 = vst [vmem:[#allocation47_spill] sm:$0xff] %v5004_v50  ;;  %v1326_v21 = vadd.f32 %v1325_v16, %v4800_v57  ;;  %v3830_v50 = vld [vmem:[#allocation5 + $0x1d0] sm:$0xf] }
 0x191   : > { %v1562_v17 = vadd.f32 %v4846_v52, %v1253_v26  ;;  %v3831_v59 = vor.u32 %v4050_v15, %v3830_v50 }
 0x192   : > { %v1563_v46 = vadd.f32 %v4852_v55, %v1326_v21 }
 0x193   : > { %v1662_v49 = vmax.f32 %v1562_v17, 0.0  ;;  %2381 = vmatpush.bf16.msrb.mxu3 %v3831_v59 }
 0x194   : > { %v1663_v12 = vmax.f32 %v1563_v46, 0.0  ;;  %v5011_v13 = vpop.f32.mrf.mxu2 }
 0x195   : > { %v5015_v54 = vpack.c.bf16 %v1662_v49, %v1658_v22 }
 0x196   : > { %v1255_v19 = vpop.f32.mrf.mxu0  ;;  %v5017_v57 = vpack.c.bf16 %v1663_v12, %v1659_v1 }
 0x197   : > { %v5013_v32 = vpop.f32.mrf.mxu3  ;;  %v1328_v6 = vpop.f32.mrf.mxu1  ;;  %v1256_v58 = vadd.f32 %v1255_v19, %v4805_v8 }
 0x198   : > { %6142 = vst [vmem:[#allocation48_spill] sm:$0xff] %v5017_v57  ;;  %v1329_v7 = vadd.f32 %v1328_v6, %v4813_v51 }
 0x199   : > { %3572 = vmatmul.msk.bf16.gmra.mxu2 %vm1176_vm0, %v4670_v35  ;;  %2173 = vmatmul.bf16.gmra.mxu0 %v4903_v25  ;;  %v1566_v4 = vadd.f32 %v4846_v52, %v1256_v58 }
 0x19a   : > { %2246 = vmatmul.bf16.gmra.mxu1 %v4905_v33  ;;  %v1567_v8 = vadd.f32 %v4852_v55, %v1329_v7 }
 0x19b   : > { %v1666_v51 = vmax.f32 %v1566_v4, 0.0 }
 0x19c   : > { %3585 = vmatmul.msk.bf16.gmra.mxu3 %vm1176_vm0, %v4670_v35  ;;  %v5027_v50 = vpop.f32.mrf.mxu2  ;;  %v1667_v35 = vmax.f32 %v1567_v8, 0.0  ;;  %v3758_v8 = vld [vmem:[#allocation5 + $0x140] sm:$0xf] }
 0x19d   : > { %6143 = vst [vmem:[#allocation49_spill] sm:$0xff] %v5027_v50 }
 0x19e   : > { %v1257_v16 = vpop.f32.mrf.mxu0 }
 0x19f   : > { %v5030_v26 = vpop.f32.mrf.mxu3  ;;  %v1258_v21 = vadd.f32 %v1257_v16, %v4831_v56  ;;  %v1330_v22 = vpop.f32.mrf.mxu1  ;;  %v4032_v16 = vld [vmem:[#allocation5 + $0x144] sm:$0xf0] }
 0x1a0   : > { %6144 = vst [vmem:[#allocation50_spill] sm:$0xff] %v5030_v26  ;;  %v1331_v17 = vadd.f32 %v1330_v22, %v4833_v11  ;;  %v3759_v22 = vor.u32 %v4032_v16, %v3758_v8 }
 0x1a1   : > { %v1570_v1 = vadd.f32 %v4846_v52, %v1258_v21 }
 0x1a2   : > { %v1571_v46 = vadd.f32 %v4852_v55, %v1331_v17  ;;  %v3822_v17 = vld [vmem:[#allocation5 + $0x1c0] sm:$0xf]  ;;  %2309 = vmatpush.bf16.msrb.mxu2 %v3759_v22 }
 0x1a3   : > { %v1670_v49 = vmax.f32 %v1570_v1, 0.0 }
 0x1a4   : > { %v1671_v12 = vmax.f32 %v1571_v46, 0.0  ;;  %v5037_v15 = vpop.f32.mrf.mxu2 }
 0x1a5   : > { %6145 = vst [vmem:[#allocation51_spill] sm:$0xff] %v5037_v15  ;;  %v5041_v19 = vpack.c.bf16 %v1670_v49, %v1666_v51  ;;  %v4048_v51 = vld [vmem:[#allocation5 + $0x1c4] sm:$0xf0] }
 0x1a6   : > { %v1260_v6 = vpop.f32.mrf.mxu0  ;;  %v5043_v58 = vpack.c.bf16 %v1671_v12, %v1667_v35  ;;  %v3823_v35 = vor.u32 %v4048_v51, %v3822_v17 }
 0x1a7   : > { %v5039_v59 = vpop.f32.mrf.mxu3  ;;  %6147 = vst [vmem:[#allocation53_spill] sm:$0xff] %v5041_v19  ;;  %v1333_v56 = vpop.f32.mrf.mxu1  ;;  %v1261_v11 = vadd.f32 %v1260_v6, %v4657_v27 }
 0x1a8   : > { %6146 = vst [vmem:[#allocation52_spill] sm:$0xff] %v5039_v59  ;;  %v1334_v7 = vadd.f32 %v1333_v56, %v4659_v28  ;;  %2382 = vmatpush.bf16.msrb.mxu3 %v3823_v35 }
 0x1a9   : > { %6148 = vst [vmem:[#allocation54_spill] sm:$0xff] %v5043_v58  ;;  %3573 = vmatmul.msk.bf16.gmra.mxu2 %vm1176_vm0, %v4695_v45  ;;  %2178 = vmatmul.bf16.gmra.mxu0 %v4932_v42  ;;  %v1574_v46 = vadd.f32 %v4846_v52, %v1261_v11 }
 0x1aa   : > { %2251 = vmatmul.bf16.gmra.mxu1 %v4934_v40  ;;  %v1575_v27 = vadd.f32 %v4852_v55, %v1334_v7 }
 0x1ab   : > { %v1674_v56 = vmax.f32 %v1574_v46, 0.0 }
 0x1ac   : > { %3586 = vmatmul.msk.bf16.gmra.mxu3 %vm1176_vm0, %v4695_v45  ;;  %v5053_v4 = vpop.f32.mrf.mxu2  ;;  %v1675_v16 = vmax.f32 %v1575_v27, 0.0 }
 0x1ad   : > { %6149 = vst [vmem:[#allocation55_spill] sm:$0xff] %v5053_v4 }
 0x1ae   : > { %v1262_v1 = vpop.f32.mrf.mxu0 }
 0x1af   : > { %v5055_v21 = vpop.f32.mrf.mxu3  ;;  %v1263_v45 = vadd.f32 %v1262_v1, %v4665_v31  ;;  %v1335_v49 = vpop.f32.mrf.mxu1 }
 0x1b0   : > { %6150 = vst [vmem:[#allocation56_spill] sm:$0xff] %v5055_v21  ;;  %v1336_v28 = vadd.f32 %v1335_v49, %v4667_v34 }
 0x1b1   : > { %v1578_v12 = vadd.f32 %v4846_v52, %v1263_v45 }
 0x1b2   : > { %v1579_v6 = vadd.f32 %v4852_v55, %v1336_v28 }
 0x1b3   : > { %v1678_v8 = vmax.f32 %v1578_v12, 0.0 }
 0x1b4   : > { %v1679_v21 = vmax.f32 %v1579_v6, 0.0  ;;  %v5063_v17 = vpop.f32.mrf.mxu2 }
 0x1b5   : > { %6151 = vst [vmem:[#allocation57_spill] sm:$0xff] %v5063_v17  ;;  %v5067_v31 = vpack.c.bf16 %v1678_v8, %v1674_v56 }
 0x1b6   : > { %v1265_v22 = vpop.f32.mrf.mxu0  ;;  %v5069_v51 = vpack.c.bf16 %v1679_v21, %v1675_v16 }
 0x1b7   : > { %v5065_v11 = vpop.f32.mrf.mxu3  ;;  %6153 = vst [vmem:[#allocation59_spill] sm:$0xff] %v5067_v31  ;;  %v1338_v7 = vpop.f32.mrf.mxu1  ;;  %v1266_v34 = vadd.f32 %v1265_v22, %v4682_v37  ;;  %v3750_v22 = vld [vmem:[#allocation5 + $0x130] sm:$0xf] }
 0x1b8   : > { %6152 = vst [vmem:[#allocation58_spill] sm:$0xff] %v5065_v11  ;;  %v1339_v1 = vadd.f32 %v1338_v7, %v4684_v38  ;;  %v4030_v7 = vld [vmem:[#allocation5 + $0x134] sm:$0xf0] }
 0x1b9   : > { %6154 = vst [vmem:[#allocation60_spill] sm:$0xff] %v5069_v51  ;;  %3574 = vmatmul.msk.bf16.gmra.mxu2 %vm1176_vm0, %v4732_v60  ;;  %2183 = vmatmul.bf16.gmra.mxu0 %v4961_v39  ;;  %v1582_v45 = vadd.f32 %v4846_v52, %v1266_v34 }
 0x1ba   : > { %2256 = vmatmul.bf16.gmra.mxu1 %v4963_v61  ;;  %v1583_v28 = vadd.f32 %v4852_v55, %v1339_v1 }
 0x1bb   : > { %v1682_v6 = vmax.f32 %v1582_v45, 0.0 }
 0x1bc   : > { %3587 = vmatmul.msk.bf16.gmra.mxu3 %vm1176_vm0, %v4732_v60  ;;  %v5079_v35 = vpop.f32.mrf.mxu2  ;;  %v1683_v56 = vmax.f32 %v1583_v28, 0.0  ;;  %v6161_v28 = vld [vmem:[#allocation16_spill] sm:$0xff] }
 0x1bd   : > { %6155 = vst [vmem:[#allocation61_spill] sm:$0xff] %v5079_v35  ;;  %v6170_v35 = vld [vmem:[#allocation27_spill] sm:$0xff] }
 0x1be   : > { %v1267_v21 = vpop.f32.mrf.mxu0 }
 0x1bf   : > { %v5081_v46 = vpop.f32.mrf.mxu3  ;;  %v1268_v49 = vadd.f32 %v1267_v21, %v4690_v43  ;;  %v1340_v27 = vpop.f32.mrf.mxu1  ;;  %v3751_v43 = vor.u32 %v4030_v7, %v3750_v22  ;;  %v3814_v21 = vld [vmem:[#allocation5 + $0x1b0] sm:$0xf] }
 0x1c0   : > { %6156 = vst [vmem:[#allocation62_spill] sm:$0xff] %v5081_v46  ;;  %v1341_v60 = vadd.f32 %v1340_v27, %v4692_v44  ;;  %v4046_v46 = vld [vmem:[#allocation5 + $0x1b4] sm:$0xf0] }
 0x1c1   : > { %v1586_v12 = vadd.f32 %v4846_v52, %v1268_v49  ;;  %v3815_v27 = vor.u32 %v4046_v46, %v3814_v21  ;;  %2310 = vmatpush.bf16.msrb.mxu2 %v3751_v43  ;;  %v6165_v43 = vld [vmem:[#allocation18_spill] sm:$0xff] }
 0x1c2   : > { %v1587_v37 = vadd.f32 %v4852_v55, %v1341_v60 }
 0x1c3   : > { %v1686_v38 = vmax.f32 %v1586_v12, 0.0  ;;  %2383 = vmatpush.bf16.msrb.mxu3 %v3815_v27 }
 0x1c4   : > { %v1687_v8 = vmax.f32 %v1587_v37, 0.0  ;;  %v5089_v16 = vpop.f32.mrf.mxu2 }
 0x1c5   : > { %6157 = vst [vmem:[#allocation63_spill] sm:$0xff] %v5089_v16  ;;  %v5093_v1 = vpack.c.bf16 %v1686_v38, %v1682_v6 }
 0x1c6   : > { %v1270_v44 = vpop.f32.mrf.mxu0  ;;  %v5095_v49 = vpack.c.bf16 %v1687_v8, %v1683_v56  ;;  %v6164_v56 = vld [vmem:[#allocation17_spill] sm:$0xff] }
 0x1c7   : > { %v5091_v34 = vpop.f32.mrf.mxu3  ;;  %6159 = vst [vmem:[#allocation65_spill] sm:$0xff] %v5093_v1  ;;  %v1343_v60 = vpop.f32.mrf.mxu1  ;;  %v1271_v45 = vadd.f32 %v1270_v44, %v4707_v47 }
 0x1c8   : > { %6158 = vst [vmem:[#allocation64_spill] sm:$0xff] %v5091_v34  ;;  %v1344_v12 = vadd.f32 %v1343_v60, %v6161_v28  ;;  %v6176_v34 = vld [vmem:[#allocation22_spill] sm:$0xff] }
 0x1c9   : > { %6160 = vst [vmem:[#allocation66_spill] sm:$0xff] %v5095_v49  ;;  %3575 = vmatmul.msk.bf16.gmra.mxu2 %vm1176_vm0, %v4757_v5  ;;  %2188 = vmatmul.bf16.gmra.mxu0 %v4989_v9  ;;  %v1590_v38 = vadd.f32 %v4846_v52, %v1271_v45 }
 0x1ca   : > { %2261 = vmatmul.bf16.gmra.mxu1 %v4991_v62  ;;  %v1591_v7 = vadd.f32 %v4852_v55, %v1344_v12 }
 0x1cb   : > { %v1690_v44 = vmax.f32 %v1590_v38, 0.0  ;;  %v6171_v38 = vld [vmem:[#allocation19_spill] sm:$0xff] }
 0x1cc   : > { %3588 = vmatmul.msk.bf16.gmra.mxu3 %vm1176_vm0, %v4757_v5  ;;  %v5105_v46 = vpop.f32.mrf.mxu2  ;;  %v1691_v60 = vmax.f32 %v1591_v7, 0.0 }
 0x1cd   : > { %6162 = vst [vmem:[#allocation16_spill] sm:$0xff] %v5105_v46 }
 0x1ce   : > { %v1272_v6 = vpop.f32.mrf.mxu0 }
 0x1cf   : > { %v5107_v37 = vpop.f32.mrf.mxu3  ;;  %v1273_v8 = vadd.f32 %v1272_v6, %v6164_v56  ;;  %v1345_v22 = vpop.f32.mrf.mxu1 }
 0x1d0   : > { %6163 = vst [vmem:[#allocation67_spill] sm:$0xff] %v5107_v37  ;;  %v1346_v5 = vadd.f32 %v1345_v22, %v6165_v43  ;;  %v6172_v22 = vld [vmem:[#allocation20_spill] sm:$0xff] }
 0x1d1   : > { %v1594_v21 = vadd.f32 %v4846_v52, %v1273_v8 }
 0x1d2   : > { %v1595_v47 = vadd.f32 %v4852_v55, %v1346_v5 }
 0x1d3   : > { %v1694_v27 = vmax.f32 %v1594_v21, 0.0 }
 0x1d4   : > { %v1695_v28 = vmax.f32 %v1595_v47, 0.0  ;;  %v5115_v46 = vpop.f32.mrf.mxu2  ;;  %v3742_v47 = vld [vmem:[#allocation5 + $0x120] sm:$0xf] }
 0x1d5   : > { %6166 = vst [vmem:[#allocation17_spill] sm:$0xff] %v5115_v46  ;;  %v5119_v45 = vpack.c.bf16 %v1694_v27, %v1690_v44  ;;  %v4028_v44 = vld [vmem:[#allocation5 + $0x124] sm:$0xf0] }
 0x1d6   : > { %v1275_v6 = vpop.f32.mrf.mxu0  ;;  %v5121_v56 = vpack.c.bf16 %v1695_v28, %v1691_v60  ;;  %v6175_v60 = vld [vmem:[#allocation21_spill] sm:$0xff]  ;;  %v3743_v46 = vor.u32 %v4028_v44, %v3742_v47  ;;  %v6181_v47 = vld [vmem:[#allocation30_spill] sm:$0xff] }
 0x1d7   : > { %v5117_v37 = vpop.f32.mrf.mxu3  ;;  %6168 = vst [vmem:[#allocation68_spill] sm:$0xff] %v5119_v45  ;;  %v1348_v12 = vpop.f32.mrf.mxu1  ;;  %v1276_v8 = vadd.f32 %v1275_v6, %v6171_v38  ;;  %v3806_v38 = vld [vmem:[#allocation5 + $0x1a0] sm:$0xf] }
 0x1d8   : > { %6167 = vst [vmem:[#allocation18_spill] sm:$0xff] %v5117_v37  ;;  %v1349_v7 = vadd.f32 %v1348_v12, %v6172_v22  ;;  %2311 = vmatpush.bf16.msrb.mxu2 %v3743_v46  ;;  %v4044_v22 = vld [vmem:[#allocation5 + $0x1a4] sm:$0xf0] }
 0x1d9   : > { %6169 = vst [vmem:[#allocation69_spill] sm:$0xff] %v5121_v56  ;;  %3576 = vmatmul.msk.bf16.gmra.mxu2 %vm1176_vm0, %v6170_v35  ;;  %2193 = vmatmul.bf16.gmra.mxu0 %v5015_v54  ;;  %v1598_v27 = vadd.f32 %v4846_v52, %v1276_v8  ;;  %v3807_v4 = vor.u32 %v4044_v22, %v3806_v38  ;;  %v6187_v38 = vld [vmem:[#allocation26_spill] sm:$0xff] }
 0x1da   : > { %2266 = vmatmul.bf16.gmra.mxu1 %v5017_v57 }
 0x1db   : > { %2384 = vmatpush.bf16.msrb.mxu3 %v3807_v4 }
 0x1dc   : > { %3589 = vmatmul.msk.bf16.gmra.mxu3 %vm1176_vm0, %v6170_v35  ;;  %v5131_v43 = vpop.f32.mrf.mxu2  ;;  %v1599_v35 = vadd.f32 %v4852_v55, %v1349_v7 }
 0x1dd   : > { %6173 = vst [vmem:[#allocation27_spill] sm:$0xff] %v5131_v43 }
 0x1de   : > { %v1277_v21 = vpop.f32.mrf.mxu0  ;;  %v1699_v11 = vmax.f32 %v1599_v35, 0.0 }
 0x1df   : > { %v5133_v5 = vpop.f32.mrf.mxu3  ;;  %v1278_v28 = vadd.f32 %v1277_v21, %v6175_v60  ;;  %v1350_v37 = vpop.f32.mrf.mxu1 }
 0x1e0   : > { %6174 = vst [vmem:[#allocation19_spill] sm:$0xff] %v5133_v5  ;;  %v1351_v16 = vadd.f32 %v1350_v37, %v6176_v34  ;;  %v1698_v5 = vmax.f32 %v1598_v27, 0.0  ;;  %v6183_v27 = vld [vmem:[#allocation24_spill] sm:$0xff] }
 0x1e1   : > { %v1602_v6 = vadd.f32 %v4846_v52, %v1278_v28  ;;  %v6186_v28 = vld [vmem:[#allocation25_spill] sm:$0xff] }
 0x1e2   : > { %v1603_v12 = vadd.f32 %v4852_v55, %v1351_v16  ;;  %v6182_v16 = vld [vmem:[#allocation23_spill] sm:$0xff] }
 0x1e3   : > { %v1702_v43 = vmax.f32 %v1602_v6, 0.0 }
 0x1e4   : > { %v1703_v8 = vmax.f32 %v1603_v12, 0.0  ;;  %v5141_v17 = vpop.f32.mrf.mxu2 }
 0x1e5   : > { %6177 = vst [vmem:[#allocation20_spill] sm:$0xff] %v5141_v17  ;;  %v5145_v7 = vpack.c.bf16 %v1702_v43, %v1698_v5 }
 0x1e6   : > { %v1280_v34 = vpop.f32.mrf.mxu0  ;;  %v5147_v37 = vpack.c.bf16 %v1703_v8, %v1699_v11 }
 0x1e7   : > { %v5143_v21 = vpop.f32.mrf.mxu3  ;;  %6179 = vst [vmem:[#allocation22_spill] sm:$0xff] %v5145_v7  ;;  %v1353_v46 = vpop.f32.mrf.mxu1  ;;  %v1281_v44 = vadd.f32 %v1280_v34, %v6182_v16  ;;  %v4021_v16 = vld [vmem:[#allocation5 + $0xf4] sm:$0xf] }
 0x1e8   : > { %6178 = vst [vmem:[#allocation21_spill] sm:$0xff] %v5143_v21  ;;  %v1354_v4 = vadd.f32 %v1353_v46, %v6183_v27  ;;  %v3656_v46 = vld [vmem:[#allocation5 + $0x78] sm:$0xf0] }
 0x1e9   : > { %6180 = vst [vmem:[#allocation70_spill] sm:$0xff] %v5147_v37  ;;  %3577 = vmatmul.msk.bf16.gmra.mxu2 %vm1176_vm0, %v6181_v47  ;;  %2198 = vmatmul.bf16.gmra.mxu0 %v5041_v19  ;;  %v1606_v60 = vadd.f32 %v4846_v52, %v1281_v44  ;;  %v3720_v21 = vld [vmem:[#allocation5 + $0xf8] sm:$0xf0] }
 0x1ea   : > { %2271 = vmatmul.bf16.gmra.mxu1 %v5043_v58  ;;  %v1607_v12 = vadd.f32 %v4852_v55, %v1354_v4 }
 0x1eb   : > { %v1706_v27 = vmax.f32 %v1606_v60, 0.0  ;;  %v4042_v60 = vld [vmem:[#allocation5 + $0x194] sm:$0xf0] }
 0x1ec   : > { %3590 = vmatmul.msk.bf16.gmra.mxu3 %vm1176_vm0, %v6181_v47  ;;  %v5157_v43 = vpop.f32.mrf.mxu2  ;;  %v4005_v47 = vld [vmem:[#allocation5 + $0x74] sm:$0xf]  ;;  %v1707_v17 = vmax.f32 %v1607_v12, 0.0 }
 0x1ed   : > { %6184 = vst [vmem:[#allocation30_spill] sm:$0xff] %v5157_v43 }
 0x1ee   : > { %v1282_v11 = vpop.f32.mrf.mxu0 }
 0x1ef   : > { %v5159_v5 = vpop.f32.mrf.mxu3  ;;  %v1283_v35 = vadd.f32 %v1282_v11, %v6186_v28  ;;  %v1355_v6 = vpop.f32.mrf.mxu1  ;;  %v3723_v11 = vor.u32 %v4021_v16, %v3720_v21  ;;  %v4026_v21 = vld [vmem:[#allocation5 + $0x114] sm:$0xf0] }
 0x1f0   : > { %6185 = vst [vmem:[#allocation23_spill] sm:$0xff] %v5159_v5  ;;  %v1356_v22 = vadd.f32 %v1355_v6, %v6187_v38  ;;  %v3659_v5 = vor.u32 %v4005_v47, %v3656_v46  ;;  %v5188_v46 = vld [vmem:[%s6062_s6] sm:$0x3] }
 0x1f1   : > { %v1610_v8 = vadd.f32 %v4846_v52, %v1283_v35  ;;  %2525 = vmatpush.bf16.msrb.mxu1 %v3723_v11  ;;  %6191 = vst [vmem:[#allocation26_spill] sm:$0xff] %v5188_v46  ;;  %v5191_v16 = vperm.slane %v5188_v46, 0 }
 0x1f2   : > { %v1611_v34 = vadd.f32 %v4852_v55, %v1356_v22  ;;  %2452 = vmatpush.bf16.msrb.mxu0 %v3659_v5  ;;  %v6190_v22 = vld [vmem:[#allocation35_spill] sm:$0xff] }
 0x1f3   : > { %v1710_v43 = vmax.f32 %v1610_v8, 0.0 }
 0x1f4   : > { %v1711_v44 = vmax.f32 %v1611_v34, 0.0  ;;  %v958_v58 = vpop.f32.mrf.mxu2 }
 0x1f5   : > { %v5167_v4 = vpack.c.bf16 %v1710_v43, %v1706_v27  ;;  %v3734_v58 = vld [vmem:[#allocation5 + $0x110] sm:$0xf] }
 0x1f6   : > { %v5169_v6 = vpop.f32.mrf.mxu0  ;;  %v5171_v35 = vpack.c.bf16 %v1711_v44, %v1707_v17  ;;  %v3798_v43 = vld [vmem:[#allocation5 + $0x190] sm:$0xf]  ;;  %v3735_v5 = vor.u32 %v4026_v21, %v3734_v58  ;;  %v4003_v21 = vld [vmem:[#allocation5 + $0x64] sm:$0xf] }
 0x1f7   : > { %v1031_v28 = vpop.f32.mrf.mxu3  ;;  %6188 = vst [vmem:[#allocation24_spill] sm:$0xff] %v5167_v4  ;;  %v5173_v38 = vpop.f32.mrf.mxu1  ;;  %v3799_v17 = vor.u32 %v4042_v60, %v3798_v43  ;;  %v3648_v43 = vld [vmem:[#allocation5 + $0x68] sm:$0xf0]  ;;  %v4019_v60 = vld [vmem:[#allocation5 + $0xe4] sm:$0xf] }
 0x1f8   : > { %6189 = vst [vmem:[#allocation25_spill] sm:$0xff] %v5171_v35  ;;  %2312 = vmatpush.bf16.msrb.mxu2 %v3735_v5  ;;  %v3651_v5 = vor.u32 %v4003_v21, %v3648_v43  ;;  %v4040_v21 = vld [vmem:[#allocation5 + $0x184] sm:$0xf0] }
 0x1f9   : > { %3578 = vmatmul.msk.bf16.gmra.mxu2 %vm1176_vm0, %v6190_v22  ;;  %2203 = vmatmul.bf16.gmra.mxu0 %v5067_v31 }
 0x1fa   : > { %2276 = vmatmul.bf16.gmra.mxu1 %v5069_v51  ;;  %2385 = vmatpush.bf16.msrb.mxu3 %v3799_v17  ;;  %v3712_v17 = vld [vmem:[#allocation5 + $0xe8] sm:$0xf0]  ;;  %v3790_v51 = vld [vmem:[#allocation5 + $0x180] sm:$0xf] }
 0x1fb   : > { %2453 = vmatpush.bf16.msrb.mxu0 %v3651_v5  ;;  %v3791_v31 = vor.u32 %v4040_v21, %v3790_v51 }
 0x1fc   : > { %3591 = vmatmul.msk.bf16.gmra.mxu3 %vm1176_vm0, %v6190_v22  ;;  %v5181_v12 = vpop.f32.mrf.mxu2 }
 0x1fe   : > { %v1287_v34 = vpop.f32.mrf.mxu0  ;;  %2386 = vmatpush.bf16.msrb.mxu3 %v3791_v31 }
 0x1ff   : > { %v5183_v8 = vpop.f32.mrf.mxu3  ;;  %v1360_v47 = vpop.f32.mrf.mxu1 }
 0x200   : > { %v3715_v47 = vor.u32 %v4019_v60, %v3712_v17 }
 0x202   : > { %2526 = vmatpush.bf16.msrb.mxu1 %v3715_v47 }
 0x204   : > { %v5193_v27 = vpop.f32.mrf.mxu2 }
 0x206   : > { %v2169_v11 = vpop.f32.mrf.mxu0 }
 0x207   : > { %v5195_v44 = vpop.f32.mrf.mxu3  ;;  %v2170_v28 = vadd.f32 %v2169_v11, %v5191_v16  ;;  %v2242_v22 = vpop.f32.mrf.mxu1 }
 0x209   : > { %v5198_v58 = vadd.f32 %v2242_v22, %v2170_v28  ;;  %3579 = vmatmul.msk.bf16.gmra.mxu2 %vm1176_vm0, %v4874_v29  ;;  %2208 = vmatmul.bf16.gmra.mxu0 %v5093_v1 }
 0x20a   : > { %2281 = vmatmul.bf16.gmra.mxu1 %v5095_v49  ;;  %v4024_v49 = vld [vmem:[#allocation5 + $0x104] sm:$0xf0] }
 0x20b   : > { %6192 = vst [vmem:[#allocation35_spill] sm:$0xff] %v5198_v58 }
 0x20c   : > { %3592 = vmatmul.msk.bf16.gmra.mxu3 %vm1176_vm0, %v4874_v29  ;;  %v5206_v34 = vpop.f32.mrf.mxu2  ;;  %v3726_v29 = vld [vmem:[#allocation5 + $0x100] sm:$0xf] }
 0x20d   : > { %v3727_v58 = vor.u32 %v4024_v49, %v3726_v29  ;;  %v4017_v29 = vld [vmem:[#allocation5 + $0xd4] sm:$0xf] }
 0x20e   : > { %v2171_v28 = vpop.f32.mrf.mxu0 }
 0x20f   : > { %v5208_v11 = vpop.f32.mrf.mxu3  ;;  %v2172_v22 = vadd.f32 %v2171_v28, %v5191_v16  ;;  %v2244_v1 = vpop.f32.mrf.mxu1  ;;  %2313 = vmatpush.bf16.msrb.mxu2 %v3727_v58  ;;  %v4001_v28 = vld [vmem:[#allocation5 + $0x54] sm:$0xf] }
 0x211   : > { %v5211_v46 = vadd.f32 %v2244_v1, %v2172_v22  ;;  %v3640_v22 = vld [vmem:[#allocation5 + $0x58] sm:$0xf0] }
 0x213   : > { %6193 = vst [vmem:[#allocation71_spill] sm:$0xff] %v5211_v46 }
 0x214   : > { %v5213_v43 = vpop.f32.mrf.mxu2 }
 0x216   : > { %v2174_v60 = vpop.f32.mrf.mxu0 }
 0x217   : > { %v5215_v19 = vpop.f32.mrf.mxu3  ;;  %v2175_v5 = vadd.f32 %v2174_v60, %v5191_v16  ;;  %v2247_v17 = vpop.f32.mrf.mxu1  ;;  %v3643_v60 = vor.u32 %v4001_v28, %v3640_v22  ;;  %v3624_v28 = vld [vmem:[#allocation5 + $0x38] sm:$0xf0]  ;;  %v4013_v22 = vld [vmem:[#allocation5 + $0xb4] sm:$0xf] }
 0x219   : > { %v5218_v47 = vadd.f32 %v2247_v17, %v2175_v5  ;;  %3580 = vmatmul.msk.bf16.gmra.mxu2 %vm1176_vm0, %v4901_v63  ;;  %2213 = vmatmul.bf16.gmra.mxu0 %v5119_v45  ;;  %v3704_v5 = vld [vmem:[#allocation5 + $0xd8] sm:$0xf0]  ;;  %v3632_v45 = vld [vmem:[#allocation5 + $0x48] sm:$0xf0] }
 0x21a   : > { %2286 = vmatmul.bf16.gmra.mxu1 %v5121_v56  ;;  %v3707_v17 = vor.u32 %v4017_v29, %v3704_v5  ;;  %2454 = vmatpush.bf16.msrb.mxu0 %v3643_v60  ;;  %v3999_v56 = vld [vmem:[#allocation5 + $0x44] sm:$0xf] }
 0x21b   : > { %6194 = vst [vmem:[#allocation72_spill] sm:$0xff] %v5218_v47  ;;  %v4015_v47 = vld [vmem:[#allocation5 + $0xc4] sm:$0xf]  ;;  %v3635_v26 = vor.u32 %v3999_v56, %v3632_v45  ;;  %v3688_v45 = vld [vmem:[#allocation5 + $0xb8] sm:$0xf0] }
 0x21c   : > { %3593 = vmatmul.msk.bf16.gmra.mxu3 %vm1176_vm0, %v4901_v63  ;;  %v5226_v51 = vpop.f32.mrf.mxu2  ;;  %2527 = vmatpush.bf16.msrb.mxu1 %v3707_v17 }
 0x21e   : > { %v2176_v31 = vpop.f32.mrf.mxu0  ;;  %2455 = vmatpush.bf16.msrb.mxu0 %v3635_v26  ;;  %v3784_v26 = vld [vmem:[#allocation5 + $0x178] sm:$0xf0] }
 0x21f   : > { %v5228_v1 = vpop.f32.mrf.mxu3  ;;  %v2177_v49 = vadd.f32 %v2176_v31, %v5191_v16  ;;  %v2249_v58 = vpop.f32.mrf.mxu1  ;;  %v3696_v31 = vld [vmem:[#allocation5 + $0xc8] sm:$0xf0] }
 0x220   : > { %v3699_v59 = vor.u32 %v4015_v47, %v3696_v31  ;;  %v4053_v47 = vld [vmem:[#allocation5 + $0x1f4] sm:$0xf]  ;;  %v3995_v31 = vld [vmem:[#allocation5 + $0x24] sm:$0xf] }
 0x221   : > { %v5231_v21 = vadd.f32 %v2249_v58, %v2177_v49  ;;  %v3997_v58 = vld [vmem:[#allocation5 + $0x34] sm:$0xf] }
 0x222   : > { %2528 = vmatpush.bf16.msrb.mxu1 %v3699_v59  ;;  %v3627_v60 = vor.u32 %v3997_v58, %v3624_v28  ;;  %v3691_v59 = vor.u32 %v4013_v22, %v3688_v45  ;;  %v4011_v58 = vld [vmem:[#allocation5 + $0xa4] sm:$0xf]  ;;  %v3993_v45 = vld [vmem:[#allocation5 + $0x14] sm:$0xf] }
 0x223   : > { %6195 = vst [vmem:[#allocation73_spill] sm:$0xff] %v5231_v21 }
 0x224   : > { %v5233_v63 = vpop.f32.mrf.mxu2  ;;  %2456 = vmatpush.bf16.msrb.mxu0 %v3627_v60 }
 0x226   : > { %v2179_v50 = vpop.f32.mrf.mxu0  ;;  %2529 = vmatpush.bf16.msrb.mxu1 %v3691_v59 }
 0x227   : > { %v5235_v46 = vpop.f32.mrf.mxu3  ;;  %v2180_v15 = vadd.f32 %v2179_v50, %v5191_v16  ;;  %v2252_v49 = vpop.f32.mrf.mxu1  ;;  %v4037_v50 = vld [vmem:[#allocation5 + $0x174] sm:$0xf] }
 0x228   : > { %v3787_v56 = vor.u32 %v4037_v50, %v3784_v26  ;;  %v3608_v50 = vld [vmem:[#allocation5 + $0x18] sm:$0xf0]  ;;  %v4009_v26 = vld [vmem:[#allocation5 + $0x94] sm:$0xf] }
 0x229   : > { %v5238_v29 = vadd.f32 %v2252_v49, %v2180_v15  ;;  %3581 = vmatmul.msk.bf16.gmra.mxu2 %vm1176_vm0, %v4930_v30  ;;  %2218 = vmatmul.bf16.gmra.mxu0 %v5145_v7  ;;  %v3848_v15 = vld [vmem:[#allocation5 + $0x1f8] sm:$0xf0]  ;;  %v3616_v49 = vld [vmem:[#allocation5 + $0x28] sm:$0xf0] }
 0x22a   : > { %2291 = vmatmul.bf16.gmra.mxu1 %v5147_v37  ;;  %v3851_v17 = vor.u32 %v4053_v47, %v3848_v15  ;;  %2598 = vmatpush.bf16.msra.mxu2 %v3787_v56  ;;  %v3680_v7 = vld [vmem:[#allocation5 + $0xa8] sm:$0xf0]  ;;  %v3611_v47 = vor.u32 %v3993_v45, %v3608_v50  ;;  %v3672_v15 = vld [vmem:[#allocation5 + $0x98] sm:$0xf0] }
 0x22b   : > { %6196 = vst [vmem:[#allocation74_spill] sm:$0xff] %v5238_v29  ;;  %v3683_v29 = vor.u32 %v4011_v58, %v3680_v7  ;;  %v3675_v21 = vor.u32 %v4009_v26, %v3672_v15  ;;  %v4007_v7 = vld [vmem:[#allocation5 + $0x84] sm:$0xf]  ;;  %v3664_v58 = vld [vmem:[#allocation5 + $0x88] sm:$0xf0]  ;;  %v6200_v50 = vld [vmem:[#allocation33_spill] sm:$0xff] }
 0x22c   : > { %3594 = vmatmul.msk.bf16.gmra.mxu3 %vm1176_vm0, %v4930_v30  ;;  %v5246_v5 = vpop.f32.mrf.mxu2  ;;  %v3619_v30 = vor.u32 %v3995_v31, %v3616_v49  ;;  %v3991_v31 = vld [vmem:[#allocation5 + $0x4] sm:$0xf]  ;;  %v1374_v26 = vadd.f32 %v5193_v27, %v6200_v50  ;;  %v6204_v27 = vld [vmem:[#allocation32_spill] sm:$0xff] }
 0x22d   : > { %2671 = vmatpush.bf16.msra.mxu3 %v3851_v17  ;;  %2530 = vmatpush.bf16.msrb.mxu1 %v3683_v29  ;;  %v3600_v17 = vld [vmem:[#allocation5 + $0x8] sm:$0xf0]  ;;  %v6202_v15 = vld [vmem:[#allocation34_spill] sm:$0xff] }
 0x22e   : > { %v2181_v37 = vpop.f32.mrf.mxu0  ;;  %2457 = vmatpush.bf16.msrb.mxu0 %v3619_v30  ;;  %v3667_v30 = vor.u32 %v4007_v7, %v3664_v58  ;;  %v6203_v7 = vld [vmem:[#allocation31_spill] sm:$0xff] }
 0x22f   : > { %v5248_v28 = vpop.f32.mrf.mxu3  ;;  %v2182_v22 = vadd.f32 %v2181_v37, %v5191_v16  ;;  %v2254_v60 = vpop.f32.mrf.mxu1  ;;  %v3603_v37 = vor.u32 %v3991_v31, %v3600_v17  ;;  %v1447_v31 = vadd.f32 %v5195_v44, %v6202_v15 }
 0x231   : > { %v5251_v59 = vadd.f32 %v2254_v60, %v2182_v22  ;;  %2531 = vmatpush.bf16.msrb.mxu1 %v3675_v21  ;;  %v6199_v21 = vld [vmem:[#allocation28_spill] sm:$0xff] }
 0x232   : > { %2458 = vmatpush.bf16.msrb.mxu0 %v3611_v47  ;;  %v1286_v45 = vadd.f32 %v5169_v6, %v6199_v21  ;;  %v6201_v47 = vld [vmem:[#allocation29_spill] sm:$0xff] }
 0x233   : > { %6197 = vst [vmem:[#allocation75_spill] sm:$0xff] %v5251_v59 }
 0x234   : > { %v5253_v56 = vpop.f32.mrf.mxu2  ;;  %v1614_v44 = vadd.f32 %v4846_v52, %v1286_v45 }
 0x235   : > { %2532 = vmatpush.bf16.msrb.mxu1 %v3667_v30 }
 0x236   : > { %v2184_v29 = vpop.f32.mrf.mxu0  ;;  %2459 = vmatpush.bf16.msrb.mxu0 %v3603_v37  ;;  %v1372_v37 = vadd.f32 %v5181_v12, %v6203_v7 }
 0x237   : > { %v5255_v49 = vpop.f32.mrf.mxu3  ;;  %v2185_v57 = vadd.f32 %v2184_v29, %v5191_v16  ;;  %v2257_v22 = vpop.f32.mrf.mxu1  ;;  %v1445_v29 = vadd.f32 %v5183_v8, %v6204_v27  ;;  %v3776_v27 = vld [vmem:[#allocation5 + $0x168] sm:$0xf0] }
 0x239   : > { %v5258_v60 = vadd.f32 %v2257_v22, %v2185_v57  ;;  %3582 = vmatmul.msk.bf16.gmra.mxu2 %vm1176_vm0, %v4959_v14  ;;  %2223 = vmatmul.bf16.gmra.mxu0 %v5167_v4  ;;  %v1359_v57 = vadd.f32 %v5173_v38, %v6201_v47 }
 0x23a   : > { %2296 = vmatmul.bf16.gmra.mxu1 %v5171_v35  ;;  %v1714_v35 = vmax.f32 %v1614_v44, 0.0 }
 0x23b   : > { %6198 = vst [vmem:[#allocation76_spill] sm:$0xff] %v5258_v60  ;;  %v1615_v50 = vadd.f32 %v4852_v55, %v1359_v57 }
 0x23c   : > { %3595 = vmatmul.msk.bf16.gmra.mxu3 %vm1176_vm0, %v4959_v14  ;;  %v5274_v17 = vpop.f32.mrf.mxu2  ;;  %v4168_v14 = vld [vmem:[%s6060_s4] sm:$0xf] }
 0x23d   : > { %v5281_v58 = vperm.slane %v4168_v14, 2  ;;  %v5287_v38 = vperm.slane %v4168_v14, 3  ;;  %v4035_v14 = vld [vmem:[#allocation5 + $0x164] sm:$0xf]  ;;  %v1715_v45 = vmax.f32 %v1615_v50, 0.0 }
 0x23e   : > { %v2186_v30 = vpop.f32.mrf.mxu0  ;;  %v3779_v52 = vor.u32 %v4035_v14, %v3776_v27  ;;  %v6207_v50 = vld [vmem:[#allocation38_spill] sm:$0xff] }
 0x23f   : > { %v5283_v6 = vpop.f32.mrf.mxu3  ;;  %v1524_v22 = vadd.f32 %v5281_v58, %v1374_v26  ;;  %v2187_v12 = vadd.f32 %v2186_v30, %v5191_v16  ;;  %v2259_v21 = vpop.f32.mrf.mxu1  ;;  %v1525_v47 = vadd.f32 %v5287_v38, %v1447_v31  ;;  %v1520_v15 = vadd.f32 %v5281_v58, %v1372_v37 }
 0x240   : > { %v1521_v8 = vadd.f32 %v5287_v38, %v1445_v29  ;;  %2599 = vmatpush.bf16.msra.mxu2 %v3779_v52  ;;  %v5302_v31 = vpack.c.bf16 %v1714_v35, %v1714_v35  ;;  %v5307_v44 = vpack.c.bf16 %v1715_v45, %v1715_v45  ;;  %v4051_v35 = vld [vmem:[#allocation5 + $0x1e4] sm:$0xf]  ;;  %v6209_v52 = vld [vmem:[#allocation36_spill] sm:$0xff] }
 0x241   : > { %v5295_v7 = vadd.f32 %v2259_v21, %v2187_v12  ;;  %v1624_v4 = vmax.f32 %v1524_v22, 0.0  ;;  %v1625_v26 = vmax.f32 %v1525_v47, 0.0  ;;  %v1620_v30 = vmax.f32 %v1520_v15, 0.0 }
 0x242   : > { %v1621_v55 = vmax.f32 %v1521_v8, 0.0  ;;  %6205 = vst [vmem:[#allocation28_spill] sm:$0xff] %v5307_v44  ;;  %v1379_v47 = vadd.f32 %v5213_v43, %v6207_v50  ;;  %v6208_v8 = vld [vmem:[#allocation39_spill] sm:$0xff]  ;;  %v1377_v45 = vadd.f32 %v5206_v34, %v6209_v52 }
 0x243   : > { %v5304_v37 = vpack.c.bf16 %v1624_v4, %v1620_v30  ;;  %v3840_v4 = vld [vmem:[#allocation5 + $0x1e8] sm:$0xf0]  ;;  %v1452_v14 = vadd.f32 %v5215_v19, %v6208_v8  ;;  %v6210_v30 = vld [vmem:[#allocation37_spill] sm:$0xff] }
 0x244   : > { %v5298_v60 = vpop.f32.mrf.mxu2  ;;  %v5309_v22 = vpack.c.bf16 %v1625_v26, %v1621_v55  ;;  %v3843_v15 = vor.u32 %v4051_v35, %v3840_v4  ;;  %v1450_v55 = vadd.f32 %v5208_v11, %v6210_v30  ;;  %v1528_v19 = vadd.f32 %v5281_v58, %v1377_v45 }
 0x245   : > { %v1533_v35 = vadd.f32 %v5287_v38, %v1452_v14 }
 0x246   : > { %v2189_v57 = vpop.f32.mrf.mxu0  ;;  %6206 = vst [vmem:[#allocation33_spill] sm:$0xff] %v5309_v22  ;;  %2672 = vmatpush.bf16.msra.mxu3 %v3843_v15  ;;  %v1529_v34 = vadd.f32 %v5287_v38, %v1450_v55  ;;  %v1628_v52 = vmax.f32 %v1528_v19, 0.0  ;;  %v6214_v55 = vld [vmem:[#allocation42_spill] sm:$0xff]  ;;  %v6216_v19 = vld [vmem:[#allocation40_spill] sm:$0xff] }
 0x247   : > { %v5300_v59 = vpop.f32.mrf.mxu3  ;;  %v2190_v29 = vadd.f32 %v2189_v57, %v5191_v16  ;;  %v2262_v12 = vpop.f32.mrf.mxu1  ;;  %v1633_v8 = vmax.f32 %v1533_v35, 0.0 }
 0x248   : > { %v1629_v30 = vmax.f32 %v1529_v34, 0.0 }
 0x249   : > { %v5311_v21 = vadd.f32 %v2262_v12, %v2190_v29  ;;  %2228 = vmatmul.bf16.gmra.mxu0 %v5302_v31  ;;  %2314 = vmatmul.bf16.vlgmr.msrb.gmra.mxu2 %v5304_v37  ;;  %v1532_v29 = vadd.f32 %v5281_v58, %v1379_v47 }
 0x24a   : > { %2301 = vmatmul.bf16.gmra.mxu1 %v5307_v44  ;;  %v5343_v14 = vpack.c.bf16 %v1633_v8, %v1629_v30 }
 0x24b   : > { %v1632_v50 = vmax.f32 %v1532_v29, 0.0  ;;  %v1384_v29 = vadd.f32 %v5233_v63, %v6214_v55  ;;  %v3768_v55 = vld [vmem:[#allocation5 + $0x158] sm:$0xf0] }
 0x24c   : > { %2387 = vmatmul.bf16.vlgmr.msrb.gmra.mxu3 %v5309_v22  ;;  %v5321_v27 = vpop.f32.mrf.mxu2  ;;  %6212 = vst [vmem:[#allocation34_spill] sm:$0xff] %v5343_v14 }
 0x24d   : > { %v5341_v44 = vpack.c.bf16 %v1632_v50, %v1628_v52  ;;  %v6217_v50 = vld [vmem:[#allocation41_spill] sm:$0xff]  ;;  %v1540_v52 = vadd.f32 %v5281_v58, %v1384_v29 }
 0x24e   : > { %v2191_v57 = vpop.f32.mrf.mxu0 }
 0x24f   : > { %v5325_v26 = vpop.f32.mrf.mxu3  ;;  %v2192_v43 = vadd.f32 %v2191_v57, %v5191_v16  ;;  %v2264_v12 = vpop.f32.mrf.mxu1  ;;  %6211 = vst [vmem:[#allocation29_spill] sm:$0xff] %v5341_v44 }
 0x251   : > { %v5333_v4 = vadd.f32 %v2264_v12, %v2192_v43  ;;  %v6215_v43 = vld [vmem:[#allocation43_spill] sm:$0xff] }
 0x252   : > { %v1457_v12 = vadd.f32 %v5235_v46, %v6215_v43  ;;  %v1640_v43 = vmax.f32 %v1540_v52, 0.0 }
 0x254   : > { %v5336_v15 = vpop.f32.mrf.mxu2  ;;  %v1541_v63 = vadd.f32 %v5287_v38, %v1457_v12 }
 0x256   : > { %v2194_v47 = vpop.f32.mrf.mxu0 }
 0x257   : > { %v5338_v11 = vpop.f32.mrf.mxu3  ;;  %v2195_v57 = vadd.f32 %v2194_v47, %v5191_v16  ;;  %v2267_v22 = vpop.f32.mrf.mxu1 }
 0x259   : > { %v5345_v45 = vadd.f32 %v2267_v22, %v2195_v57  ;;  %2319 = vmatmul.bf16.gmra.mxu2 %v5341_v44  ;;  %2460 = vmatmul.bf16.vlgmr.msrb.gmra.mxu0 %v4869_v10  ;;  %v1382_v22 = vadd.f32 %v5226_v51, %v6216_v19  ;;  %v1455_v10 = vadd.f32 %v5228_v1, %v6217_v50  ;;  %v4033_v51 = vld [vmem:[#allocation5 + $0x154] sm:$0xf]  ;;  %v3832_v1 = vld [vmem:[#allocation5 + $0x1d8] sm:$0xf0]  ;;  %v1641_v50 = vmax.f32 %v1541_v63, 0.0 }
 0x25a   : > { %2533 = vmatmul.bf16.vlgmr.msrb.gmra.mxu1 %v4876_v0  ;;  %v3771_v19 = vor.u32 %v4033_v51, %v3768_v55  ;;  %v1462_v63 = vadd.f32 %v5255_v49, %v4927_v23 }
 0x25b   : > { %6213 = vst [vmem:[#allocation31_spill] sm:$0xff] %v5345_v45  ;;  %v1536_v46 = vadd.f32 %v5281_v58, %v1382_v22  ;;  %v1537_v57 = vadd.f32 %v5287_v38, %v1455_v10 }
 0x25c   : > { %2392 = vmatmul.bf16.gmra.mxu3 %v5343_v14  ;;  %v5355_v35 = vpop.f32.mrf.mxu2  ;;  %v4049_v14 = vld [vmem:[#allocation5 + $0x1d4] sm:$0xf]  ;;  %2600 = vmatpush.bf16.msra.mxu2 %v3771_v19  ;;  %v6219_v19 = vld [vmem:[#allocation45_spill] sm:$0xff] }
 0x25d   : > { %v3835_v29 = vor.u32 %v4049_v14, %v3832_v1  ;;  %v1637_v12 = vmax.f32 %v1537_v57, 0.0  ;;  %v1389_v14 = vadd.f32 %v5253_v56, %v4925_v3  ;;  %v6218_v57 = vld [vmem:[#allocation44_spill] sm:$0xff]  ;;  %v1549_v3 = vadd.f32 %v5287_v38, %v1462_v63 }
 0x25e   : > { %v2196_v8 = vpop.f32.mrf.mxu0  ;;  %v1387_v55 = vadd.f32 %v5246_v5, %v6218_v57 }
 0x25f   : > { %v5359_v34 = vpop.f32.mrf.mxu3  ;;  %v2197_v0 = vadd.f32 %v2196_v8, %v5191_v16  ;;  %v2269_v30 = vpop.f32.mrf.mxu1  ;;  %v1636_v8 = vmax.f32 %v1536_v46, 0.0  ;;  %2673 = vmatpush.bf16.msra.mxu3 %v3835_v29  ;;  %v5377_v52 = vpack.c.bf16 %v1641_v50, %v1637_v12  ;;  %v1548_v50 = vadd.f32 %v5281_v58, %v1389_v14 }
 0x260   : > { %v1544_v23 = vadd.f32 %v5281_v58, %v1387_v55 }
 0x261   : > { %v5367_v47 = vadd.f32 %v2269_v30, %v2197_v0  ;;  %v5375_v30 = vpack.c.bf16 %v1640_v43, %v1636_v8  ;;  %v1648_v5 = vmax.f32 %v1548_v50, 0.0  ;;  %v1649_v8 = vmax.f32 %v1549_v3, 0.0  ;;  %v3824_v3 = vld [vmem:[#allocation5 + $0x1c8] sm:$0xf0] }
 0x262   : > { %v1394_v50 = vadd.f32 %v5298_v60, %v4955_v41 }
 0x264   : > { %v5370_v44 = vpop.f32.mrf.mxu2  ;;  %v1556_v41 = vadd.f32 %v5281_v58, %v1394_v50 }
 0x266   : > { %v2199_v22 = vpop.f32.mrf.mxu0 }
 0x267   : > { %v5372_v45 = vpop.f32.mrf.mxu3  ;;  %v2200_v0 = vadd.f32 %v2199_v22, %v5191_v16  ;;  %v2272_v10 = vpop.f32.mrf.mxu1  ;;  %v1644_v22 = vmax.f32 %v1544_v23, 0.0  ;;  %v1467_v23 = vadd.f32 %v5300_v59, %v4957_v18 }
 0x269   : > { %v5379_v51 = vadd.f32 %v2272_v10, %v2200_v0  ;;  %2324 = vmatmul.bf16.gmra.mxu2 %v5375_v30  ;;  %2465 = vmatmul.bf16.gmra.mxu0 %v4903_v25  ;;  %v1460_v25 = vadd.f32 %v5248_v28, %v6219_v19  ;;  %v5409_v19 = vpack.c.bf16 %v1648_v5, %v1644_v22 }
 0x26a   : > { %2538 = vmatmul.bf16.gmra.mxu1 %v4905_v33  ;;  %v1557_v18 = vadd.f32 %v5287_v38, %v1467_v23 }
 0x26b   : > { %v1545_v49 = vadd.f32 %v5287_v38, %v1460_v25  ;;  %v4031_v25 = vld [vmem:[#allocation5 + $0x144] sm:$0xf] }
 0x26c   : > { %2397 = vmatmul.bf16.gmra.mxu3 %v5377_v52  ;;  %v5389_v46 = vpop.f32.mrf.mxu2 }
 0x26d   : > { %v1645_v0 = vmax.f32 %v1545_v49, 0.0 }
 0x26e   : > { %v2201_v1 = vpop.f32.mrf.mxu0 }
 0x26f   : > { %v5393_v43 = vpop.f32.mrf.mxu3  ;;  %v2202_v33 = vadd.f32 %v2201_v1, %v5191_v16  ;;  %v2274_v29 = vpop.f32.mrf.mxu1  ;;  %v5411_v63 = vpack.c.bf16 %v1649_v8, %v1645_v0  ;;  %v3760_v1 = vld [vmem:[#allocation5 + $0x148] sm:$0xf0] }
 0x271   : > { %v5401_v56 = vadd.f32 %v2274_v29, %v2202_v33  ;;  %v3763_v33 = vor.u32 %v4031_v25, %v3760_v1  ;;  %v4047_v29 = vld [vmem:[#allocation5 + $0x1c4] sm:$0xf] }
 0x272   : > { %v3827_v5 = vor.u32 %v4047_v29, %v3824_v3 }
 0x273   : > { %2601 = vmatpush.bf16.msra.mxu2 %v3763_v33 }
 0x274   : > { %v5404_v12 = vpop.f32.mrf.mxu2  ;;  %2674 = vmatpush.bf16.msra.mxu3 %v3827_v5  ;;  %v1399_v5 = vadd.f32 %v5336_v15, %v4985_v2 }
 0x276   : > { %v2204_v10 = vpop.f32.mrf.mxu0 }
 0x277   : > { %v5406_v28 = vpop.f32.mrf.mxu3  ;;  %v2205_v14 = vadd.f32 %v2204_v10, %v5191_v16  ;;  %v2277_v57 = vpop.f32.mrf.mxu1 }
 0x279   : > { %v5413_v55 = vadd.f32 %v2277_v57, %v2205_v14  ;;  %2329 = vmatmul.bf16.gmra.mxu2 %v5409_v19  ;;  %2470 = vmatmul.bf16.gmra.mxu0 %v4932_v42  ;;  %v1392_v42 = vadd.f32 %v5274_v17, %v4944_v48  ;;  %v1656_v17 = vmax.f32 %v1556_v41, 0.0  ;;  %v1657_v14 = vmax.f32 %v1557_v18, 0.0 }
 0x27a   : > { %2543 = vmatmul.bf16.gmra.mxu1 %v4934_v40  ;;  %v1465_v40 = vadd.f32 %v5283_v6, %v4947_v20 }
 0x27b   : > { %v1552_v59 = vadd.f32 %v5281_v58, %v1392_v42  ;;  %v1472_v42 = vadd.f32 %v5338_v11, %v4987_v36 }
 0x27c   : > { %2402 = vmatmul.bf16.gmra.mxu3 %v5411_v63  ;;  %v5423_v49 = vpop.f32.mrf.mxu2  ;;  %v1553_v48 = vadd.f32 %v5287_v38, %v1465_v40 }
 0x27d   : > { %v1652_v20 = vmax.f32 %v1552_v59, 0.0  ;;  %v1565_v2 = vadd.f32 %v5287_v38, %v1472_v42 }
 0x27e   : > { %v2206_v22 = vpop.f32.mrf.mxu0  ;;  %v1653_v25 = vmax.f32 %v1553_v48, 0.0 }
 0x27f   : > { %v5427_v8 = vpop.f32.mrf.mxu3  ;;  %v2207_v60 = vadd.f32 %v2206_v22, %v5191_v16  ;;  %v2279_v0 = vpop.f32.mrf.mxu1  ;;  %v5443_v29 = vpack.c.bf16 %v1656_v17, %v1652_v20  ;;  %v1397_v22 = vadd.f32 %v5321_v27, %v4975_v24  ;;  %v4029_v24 = vld [vmem:[#allocation5 + $0x134] sm:$0xf]  ;;  %v3752_v27 = vld [vmem:[#allocation5 + $0x138] sm:$0xf0] }
 0x280   : > { %v5445_v3 = vpack.c.bf16 %v1657_v14, %v1653_v25  ;;  %v3755_v48 = vor.u32 %v4029_v24, %v3752_v27  ;;  %v4045_v17 = vld [vmem:[#allocation5 + $0x1b4] sm:$0xf]  ;;  %v6221_v24 = vld [vmem:[#allocation47_spill] sm:$0xff] }
 0x281   : > { %v5435_v10 = vadd.f32 %v2279_v0, %v2207_v60  ;;  %v1564_v0 = vadd.f32 %v5281_v58, %v1399_v5  ;;  %v1560_v36 = vadd.f32 %v5281_v58, %v1397_v22 }
 0x282   : > { %2602 = vmatpush.bf16.msra.mxu2 %v3755_v48 }
 0x283   : > { %v1664_v59 = vmax.f32 %v1564_v0, 0.0  ;;  %v1660_v25 = vmax.f32 %v1560_v36, 0.0  ;;  %v1404_v0 = vadd.f32 %v5370_v44, %v5011_v13 }
 0x284   : > { %v5438_v57 = vpop.f32.mrf.mxu2 }
 0x285   : > { %v5477_v22 = vpack.c.bf16 %v1664_v59, %v1660_v25  ;;  %v1572_v59 = vadd.f32 %v5281_v58, %v1404_v0 }
 0x286   : > { %v2209_v1 = vpop.f32.mrf.mxu0 }
 0x287   : > { %v5440_v6 = vpop.f32.mrf.mxu3  ;;  %v2210_v50 = vadd.f32 %v2209_v1, %v5191_v16  ;;  %v2282_v33 = vpop.f32.mrf.mxu1 }
 0x289   : > { %v5447_v23 = vadd.f32 %v2282_v33, %v2210_v50  ;;  %2334 = vmatmul.bf16.gmra.mxu2 %v5443_v29  ;;  %2475 = vmatmul.bf16.gmra.mxu0 %v4961_v39  ;;  %v1470_v39 = vadd.f32 %v5325_v26, %v4978_v53  ;;  %v3816_v53 = vld [vmem:[#allocation5 + $0x1b8] sm:$0xf0]  ;;  %v1665_v26 = vmax.f32 %v1565_v2, 0.0  ;;  %v6220_v2 = vld [vmem:[#allocation46_spill] sm:$0xff] }
 0x28a   : > { %2548 = vmatmul.bf16.gmra.mxu1 %v4963_v61  ;;  %v3819_v20 = vor.u32 %v4045_v17, %v3816_v53  ;;  %v1402_v36 = vadd.f32 %v5355_v35, %v6220_v2  ;;  %v1672_v35 = vmax.f32 %v1572_v59, 0.0  ;;  %v4027_v2 = vld [vmem:[#allocation5 + $0x124] sm:$0xf]  ;;  %v6224_v59 = vld [vmem:[#allocation52_spill] sm:$0xff] }
 0x28b   : > { %v1561_v11 = vadd.f32 %v5287_v38, %v1470_v39 }
 0x28c   : > { %2407 = vmatmul.bf16.gmra.mxu3 %v5445_v3  ;;  %v5457_v40 = vpop.f32.mrf.mxu2 }
 0x28d   : > { %v1661_v50 = vmax.f32 %v1561_v11, 0.0  ;;  %2675 = vmatpush.bf16.msra.mxu3 %v3819_v20 }
 0x28e   : > { %v2211_v60 = vpop.f32.mrf.mxu0 }
 0x28f   : > { %v5461_v41 = vpop.f32.mrf.mxu3  ;;  %v2212_v61 = vadd.f32 %v2211_v60, %v5191_v16  ;;  %v2284_v18 = vpop.f32.mrf.mxu1  ;;  %v5479_v39 = vpack.c.bf16 %v1665_v26, %v1661_v50 }
 0x291   : > { %v5469_v15 = vadd.f32 %v2284_v18, %v2212_v61  ;;  %v1477_v61 = vadd.f32 %v5372_v45, %v5013_v32  ;;  %v1568_v32 = vadd.f32 %v5281_v58, %v1402_v36  ;;  %v3744_v36 = vld [vmem:[#allocation5 + $0x128] sm:$0xf0] }
 0x293   : > { %v1573_v13 = vadd.f32 %v5287_v38, %v1477_v61  ;;  %v1668_v26 = vmax.f32 %v1568_v32, 0.0  ;;  %v6222_v61 = vld [vmem:[#allocation48_spill] sm:$0xff] }
 0x294   : > { %v5472_v14 = vpop.f32.mrf.mxu2 }
 0x295   : > { %v1673_v17 = vmax.f32 %v1573_v13, 0.0  ;;  %v6225_v13 = vld [vmem:[#allocation49_spill] sm:$0xff] }
 0x296   : > { %v2214_v33 = vpop.f32.mrf.mxu0  ;;  %v1407_v32 = vadd.f32 %v5389_v46, %v6225_v13  ;;  %v3808_v46 = vld [vmem:[#allocation5 + $0x1a8] sm:$0xf0] }
 0x297   : > { %v5474_v1 = vpop.f32.mrf.mxu3  ;;  %v2215_v5 = vadd.f32 %v2214_v33, %v5191_v16  ;;  %v2287_v42 = vpop.f32.mrf.mxu1 }
 0x299   : > { %v5481_v60 = vadd.f32 %v2287_v42, %v2215_v5  ;;  %2339 = vmatmul.bf16.gmra.mxu2 %v5477_v22  ;;  %2480 = vmatmul.bf16.gmra.mxu0 %v4989_v9  ;;  %v1475_v9 = vadd.f32 %v5359_v34, %v6221_v24  ;;  %v5511_v5 = vpack.c.bf16 %v1672_v35, %v1668_v26  ;;  %v6223_v24 = vld [vmem:[#allocation51_spill] sm:$0xff] }
 0x29a   : > { %2553 = vmatmul.bf16.gmra.mxu1 %v4991_v62 }
 0x29b   : > { %v1569_v45 = vadd.f32 %v5287_v38, %v1475_v9  ;;  %v1409_v9 = vadd.f32 %v5404_v12, %v6223_v24 }
 0x29c   : > { %2412 = vmatmul.bf16.gmra.mxu3 %v5479_v39  ;;  %v5491_v18 = vpop.f32.mrf.mxu2 }
 0x29d   : > { %v1669_v20 = vmax.f32 %v1569_v45, 0.0  ;;  %v1580_v26 = vadd.f32 %v5281_v58, %v1409_v9 }
 0x29e   : > { %v2216_v27 = vpop.f32.mrf.mxu0 }
 0x29f   : > { %v5495_v11 = vpop.f32.mrf.mxu3  ;;  %v2217_v62 = vadd.f32 %v2216_v27, %v5191_v16  ;;  %v2289_v48 = vpop.f32.mrf.mxu1  ;;  %v5513_v42 = vpack.c.bf16 %v1673_v17, %v1669_v20  ;;  %v3747_v27 = vor.u32 %v4027_v2, %v3744_v36  ;;  %v1680_v36 = vmax.f32 %v1580_v26, 0.0  ;;  %v6231_v26 = vld [vmem:[#allocation54_spill] sm:$0xff] }
 0x2a1   : > { %v5503_v44 = vadd.f32 %v2289_v48, %v2217_v62  ;;  %v1482_v62 = vadd.f32 %v5406_v28, %v6224_v59  ;;  %2603 = vmatpush.bf16.msra.mxu2 %v3747_v27  ;;  %v1576_v28 = vadd.f32 %v5281_v58, %v1407_v32 }
 0x2a3   : > { %v1676_v9 = vmax.f32 %v1576_v28, 0.0  ;;  %v6233_v28 = vld [vmem:[#allocation58_spill] sm:$0xff] }
 0x2a4   : > { %v5506_v53 = vpop.f32.mrf.mxu2 }
 0x2a6   : > { %v2219_v25 = vpop.f32.mrf.mxu0 }
 0x2a7   : > { %v5508_v34 = vpop.f32.mrf.mxu3  ;;  %v2220_v50 = vadd.f32 %v2219_v25, %v5191_v16  ;;  %v2292_v33 = vpop.f32.mrf.mxu1  ;;  %v1581_v25 = vadd.f32 %v5287_v38, %v1482_v62 }
 0x2a9   : > { %v5515_v0 = vadd.f32 %v2292_v33, %v2220_v50  ;;  %2344 = vmatmul.bf16.gmra.mxu2 %v5511_v5  ;;  %2485 = vmatmul.bf16.gmra.mxu0 %v5015_v54  ;;  %v6226_v54 = vld [vmem:[#allocation50_spill] sm:$0xff]  ;;  %v1681_v24 = vmax.f32 %v1581_v25, 0.0 }
 0x2aa   : > { %2558 = vmatmul.bf16.gmra.mxu1 %v6222_v61  ;;  %v1480_v35 = vadd.f32 %v5393_v43, %v6226_v54  ;;  %v4043_v33 = vld [vmem:[#allocation5 + $0x1a4] sm:$0xf]  ;;  %v5545_v54 = vpack.c.bf16 %v1680_v36, %v1676_v9 }
 0x2ab   : > { %v3811_v2 = vor.u32 %v4043_v33, %v3808_v46  ;;  %v1487_v33 = vadd.f32 %v5440_v6, %v6233_v28 }
 0x2ac   : > { %2417 = vmatmul.bf16.gmra.mxu3 %v5513_v42  ;;  %v5525_v48 = vpop.f32.mrf.mxu2  ;;  %v1577_v61 = vadd.f32 %v5287_v38, %v1480_v35  ;;  %6227 = vst [vmem:[#allocation32_spill] sm:$0xff] %v5545_v54  ;;  %v6230_v35 = vld [vmem:[#allocation53_spill] sm:$0xff] }
 0x2ad   : > { %2676 = vmatpush.bf16.msra.mxu3 %v3811_v2 }
 0x2ae   : > { %v2221_v17 = vpop.f32.mrf.mxu0  ;;  %v1677_v59 = vmax.f32 %v1577_v61, 0.0  ;;  %v6234_v61 = vld [vmem:[#allocation55_spill] sm:$0xff] }
 0x2af   : > { %v5529_v45 = vpop.f32.mrf.mxu3  ;;  %v2222_v12 = vadd.f32 %v2221_v17, %v5191_v16  ;;  %v2294_v20 = vpop.f32.mrf.mxu1  ;;  %v1412_v2 = vadd.f32 %v5423_v49, %v6234_v61 }
 0x2b0   : > { %v5547_v17 = vpack.c.bf16 %v1681_v24, %v1677_v59  ;;  %v6235_v24 = vld [vmem:[#allocation56_spill] sm:$0xff] }
 0x2b1   : > { %v5537_v50 = vadd.f32 %v2294_v20, %v2222_v12  ;;  %v6232_v20 = vld [vmem:[#allocation57_spill] sm:$0xff]  ;;  %v1485_v9 = vadd.f32 %v5427_v8, %v6235_v24  ;;  %v1584_v6 = vadd.f32 %v5281_v58, %v1412_v2 }
 0x2b2   : > { %6228 = vst [vmem:[#allocation38_spill] sm:$0xff] %v5547_v17  ;;  %v1414_v25 = vadd.f32 %v5438_v57, %v6232_v20  ;;  %v1589_v57 = vadd.f32 %v5287_v38, %v1487_v33  ;;  %v4070_v20 = vld [vmem:[#allocation7 + $0x78] sm:$0xff] }
 0x2b3   : > { %v1585_v49 = vadd.f32 %v5287_v38, %v1485_v9  ;;  %3025 = vmatpush.bf16.msra.mxu1 %v4070_v20  ;;  %v1684_v24 = vmax.f32 %v1584_v6, 0.0  ;;  %v6236_v9 = vld [vmem:[#allocation59_spill] sm:$0xff]  ;;  %v6237_v6 = vld [vmem:[#allocation60_spill] sm:$0xff] }
 0x2b4   : > { %v5540_v43 = vpop.f32.mrf.mxu2  ;;  %v1689_v8 = vmax.f32 %v1589_v57, 0.0  ;;  %v4041_v57 = vld [vmem:[#allocation5 + $0x194] sm:$0xf]  ;;  %v6238_v20 = vld [vmem:[#allocation63_spill] sm:$0xff] }
 0x2b6   : > { %v2224_v13 = vpop.f32.mrf.mxu0 }
 0x2b7   : > { %v5542_v27 = vpop.f32.mrf.mxu3  ;;  %v2225_v62 = vadd.f32 %v2224_v13, %v5191_v16  ;;  %v2297_v32 = vpop.f32.mrf.mxu1  ;;  %v1588_v13 = vadd.f32 %v5281_v58, %v1414_v25 }
 0x2b9   : > { %v5549_v12 = vadd.f32 %v2297_v32, %v2225_v62  ;;  %2349 = vmatmul.bf16.gmra.mxu2 %v5545_v54  ;;  %2490 = vmatmul.bf16.gmra.mxu0 %v6230_v35  ;;  %v1688_v28 = vmax.f32 %v1588_v13, 0.0  ;;  %v4025_v13 = vld [vmem:[#allocation5 + $0x114] sm:$0xf] }
 0x2ba   : > { %2563 = vmatmul.bf16.gmra.mxu1 %v6231_v26  ;;  %v4062_v26 = vld [vmem:[#allocation7 + $0x38] sm:$0xff] }
 0x2bb   : > { %6229 = vst [vmem:[#allocation39_spill] sm:$0xff] %v5549_v12  ;;  %2952 = vmatpush.bf16.msra.mxu0 %v4062_v26  ;;  %v5575_v12 = vpack.c.bf16 %v1688_v28, %v1684_v24  ;;  %v6239_v28 = vld [vmem:[#allocation64_spill] sm:$0xff] }
 0x2bc   : > { %2422 = vmatmul.bf16.gmra.mxu3 %v5547_v17  ;;  %v5559_v46 = vpop.f32.mrf.mxu2  ;;  %v1685_v17 = vmax.f32 %v1585_v49, 0.0  ;;  %v1419_v49 = vadd.f32 %v5472_v14, %v6238_v20 }
 0x2be   : > { %v2226_v59 = vpop.f32.mrf.mxu0  ;;  %v5577_v2 = vpack.c.bf16 %v1689_v8, %v1685_v17 }
 0x2bf   : > { %v5563_v36 = vpop.f32.mrf.mxu3  ;;  %v2227_v62 = vadd.f32 %v2226_v59, %v5191_v16  ;;  %v2299_v32 = vpop.f32.mrf.mxu1 }
 0x2c1   : > { %v5571_v35 = vadd.f32 %v2299_v32, %v2227_v62  ;;  %v3736_v32 = vld [vmem:[#allocation5 + $0x118] sm:$0xf0] }
 0x2c2   : > { %v3739_v26 = vor.u32 %v4025_v13, %v3736_v32 }
 0x2c4   : > { %v1433_v61 = vpop.f32.mrf.mxu2  ;;  %2604 = vmatpush.bf16.msra.mxu2 %v3739_v26 }
 0x2c5   : > { %v6240_v61 = vld [vmem:[#allocation61_spill] sm:$0xff] }
 0x2c6   : > { %v2229_v59 = vpop.f32.mrf.mxu0  ;;  %v1417_v24 = vadd.f32 %v5457_v40, %v6240_v61  ;;  %v6243_v40 = vld [vmem:[#allocation26_spill] sm:$0xff] }
 0x2c7   : > { %v1506_v25 = vpop.f32.mrf.mxu3  ;;  %v2230_v54 = vadd.f32 %v2229_v59, %v5191_v16  ;;  %v2302_v33 = vpop.f32.mrf.mxu1  ;;  %v3800_v16 = vld [vmem:[#allocation5 + $0x198] sm:$0xf0] }
 0x2c8   : > { %v3803_v17 = vor.u32 %v4041_v57, %v3800_v16  ;;  %v6241_v25 = vld [vmem:[#allocation35_spill] sm:$0xff] }
 0x2c9   : > { %v5579_v62 = vadd.f32 %v2302_v33, %v2230_v54  ;;  %2354 = vmatmul.bf16.gmra.mxu2 %v5575_v12  ;;  %2495 = vmatmul.bf16.gmra.mxu0 %v6236_v9  ;;  %v1492_v54 = vadd.f32 %v5474_v1, %v6239_v28  ;;  %v6242_v9 = vld [vmem:[#allocation62_spill] sm:$0xff]  ;;  %v1592_v1 = vadd.f32 %v5281_v58, %v1417_v24  ;;  %v5599_v28 = vperm.slane %v6243_v40, 1 }
 0x2ca   : > { %2568 = vmatmul.bf16.gmra.mxu1 %v6237_v6  ;;  %2677 = vmatpush.bf16.msra.mxu3 %v3803_v17  ;;  %v1490_v13 = vadd.f32 %v5461_v41, %v6242_v9  ;;  %v1596_v6 = vadd.f32 %v5281_v58, %v1419_v49 }
 0x2cb   : > { %v1597_v16 = vadd.f32 %v5287_v38, %v1492_v54  ;;  %v1692_v61 = vmax.f32 %v1592_v1, 0.0  ;;  %v4061_v1 = vld [vmem:[#allocation7 + $0x30] sm:$0xff] }
 0x2cc   : > { %2427 = vmatmul.bf16.gmra.mxu3 %v5577_v2  ;;  %v2315_v8 = vpop.f32.mrf.mxu2  ;;  %v1593_v26 = vadd.f32 %v5287_v38, %v1490_v13  ;;  %v1696_v20 = vmax.f32 %v1596_v6, 0.0  ;;  %2953 = vmatpush.bf16.msra.mxu0 %v4061_v1 }
 0x2cd   : > { %v2316_v59 = vadd.f32 %v2315_v8, %v6241_v25  ;;  %v1697_v8 = vmax.f32 %v1597_v16, 0.0  ;;  %v6244_v25 = vld [vmem:[#allocation71_spill] sm:$0xff]  ;;  %v6248_v16 = vld [vmem:[#allocation65_spill] sm:$0xff] }
 0x2ce   : > { %v2231_v32 = vpop.f32.mrf.mxu0 }
 0x2cf   : > { %v2388_v33 = vpop.f32.mrf.mxu3  ;;  %v2304_v57 = vpop.f32.mrf.mxu1  ;;  %v1693_v32 = vmax.f32 %v1593_v26, 0.0  ;;  %v6249_v26 = vld [vmem:[#allocation66_spill] sm:$0xff] }
 0x2d0   : > { %v2389_v14 = vadd.f32 %v2388_v33, %v2316_v59  ;;  %v5603_v57 = vpack.c.bf16 %v1696_v20, %v1692_v61 }
 0x2d1   : > { %v5605_v24 = vpack.c.bf16 %v1697_v8, %v1693_v32 }
 0x2d2   : > { %6245 = vst [vmem:[#allocation36_spill] sm:$0xff] %v5603_v57  ;;  %v2744_v13 = vmax.f32 %v2389_v14, 0.0  ;;  %v6251_v14 = vld [vmem:[#allocation18_spill] sm:$0xff] }
 0x2d3   : > { %6246 = vst [vmem:[#allocation37_spill] sm:$0xff] %v5605_v24  ;;  %v1497_v8 = vadd.f32 %v5508_v34, %v6251_v14  ;;  %v3728_v14 = vld [vmem:[#allocation5 + $0x108] sm:$0xf0] }
 0x2d4   : > { %v2317_v17 = vpop.f32.mrf.mxu2 }
 0x2d5   : > { %v2318_v41 = vadd.f32 %v2317_v17, %v6244_v25  ;;  %v4069_v17 = vld [vmem:[#allocation7 + $0x70] sm:$0xff]  ;;  %v6250_v25 = vld [vmem:[#allocation17_spill] sm:$0xff] }
 0x2d6   : > { %v2461_v49 = vpop.f32.mrf.mxu0  ;;  %v1424_v20 = vadd.f32 %v5506_v53, %v6250_v25  ;;  %3026 = vmatpush.bf16.msra.mxu1 %v4069_v17  ;;  %v1605_v17 = vadd.f32 %v5287_v38, %v1497_v8 }
 0x2d7   : > { %v2390_v9 = vpop.f32.mrf.mxu3  ;;  %v2462_v33 = vadd.f32 %v2461_v49, %v5599_v28  ;;  %v2534_v54 = vpop.f32.mrf.mxu1  ;;  %v6253_v49 = vld [vmem:[#allocation72_spill] sm:$0xff] }
 0x2d8   : > { %v2391_v59 = vadd.f32 %v2390_v9, %v2318_v41  ;;  %v6252_v9 = vld [vmem:[#allocation16_spill] sm:$0xff]  ;;  %v1604_v53 = vadd.f32 %v5281_v58, %v1424_v20  ;;  %v1705_v20 = vmax.f32 %v1605_v17, 0.0 }
 0x2d9   : > { %v5607_v40 = vadd.f32 %v2534_v54, %v2462_v33  ;;  %2359 = vmatmul.bf16.gmra.mxu2 %v5603_v57  ;;  %2500 = vmatmul.bf16.gmra.mxu0 %v6248_v16  ;;  %v1422_v32 = vadd.f32 %v5491_v18, %v6252_v9  ;;  %v6254_v54 = vld [vmem:[#allocation67_spill] sm:$0xff]  ;;  %v4023_v18 = vld [vmem:[#allocation5 + $0x104] sm:$0xf] }
 0x2da   : > { %v2746_v6 = vmax.f32 %v2391_v59, 0.0  ;;  %2573 = vmatmul.bf16.gmra.mxu1 %v6249_v26  ;;  %v1495_v16 = vadd.f32 %v5495_v11, %v6254_v54  ;;  %v3731_v9 = vor.u32 %v4023_v18, %v3728_v14  ;;  %v3792_v11 = vld [vmem:[#allocation5 + $0x188] sm:$0xf0]  ;;  %v1704_v54 = vmax.f32 %v1604_v53, 0.0 }
 0x2db   : > { %6247 = vst [vmem:[#allocation42_spill] sm:$0xff] %v5607_v40  ;;  %v1600_v34 = vadd.f32 %v5281_v58, %v1422_v32 }
 0x2dc   : > { %2432 = vmatmul.bf16.gmra.mxu3 %v5605_v24  ;;  %v5615_v61 = vpack.c.bf16 %v2746_v6, %v2744_v13  ;;  %v2320_v41 = vpop.f32.mrf.mxu2  ;;  %2605 = vmatpush.bf16.msra.mxu2 %v3731_v9 }
 0x2dd   : > { %v2321_v59 = vadd.f32 %v2320_v41, %v6253_v49  ;;  %v1601_v41 = vadd.f32 %v5287_v38, %v1495_v16  ;;  %v4039_v49 = vld [vmem:[#allocation5 + $0x184] sm:$0xf] }
 0x2de   : > { %v2463_v26 = vpop.f32.mrf.mxu0  ;;  %v3795_v24 = vor.u32 %v4039_v49, %v3792_v11  ;;  %v6260_v49 = vld [vmem:[#allocation21_spill] sm:$0xff] }
 0x2df   : > { %v2393_v33 = vpop.f32.mrf.mxu3  ;;  %v2464_v6 = vadd.f32 %v2463_v26, %v5599_v28  ;;  %v2536_v1 = vpop.f32.mrf.mxu1  ;;  %v6256_v26 = vld [vmem:[#allocation73_spill] sm:$0xff]  ;;  %v1701_v32 = vmax.f32 %v1601_v41, 0.0  ;;  %v1502_v11 = vadd.f32 %v5542_v27, %v6260_v49  ;;  %v6264_v49 = vld [vmem:[#allocation75_spill] sm:$0xff] }
 0x2e0   : > { %v2394_v13 = vadd.f32 %v2393_v33, %v2321_v59  ;;  %v1700_v33 = vmax.f32 %v1600_v34, 0.0  ;;  %2678 = vmatpush.bf16.msra.mxu3 %v3795_v24  ;;  %v6257_v34 = vld [vmem:[#allocation68_spill] sm:$0xff]  ;;  %v6258_v24 = vld [vmem:[#allocation69_spill] sm:$0xff] }
 0x2e1   : > { %v5628_v25 = vadd.f32 %v2536_v1, %v2464_v6  ;;  %v5635_v18 = vpack.c.bf16 %v1705_v20, %v1701_v32 }
 0x2e2   : > { %v5633_v16 = vpack.c.bf16 %v1704_v54, %v1700_v33  ;;  %v2748_v53 = vmax.f32 %v2394_v13, 0.0  ;;  %v6261_v54 = vld [vmem:[#allocation27_spill] sm:$0xff] }
 0x2e3   : > { %6255 = vst [vmem:[#allocation43_spill] sm:$0xff] %v5628_v25  ;;  %v6263_v33 = vld [vmem:[#allocation19_spill] sm:$0xff] }
 0x2e4   : > { %v2322_v59 = vpop.f32.mrf.mxu2 }
 0x2e5   : > { %v2323_v57 = vadd.f32 %v2322_v59, %v6256_v26  ;;  %v1500_v26 = vadd.f32 %v5529_v45, %v6263_v33 }
 0x2e6   : > { %v2466_v6 = vpop.f32.mrf.mxu0 }
 0x2e7   : > { %v2395_v8 = vpop.f32.mrf.mxu3  ;;  %v2467_v25 = vadd.f32 %v2466_v6, %v5599_v28  ;;  %v2539_v40 = vpop.f32.mrf.mxu1 }
 0x2e8   : > { %v2396_v1 = vadd.f32 %v2395_v8, %v2323_v57  ;;  %v6259_v57 = vld [vmem:[#allocation20_spill] sm:$0xff] }
 0x2e9   : > { %v5637_v17 = vadd.f32 %v2539_v40, %v2467_v25  ;;  %2364 = vmatmul.bf16.gmra.mxu2 %v5633_v16  ;;  %2505 = vmatmul.bf16.gmra.mxu0 %v6257_v34  ;;  %v1429_v41 = vadd.f32 %v5540_v43, %v6259_v57  ;;  %v1427_v40 = vadd.f32 %v5525_v48, %v6261_v54  ;;  %v6262_v25 = vld [vmem:[#allocation74_spill] sm:$0xff] }
 0x2ea   : > { %v2750_v14 = vmax.f32 %v2396_v1, 0.0  ;;  %2578 = vmatmul.bf16.gmra.mxu1 %v6258_v24  ;;  %v1613_v1 = vadd.f32 %v5287_v38, %v1502_v11  ;;  %v1609_v48 = vadd.f32 %v5287_v38, %v1500_v26  ;;  %v4059_v54 = vld [vmem:[#allocation7 + $0x20] sm:$0xff] }
 0x2eb   : > { %v1612_v32 = vadd.f32 %v5281_v58, %v1429_v41  ;;  %v1608_v27 = vadd.f32 %v5281_v58, %v1427_v40 }
 0x2ec   : > { %2437 = vmatmul.bf16.gmra.mxu3 %v5635_v18  ;;  %v5645_v9 = vpack.c.bf16 %v2750_v14, %v2748_v53  ;;  %v2325_v13 = vpop.f32.mrf.mxu2  ;;  %v4060_v53 = vld [vmem:[#allocation7 + $0x28] sm:$0xff]  ;;  %v1713_v24 = vmax.f32 %v1613_v1, 0.0 }
 0x2ed   : > { %v2326_v20 = vadd.f32 %v2325_v13, %v6262_v25  ;;  %v4068_v14 = vld [vmem:[#allocation7 + $0x68] sm:$0xff]  ;;  %v1712_v34 = vmax.f32 %v1612_v32, 0.0  ;;  %2954 = vmatpush.bf16.msra.mxu0 %v4060_v53  ;;  %v1708_v57 = vmax.f32 %v1608_v27, 0.0  ;;  %v1709_v25 = vmax.f32 %v1609_v48, 0.0  ;;  %v6265_v27 = vld [vmem:[#allocation22_spill] sm:$0xff] }
 0x2ee   : > { %v5654_v8 = vpop.f32.mrf.mxu0  ;;  %3027 = vmatpush.bf16.msra.mxu1 %v4068_v14  ;;  %v4058_v14 = vld [vmem:[#allocation7 + $0x18] sm:$0xff]  ;;  %v6266_v48 = vld [vmem:[#allocation70_spill] sm:$0xff] }
 0x2ef   : > { %v2398_v59 = vpop.f32.mrf.mxu3  ;;  %v5657_v6 = vpop.f32.mrf.mxu1  ;;  %v5664_v33 = vpack.c.bf16 %v1712_v34, %v1708_v57  ;;  %v5666_v26 = vpack.c.bf16 %v1713_v24, %v1709_v25  ;;  %v6268_v24 = vld [vmem:[#allocation23_spill] sm:$0xff]  ;;  %v4057_v25 = vld [vmem:[#allocation7 + $0x10] sm:$0xff] }
 0x2f0   : > { %v2399_v43 = vadd.f32 %v2398_v59, %v2326_v20 }
 0x2f1   : > { %2955 = vmatpush.bf16.msra.mxu0 %v4059_v54 }
 0x2f2   : > { %v2752_v32 = vmax.f32 %v2399_v43, 0.0  ;;  %v1505_v43 = vadd.f32 %v5563_v36, %v6268_v24 }
 0x2f4   : > { %v2327_v45 = vpop.f32.mrf.mxu2 }
 0x2f5   : > { %v2328_v13 = vadd.f32 %v2327_v45, %v6264_v49  ;;  %v6267_v45 = vld [vmem:[#allocation30_spill] sm:$0xff]  ;;  %2956 = vmatpush.bf16.msra.mxu0 %v4058_v14 }
 0x2f6   : > { %v2471_v20 = vpop.f32.mrf.mxu0  ;;  %v1432_v34 = vadd.f32 %v5559_v46, %v6267_v45  ;;  %v1617_v46 = vadd.f32 %v5287_v38, %v1505_v43  ;;  %v4055_v45 = vld [vmem:[#allocation7] sm:$0xff] }
 0x2f7   : > { %v2400_v41 = vpop.f32.mrf.mxu3  ;;  %v2472_v11 = vadd.f32 %v2471_v20, %v5599_v28  ;;  %v2544_v40 = vpop.f32.mrf.mxu1 }
 0x2f8   : > { %v2401_v59 = vadd.f32 %v2400_v41, %v2328_v13  ;;  %v6269_v13 = vld [vmem:[#allocation76_spill] sm:$0xff] }
 0x2f9   : > { %v5668_v1 = vadd.f32 %v2544_v40, %v2472_v11  ;;  %2369 = vmatmul.bf16.gmra.mxu2 %v5664_v33  ;;  %2510 = vmatmul.bf16.gmra.mxu0 %v6265_v27  ;;  %v1717_v27 = vmax.f32 %v1617_v46, 0.0 }
 0x2fa   : > { %v2754_v53 = vmax.f32 %v2401_v59, 0.0  ;;  %2583 = vmatmul.bf16.gmra.mxu1 %v6266_v48  ;;  %v1616_v59 = vadd.f32 %v5281_v58, %v1432_v34  ;;  %2957 = vmatpush.bf16.msra.mxu0 %v4057_v25  ;;  %v6270_v25 = vld [vmem:[#allocation24_spill] sm:$0xff] }
 0x2fc   : > { %2442 = vmatmul.bf16.gmra.mxu3 %v5666_v26  ;;  %v5676_v57 = vpack.c.bf16 %v2754_v53, %v2752_v32  ;;  %v2330_v49 = vpop.f32.mrf.mxu2  ;;  %v4056_v32 = vld [vmem:[#allocation7 + $0x8] sm:$0xff]  ;;  %v1716_v53 = vmax.f32 %v1616_v59, 0.0  ;;  %v4067_v59 = vld [vmem:[#allocation7 + $0x60] sm:$0xff] }
 0x2fd   : > { %v2331_v41 = vadd.f32 %v2330_v49, %v6269_v13  ;;  %3028 = vmatpush.bf16.msra.mxu1 %v4067_v59  ;;  %v6273_v59 = vld [vmem:[#allocation33_spill] sm:$0xff] }
 0x2fe   : > { %v5681_v20 = vpop.f32.mrf.mxu0  ;;  %2958 = vmatpush.bf16.msra.mxu0 %v4056_v32  ;;  %v5688_v49 = vpack.c.bf16 %v1716_v53, %v1716_v53 }
 0x2ff   : > { %v2403_v54 = vpop.f32.mrf.mxu3  ;;  %v5684_v40 = vpop.f32.mrf.mxu1 }
 0x300   : > { %v2404_v11 = vadd.f32 %v2403_v54, %v2331_v41  ;;  %v5691_v41 = vpack.c.bf16 %v1717_v27, %v1717_v27 }
 0x302   : > { %2959 = vmatpush.bf16.msra.mxu0 %v4055_v45  ;;  %v2756_v38 = vmax.f32 %v2404_v11, 0.0 }
 0x304   : > { %v2332_v36 = vpop.f32.mrf.mxu2 }
 0x305   : > { %v2333_v14 = vadd.f32 %v2332_v36, %v5295_v7  ;;  %v6271_v7 = vld [vmem:[#allocation25_spill] sm:$0xff] }
 0x306   : > { %v2476_v24 = vpop.f32.mrf.mxu0 }
 0x307   : > { %v2405_v48 = vpop.f32.mrf.mxu3  ;;  %v2477_v58 = vadd.f32 %v2476_v24, %v5599_v28  ;;  %v2549_v34 = vpop.f32.mrf.mxu1 }
 0x308   : > { %v2406_v13 = vadd.f32 %v2405_v48, %v2333_v14 }
 0x309   : > { %v5693_v54 = vadd.f32 %v2549_v34, %v2477_v58  ;;  %2374 = vmatmul.bf16.gmra.mxu2 %v5688_v49  ;;  %2515 = vmatmul.bf16.gmra.mxu0 %v6270_v25 }
 0x30a   : > { %v2758_v43 = vmax.f32 %v2406_v13, 0.0  ;;  %2588 = vmatmul.bf16.gmra.mxu1 %v6271_v7 }
 0x30c   : > { %2447 = vmatmul.bf16.gmra.mxu3 %v5691_v41  ;;  %v5699_v46 = vpack.c.bf16 %v2758_v43, %v2756_v38  ;;  %v2335_v32 = vpop.f32.mrf.mxu2 }
 0x30d   : > { %v2336_v53 = vadd.f32 %v2335_v32, %v5311_v21  ;;  %v6272_v21 = vld [vmem:[#allocation28_spill] sm:$0xff] }
 0x30e   : > { %v5702_v11 = vpop.f32.mrf.mxu0 }
 0x30f   : > { %v2408_v27 = vpop.f32.mrf.mxu3  ;;  %v5704_v14 = vpop.f32.mrf.mxu1 }
 0x310   : > { %v2409_v36 = vadd.f32 %v2408_v27, %v2336_v53  ;;  %v6274_v53 = vld [vmem:[#allocation31_spill] sm:$0xff] }
 0x312   : > { %v2760_v43 = vmax.f32 %v2409_v36, 0.0 }
 0x314   : > { %v2337_v48 = vpop.f32.mrf.mxu2 }
 0x315   : > { %v2338_v45 = vadd.f32 %v2337_v48, %v5333_v4 }
 0x316   : > { %v2481_v13 = vpop.f32.mrf.mxu0 }
 0x317   : > { %v2410_v24 = vpop.f32.mrf.mxu3  ;;  %v2482_v34 = vadd.f32 %v2481_v13, %v5599_v28  ;;  %v2554_v38 = vpop.f32.mrf.mxu1 }
 0x318   : > { %v2411_v58 = vadd.f32 %v2410_v24, %v2338_v45 }
 0x319   : > { %v5708_v7 = vadd.f32 %v2554_v38, %v2482_v34  ;;  %2520 = vmatmul.bf16.gmra.mxu0 %v5302_v31  ;;  %2606 = vmatmul.bf16.vlgmr.msra.gmra.mxu2 %v5304_v37 }
 0x31a   : > { %v2762_v25 = vmax.f32 %v2411_v58, 0.0  ;;  %2593 = vmatmul.bf16.gmra.mxu1 %v6272_v21 }
 0x31c   : > { %2679 = vmatmul.bf16.vlgmr.msra.gmra.mxu3 %v6273_v59  ;;  %v5714_v32 = vpack.c.bf16 %v2762_v25, %v2760_v43  ;;  %v2340_v4 = vpop.f32.mrf.mxu2 }
 0x31d   : > { %v2341_v27 = vadd.f32 %v2340_v4, %v6274_v53  ;;  %v6276_v4 = vld [vmem:[#allocation29_spill] sm:$0xff] }
 0x31e   : > { %v5717_v45 = vpop.f32.mrf.mxu0  ;;  %v4066_v53 = vld [vmem:[#allocation7 + $0x58] sm:$0xff] }
 0x31f   : > { %v2413_v48 = vpop.f32.mrf.mxu3  ;;  %v5719_v24 = vpop.f32.mrf.mxu1  ;;  %3029 = vmatpush.bf16.msra.mxu1 %v4066_v53 }
 0x320   : > { %v2414_v36 = vadd.f32 %v2413_v48, %v2341_v27  ;;  %v6277_v27 = vld [vmem:[#allocation34_spill] sm:$0xff] }
 0x322   : > { %v2764_v43 = vmax.f32 %v2414_v36, 0.0 }
 0x324   : > { %v2342_v13 = vpop.f32.mrf.mxu2 }
 0x325   : > { %v2343_v31 = vadd.f32 %v2342_v13, %v5367_v47 }
 0x326   : > { %v2486_v37 = vpop.f32.mrf.mxu0 }
 0x327   : > { %v2415_v58 = vpop.f32.mrf.mxu3  ;;  %v2487_v38 = vadd.f32 %v2486_v37, %v5599_v28  ;;  %v2559_v21 = vpop.f32.mrf.mxu1 }
 0x328   : > { %v2416_v34 = vadd.f32 %v2415_v58, %v2343_v31 }
 0x329   : > { %v5723_v59 = vadd.f32 %v2559_v21, %v2487_v38  ;;  %2611 = vmatmul.bf16.gmra.mxu2 %v6276_v4  ;;  %2960 = vmatmul.bf16.vlgmr.msra.gmra.mxu0 %v5615_v61 }
 0x32a   : > { %v2766_v25 = vmax.f32 %v2416_v34, 0.0 }
 0x32b   : > { %6275 = vst [vmem:[#allocation40_spill] sm:$0xff] %v5723_v59 }
 0x32c   : > { %2684 = vmatmul.bf16.gmra.mxu3 %v6277_v27  ;;  %v5728_v48 = vpack.c.bf16 %v2766_v25, %v2764_v43  ;;  %v2345_v47 = vpop.f32.mrf.mxu2 }
 0x32d   : > { %v2346_v13 = vadd.f32 %v2345_v47, %v5379_v51 }
 0x32e   : > { %v5731_v58 = vpop.f32.mrf.mxu0 }
 0x32f   : > { %v2418_v31 = vpop.f32.mrf.mxu3  ;;  %v5733_v37 = vpop.f32.mrf.mxu1 }
 0x330   : > { %v2419_v36 = vadd.f32 %v2418_v31, %v2346_v13 }
 0x332   : > { %v2768_v43 = vmax.f32 %v2419_v36, 0.0  ;;  %v4065_v36 = vld [vmem:[#allocation7 + $0x50] sm:$0xff] }
 0x333   : > { %3030 = vmatpush.bf16.msra.mxu1 %v4065_v36 }
 0x334   : > { %v2347_v34 = vpop.f32.mrf.mxu2 }
 0x335   : > { %v2348_v38 = vadd.f32 %v2347_v34, %v5401_v56 }
 0x336   : > { %v2491_v61 = vpop.f32.mrf.mxu0 }
 0x337   : > { %v2420_v21 = vpop.f32.mrf.mxu3  ;;  %v2492_v27 = vadd.f32 %v2491_v61, %v5599_v28  ;;  %v2564_v53 = vpop.f32.mrf.mxu1 }
 0x338   : > { %v2421_v4 = vadd.f32 %v2420_v21, %v2348_v38 }
 0x339   : > { %v5737_v59 = vadd.f32 %v2564_v53, %v2492_v27  ;;  %2616 = vmatmul.bf16.gmra.mxu2 %v5375_v30  ;;  %2965 = vmatmul.bf16.gmra.mxu0 %v5645_v9 }
 0x33a   : > { %v2770_v25 = vmax.f32 %v2421_v4, 0.0 }
 0x33c   : > { %2689 = vmatmul.bf16.gmra.mxu3 %v5377_v52  ;;  %v5742_v51 = vpack.c.bf16 %v2770_v25, %v2768_v43  ;;  %v2350_v47 = vpop.f32.mrf.mxu2 }
 0x33d   : > { %v2351_v56 = vadd.f32 %v2350_v47, %v5413_v55 }
 0x33e   : > { %v5745_v31 = vpop.f32.mrf.mxu0 }
 0x33f   : > { %v2423_v13 = vpop.f32.mrf.mxu3  ;;  %v5747_v38 = vpop.f32.mrf.mxu1 }
 0x340   : > { %v2424_v34 = vadd.f32 %v2423_v13, %v2351_v56 }
 0x342   : > { %v2772_v53 = vmax.f32 %v2424_v34, 0.0 }
 0x344   : > { %v2352_v21 = vpop.f32.mrf.mxu2 }
 0x345   : > { %v2353_v30 = vadd.f32 %v2352_v21, %v5435_v10 }
 0x346   : > { %v2496_v9 = vpop.f32.mrf.mxu0 }
 0x347   : > { %v2425_v61 = vpop.f32.mrf.mxu3  ;;  %v2497_v52 = vadd.f32 %v2496_v9, %v5599_v28  ;;  %v2569_v27 = vpop.f32.mrf.mxu1 }
 0x348   : > { %v2426_v4 = vadd.f32 %v2425_v61, %v2353_v30 }
 0x349   : > { %v5751_v55 = vadd.f32 %v2569_v27, %v2497_v52  ;;  %2621 = vmatmul.bf16.gmra.mxu2 %v5409_v19  ;;  %2970 = vmatmul.bf16.gmra.mxu0 %v5676_v57 }
 0x34a   : > { %v2774_v43 = vmax.f32 %v2426_v4, 0.0 }
 0x34c   : > { %2694 = vmatmul.bf16.gmra.mxu3 %v5411_v63  ;;  %v5756_v25 = vpack.c.bf16 %v2774_v43, %v2772_v53  ;;  %v2355_v47 = vpop.f32.mrf.mxu2 }
 0x34d   : > { %v2356_v10 = vadd.f32 %v2355_v47, %v5447_v23  ;;  %v4064_v23 = vld [vmem:[#allocation7 + $0x48] sm:$0xff] }
 0x34e   : > { %v5759_v13 = vpop.f32.mrf.mxu0  ;;  %3031 = vmatpush.bf16.msra.mxu1 %v4064_v23 }
 0x34f   : > { %v2428_v56 = vpop.f32.mrf.mxu3  ;;  %v5761_v21 = vpop.f32.mrf.mxu1 }
 0x350   : > { %v2429_v36 = vadd.f32 %v2428_v56, %v2356_v10 }
 0x352   : > { %v2776_v4 = vmax.f32 %v2429_v36, 0.0 }
 0x354   : > { %v2357_v34 = vpop.f32.mrf.mxu2 }
 0x355   : > { %v2358_v30 = vadd.f32 %v2357_v34, %v5469_v15 }
 0x356   : > { %v2501_v19 = vpop.f32.mrf.mxu0 }
 0x357   : > { %v2430_v61 = vpop.f32.mrf.mxu3  ;;  %v2502_v57 = vadd.f32 %v2501_v19, %v5599_v28  ;;  %v2574_v63 = vpop.f32.mrf.mxu1 }
 0x358   : > { %v2431_v9 = vadd.f32 %v2430_v61, %v2358_v30 }
 0x359   : > { %v5765_v27 = vadd.f32 %v2574_v63, %v2502_v57  ;;  %2626 = vmatmul.bf16.gmra.mxu2 %v5443_v29  ;;  %2975 = vmatmul.bf16.gmra.mxu0 %v5699_v46 }
 0x35a   : > { %v2778_v52 = vmax.f32 %v2431_v9, 0.0 }
 0x35c   : > { %2699 = vmatmul.bf16.gmra.mxu3 %v5445_v3  ;;  %v5770_v53 = vpack.c.bf16 %v2778_v52, %v2776_v4  ;;  %v2360_v15 = vpop.f32.mrf.mxu2 }
 0x35d   : > { %v2361_v43 = vadd.f32 %v2360_v15, %v5481_v60 }
 0x35e   : > { %v5773_v10 = vpop.f32.mrf.mxu0 }
 0x35f   : > { %v2433_v47 = vpop.f32.mrf.mxu3  ;;  %v5775_v36 = vpop.f32.mrf.mxu1 }
 0x360   : > { %v2434_v56 = vadd.f32 %v2433_v47, %v2361_v43  ;;  %v4063_v47 = vld [vmem:[#allocation7 + $0x40] sm:$0xff] }
 0x361   : > { %3032 = vmatpush.bf16.msra.mxu1 %v4063_v47 }
 0x362   : > { %v2780_v9 = vmax.f32 %v2434_v56, 0.0 }
 0x364   : > { %v2362_v34 = vpop.f32.mrf.mxu2 }
 0x365   : > { %v2363_v29 = vadd.f32 %v2362_v34, %v5503_v44 }
 0x366   : > { %v2506_v46 = vpop.f32.mrf.mxu0 }
 0x367   : > { %v2435_v30 = vpop.f32.mrf.mxu3  ;;  %v2507_v3 = vadd.f32 %v2506_v46, %v5599_v28  ;;  %v2579_v19 = vpop.f32.mrf.mxu1 }
 0x368   : > { %v2436_v61 = vadd.f32 %v2435_v30, %v2363_v29 }
 0x369   : > { %v5779_v63 = vadd.f32 %v2579_v19, %v2507_v3  ;;  %2631 = vmatmul.bf16.gmra.mxu2 %v5477_v22  ;;  %2980 = vmatmul.bf16.gmra.mxu0 %v5714_v32  ;;  %v6278_v19 = vld [vmem:[#allocation39_spill] sm:$0xff] }
 0x36a   : > { %v2782_v57 = vmax.f32 %v2436_v61, 0.0 }
 0x36c   : > { %2704 = vmatmul.bf16.gmra.mxu3 %v5479_v39  ;;  %v5784_v60 = vpack.c.bf16 %v2782_v57, %v2780_v9  ;;  %v2365_v4 = vpop.f32.mrf.mxu2 }
 0x36d   : > { %v2366_v44 = vadd.f32 %v2365_v4, %v5515_v0 }
 0x36e   : > { %v5787_v23 = vpop.f32.mrf.mxu0 }
 0x36f   : > { %v2438_v52 = vpop.f32.mrf.mxu3  ;;  %v5789_v43 = vpop.f32.mrf.mxu1 }
 0x370   : > { %v2439_v15 = vadd.f32 %v2438_v52, %v2366_v44 }
 0x372   : > { %v2784_v46 = vmax.f32 %v2439_v15, 0.0 }
 0x374   : > { %v2367_v56 = vpop.f32.mrf.mxu2 }
 0x375   : > { %v2368_v34 = vadd.f32 %v2367_v56, %v5537_v50 }
 0x376   : > { %v2511_v32 = vpop.f32.mrf.mxu0 }
 0x377   : > { %v2440_v22 = vpop.f32.mrf.mxu3  ;;  %v2512_v39 = vadd.f32 %v2511_v32, %v5599_v28  ;;  %v2584_v30 = vpop.f32.mrf.mxu1 }
 0x378   : > { %v2441_v29 = vadd.f32 %v2440_v22, %v2368_v34 }
 0x379   : > { %v5793_v0 = vadd.f32 %v2584_v30, %v2512_v39  ;;  %2636 = vmatmul.bf16.gmra.mxu2 %v5511_v5  ;;  %2985 = vmatmul.bf16.gmra.mxu0 %v5728_v48  ;;  %v6279_v39 = vld [vmem:[#allocation32_spill] sm:$0xff]  ;;  %v6280_v30 = vld [vmem:[#allocation38_spill] sm:$0xff] }
 0x37a   : > { %v2786_v61 = vmax.f32 %v2441_v29, 0.0 }
 0x37c   : > { %2709 = vmatmul.bf16.gmra.mxu3 %v5513_v42  ;;  %v5798_v3 = vpack.c.bf16 %v2786_v61, %v2784_v46  ;;  %v2370_v50 = vpop.f32.mrf.mxu2 }
 0x37d   : > { %v2371_v9 = vadd.f32 %v2370_v50, %v6278_v19 }
 0x37e   : > { %v5801_v4 = vpop.f32.mrf.mxu0 }
 0x37f   : > { %v2443_v57 = vpop.f32.mrf.mxu3  ;;  %v5803_v52 = vpop.f32.mrf.mxu1 }
 0x380   : > { %v2444_v44 = vadd.f32 %v2443_v57, %v2371_v9 }
 0x382   : > { %v2788_v22 = vmax.f32 %v2444_v44, 0.0 }
 0x384   : > { %v2372_v15 = vpop.f32.mrf.mxu2 }
 0x385   : > { %v2373_v47 = vadd.f32 %v2372_v15, %v5571_v35 }
 0x386   : > { %v2516_v5 = vpop.f32.mrf.mxu0 }
 0x387   : > { %v2445_v56 = vpop.f32.mrf.mxu3  ;;  %v2517_v48 = vadd.f32 %v2516_v5, %v5599_v28  ;;  %v2589_v42 = vpop.f32.mrf.mxu1 }
 0x388   : > { %v2446_v34 = vadd.f32 %v2445_v56, %v2373_v47 }
 0x389   : > { %v5807_v29 = vadd.f32 %v2589_v42, %v2517_v48  ;;  %2641 = vmatmul.bf16.gmra.mxu2 %v6279_v39  ;;  %2990 = vmatmul.bf16.gmra.mxu0 %v5742_v51 }
 0x38a   : > { %v2790_v32 = vmax.f32 %v2446_v34, 0.0 }
 0x38c   : > { %2714 = vmatmul.bf16.gmra.mxu3 %v6280_v30  ;;  %v5812_v46 = vpack.c.bf16 %v2790_v32, %v2788_v22  ;;  %v2375_v61 = vpop.f32.mrf.mxu2  ;;  %v6281_v22 = vld [vmem:[#allocation42_spill] sm:$0xff] }
 0x38d   : > { %v2376_v35 = vadd.f32 %v2375_v61, %v5579_v62  ;;  %v6282_v61 = vld [vmem:[#allocation43_spill] sm:$0xff] }
 0x38e   : > { %v5815_v19 = vpop.f32.mrf.mxu0 }
 0x38f   : > { %v2448_v50 = vpop.f32.mrf.mxu3  ;;  %v5819_v57 = vpop.f32.mrf.mxu1 }
 0x390   : > { %v5817_v9 = vadd.f32 %v2448_v50, %v2376_v35 }
 0x394   : > { %v2377_v44 = vpop.f32.mrf.mxu2 }
 0x396   : > { %v2521_v47 = vpop.f32.mrf.mxu0 }
 0x397   : > { %v2450_v15 = vpop.f32.mrf.mxu3  ;;  %v2522_v56 = vadd.f32 %v2521_v47, %v5599_v28  ;;  %v2594_v51 = vpop.f32.mrf.mxu1 }
 0x399   : > { %v5822_v5 = vadd.f32 %v2594_v51, %v2522_v56  ;;  %2646 = vmatmul.bf16.gmra.mxu2 %v5575_v12  ;;  %2995 = vmatmul.bf16.gmra.mxu0 %v5756_v25  ;;  %v6283_v56 = vld [vmem:[#allocation36_spill] sm:$0xff] }
 0x39c   : > { %2719 = vmatmul.bf16.gmra.mxu3 %v5577_v2  ;;  %v2607_v62 = vpop.f32.mrf.mxu2  ;;  %v6284_v2 = vld [vmem:[#allocation37_spill] sm:$0xff] }
 0x39d   : > { %v2608_v32 = vadd.f32 %v2607_v62, %v6281_v22 }
 0x39e   : > { %v2523_v48 = vpop.f32.mrf.mxu0 }
 0x39f   : > { %v2680_v34 = vpop.f32.mrf.mxu3  ;;  %v2596_v42 = vpop.f32.mrf.mxu1 }
 0x3a0   : > { %v2681_v30 = vadd.f32 %v2680_v34, %v2608_v32  ;;  %v2469_v34 = vadd.f32 %v5654_v8, %v5599_v28 }
 0x3a2   : > { %v2745_v47 = vmax.f32 %v2681_v30, 0.0  ;;  %v2542_v22 = vadd.f32 %v5657_v6, %v2469_v34 }
 0x3a4   : > { %v2609_v39 = vpop.f32.mrf.mxu2 }
 0x3a5   : > { %v2610_v35 = vadd.f32 %v2609_v39, %v6282_v61 }
 0x3a6   : > { %v5829_v44 = vpop.f32.mrf.mxu0 }
 0x3a7   : > { %v2682_v50 = vpop.f32.mrf.mxu3 }
 0x3a8   : > { %v2683_v15 = vadd.f32 %v2682_v50, %v2610_v35 }
 0x3a9   : > { %2651 = vmatmul.bf16.gmra.mxu2 %v6283_v56  ;;  %3000 = vmatmul.bf16.gmra.mxu0 %v5770_v53 }
 0x3aa   : > { %v2747_v12 = vmax.f32 %v2683_v15, 0.0 }
 0x3ac   : > { %2724 = vmatmul.bf16.gmra.mxu3 %v6284_v2  ;;  %v2795_v25 = vpack.c.bf16 %v2747_v12, %v2745_v47  ;;  %v2612_v51 = vpop.f32.mrf.mxu2  ;;  %v2474_v12 = vadd.f32 %v5681_v20, %v5599_v28 }
 0x3ad   : > { %v2613_v42 = vadd.f32 %v2612_v51, %v5637_v17 }
 0x3ae   : > { %3033 = vmatmul.bf16.vlgmr.msra.gmra.mxu1 %v2795_v25  ;;  %v5834_v62 = vpop.f32.mrf.mxu0  ;;  %v2547_v2 = vadd.f32 %v5684_v40, %v2474_v12 }
 0x3af   : > { %v2685_v48 = vpop.f32.mrf.mxu3 }
 0x3b0   : > { %v2686_v39 = vadd.f32 %v2685_v48, %v2613_v42 }
 0x3b2   : > { %v2749_v50 = vmax.f32 %v2686_v39, 0.0 }
 0x3b4   : > { %v2614_v32 = vpop.f32.mrf.mxu2 }
 0x3b5   : > { %v2615_v30 = vadd.f32 %v2614_v32, %v2542_v22  ;;  %v2479_v32 = vadd.f32 %v5702_v11, %v5599_v28 }
 0x3b6   : > { %v5840_v53 = vpop.f32.mrf.mxu0 }
 0x3b7   : > { %v2687_v61 = vpop.f32.mrf.mxu3 }
 0x3b8   : > { %v2688_v35 = vadd.f32 %v2687_v61, %v2615_v30  ;;  %v2552_v30 = vadd.f32 %v5704_v14, %v2479_v32 }
 0x3b9   : > { %2656 = vmatmul.bf16.gmra.mxu2 %v5633_v16  ;;  %3005 = vmatmul.bf16.gmra.mxu0 %v5784_v60 }
 0x3ba   : > { %v2751_v15 = vmax.f32 %v2688_v35, 0.0 }
 0x3bc   : > { %2729 = vmatmul.bf16.gmra.mxu3 %v5635_v18  ;;  %v2797_v8 = vpack.c.bf16 %v2751_v15, %v2749_v50  ;;  %v2617_v47 = vpop.f32.mrf.mxu2 }
 0x3bd   : > { %v2618_v56 = vadd.f32 %v2617_v47, %v5668_v1 }
 0x3be   : > { %3038 = vmatmul.bf16.gmra.mxu1 %v2797_v8  ;;  %v5845_v6 = vpop.f32.mrf.mxu0 }
 0x3bf   : > { %v2690_v17 = vpop.f32.mrf.mxu3 }
 0x3c0   : > { %v2691_v51 = vadd.f32 %v2690_v17, %v2618_v56  ;;  %v2484_v17 = vadd.f32 %v5717_v45, %v5599_v28 }
 0x3c2   : > { %v2753_v34 = vmax.f32 %v2691_v51, 0.0  ;;  %v2557_v56 = vadd.f32 %v5719_v24, %v2484_v17  ;;  %v2489_v24 = vadd.f32 %v5731_v58, %v5599_v28  ;;  %v2494_v58 = vadd.f32 %v5745_v31, %v5599_v28 }
 0x3c4   : > { %v2619_v25 = vpop.f32.mrf.mxu2 }
 0x3c5   : > { %v2620_v16 = vadd.f32 %v2619_v25, %v2547_v2  ;;  %v2792_v2 = vmax.f32 %v5817_v9, 0.0  ;;  %v6285_v9 = vld [vmem:[#allocation40_spill] sm:$0xff] }
 0x3c6   : > { %v5851_v60 = vpop.f32.mrf.mxu0 }
 0x3c7   : > { %v2692_v48 = vpop.f32.mrf.mxu3 }
 0x3c8   : > { %v2693_v18 = vadd.f32 %v2692_v48, %v2620_v16  ;;  %v2818_v16 = vpack.c.bf16 %v2792_v2, %v2792_v2 }
 0x3c9   : > { %2661 = vmatmul.bf16.gmra.mxu2 %v5664_v33  ;;  %3010 = vmatmul.bf16.gmra.mxu0 %v5798_v3 }
 0x3ca   : > { %v2755_v42 = vmax.f32 %v2693_v18, 0.0 }
 0x3cc   : > { %2734 = vmatmul.bf16.gmra.mxu3 %v5666_v26  ;;  %v2799_v20 = vpack.c.bf16 %v2755_v42, %v2753_v34  ;;  %v2622_v22 = vpop.f32.mrf.mxu2 }
 0x3cd   : > { %v2623_v39 = vadd.f32 %v2622_v22, %v5693_v54 }
 0x3ce   : > { %3043 = vmatmul.bf16.gmra.mxu1 %v2799_v20  ;;  %v5856_v40 = vpop.f32.mrf.mxu0 }
 0x3cf   : > { %v2695_v1 = vpop.f32.mrf.mxu3 }
 0x3d0   : > { %v2696_v35 = vadd.f32 %v2695_v1, %v2623_v39  ;;  %v2562_v1 = vadd.f32 %v5733_v37, %v2489_v24 }
 0x3d2   : > { %v2757_v15 = vmax.f32 %v2696_v35, 0.0 }
 0x3d4   : > { %v2624_v61 = vpop.f32.mrf.mxu2 }
 0x3d5   : > { %v2625_v33 = vadd.f32 %v2624_v61, %v2552_v30 }
 0x3d6   : > { %v5862_v3 = vpop.f32.mrf.mxu0 }
 0x3d7   : > { %v2697_v50 = vpop.f32.mrf.mxu3 }
 0x3d8   : > { %v2698_v26 = vadd.f32 %v2697_v50, %v2625_v33 }
 0x3d9   : > { %2666 = vmatmul.bf16.gmra.mxu2 %v5688_v49  ;;  %3015 = vmatmul.bf16.gmra.mxu0 %v5812_v46 }
 0x3da   : > { %v2759_v8 = vmax.f32 %v2698_v26, 0.0 }
 0x3dc   : > { %2739 = vmatmul.bf16.gmra.mxu3 %v5691_v41  ;;  %v2801_v11 = vpack.c.bf16 %v2759_v8, %v2757_v15  ;;  %v2627_v47 = vpop.f32.mrf.mxu2 }
 0x3dd   : > { %v2628_v12 = vadd.f32 %v2627_v47, %v5708_v7 }
 0x3de   : > { %3048 = vmatmul.bf16.gmra.mxu1 %v2801_v11  ;;  %v5867_v14 = vpop.f32.mrf.mxu0 }
 0x3df   : > { %v2700_v54 = vpop.f32.mrf.mxu3 }
 0x3e0   : > { %v2701_v25 = vadd.f32 %v2700_v54, %v2628_v12  ;;  %v2567_v54 = vadd.f32 %v5747_v38, %v2494_v58 }
 0x3e2   : > { %v2761_v18 = vmax.f32 %v2701_v25, 0.0 }
 0x3e4   : > { %v2629_v49 = vpop.f32.mrf.mxu2 }
 0x3e5   : > { %v2630_v46 = vadd.f32 %v2629_v49, %v2557_v56 }
 0x3e6   : > { %v5874_v41 = vpop.f32.mrf.mxu0 }
 0x3e7   : > { %v2702_v51 = vpop.f32.mrf.mxu3 }
 0x3e8   : > { %v2703_v48 = vadd.f32 %v2702_v51, %v2630_v46 }
 0x3e9   : > { %3020 = vmatmul.bf16.gmra.mxu0 %v2818_v16 }
 0x3ea   : > { %v2763_v34 = vmax.f32 %v2703_v48, 0.0 }
 0x3ec   : > { %v2803_v42 = vpack.c.bf16 %v2763_v34, %v2761_v18  ;;  %v2632_v20 = vpop.f32.mrf.mxu2 }
 0x3ed   : > { %v2633_v22 = vadd.f32 %v2632_v20, %v6285_v9 }
 0x3ee   : > { %3053 = vmatmul.bf16.gmra.mxu1 %v2803_v42  ;;  %v5876_v7 = vpop.f32.mrf.mxu0 }
 0x3ef   : > { %v2705_v45 = vpop.f32.mrf.mxu3 }
 0x3f0   : > { %v2706_v39 = vadd.f32 %v2705_v45, %v2633_v22 }
 0x3f2   : > { %v2765_v50 = vmax.f32 %v2706_v39, 0.0 }
 0x3f4   : > { %v2634_v32 = vpop.f32.mrf.mxu2 }
 0x3f5   : > { %v2635_v30 = vadd.f32 %v2634_v32, %v2562_v1 }
 0x3f6   : > { %v5882_v35 = vpop.f32.mrf.mxu0 }
 0x3f7   : > { %v2707_v61 = vpop.f32.mrf.mxu3 }
 0x3f8   : > { %v2708_v33 = vadd.f32 %v2707_v61, %v2635_v30 }
 0x3fa   : > { %v2767_v26 = vmax.f32 %v2708_v33, 0.0 }
 0x3fc   : > { %v2805_v15 = vpack.c.bf16 %v2767_v26, %v2765_v50  ;;  %v2637_v8 = vpop.f32.mrf.mxu2  ;;  %v5910_v26 = vld [vmem:[%s6064_s8] ss:$0 sm:$0xff] }
 0x3fd   : > { %v2638_v37 = vadd.f32 %v2637_v8, %v5737_v59  ;;  %v2499_v59 = vadd.f32 %v5759_v13, %v5599_v28 }
 0x3fe   : > { %3058 = vmatmul.bf16.gmra.mxu1 %v2805_v15  ;;  %v5884_v47 = vpop.f32.mrf.mxu0 }
 0x3ff   : > { %v2710_v11 = vpop.f32.mrf.mxu3  ;;  %v2572_v38 = vadd.f32 %v5761_v21, %v2499_v59 }
 0x400   : > { %v2711_v12 = vadd.f32 %v2710_v11, %v2638_v37 }
 0x402   : > { %v2769_v46 = vmax.f32 %v2711_v12, 0.0 }
 0x404   : > { %v2639_v17 = vpop.f32.mrf.mxu2 }
 0x405   : > { %v2640_v56 = vadd.f32 %v2639_v17, %v2567_v54 }
 0x406   : > { %v5890_v49 = vpop.f32.mrf.mxu0 }
 0x407   : > { %v2712_v2 = vpop.f32.mrf.mxu3 }
 0x408   : > { %v2713_v25 = vadd.f32 %v2712_v2, %v2640_v56 }
 0x40a   : > { %v2771_v51 = vmax.f32 %v2713_v25, 0.0 }
 0x40c   : > { %v2807_v16 = vpack.c.bf16 %v2771_v51, %v2769_v46  ;;  %v2642_v48 = vpop.f32.mrf.mxu2  ;;  %v2509_v46 = vadd.f32 %v5787_v23, %v5599_v28  ;;  %v2967_v23 = vadd.f32 %v5910_v26, %v5840_v53 }
 0x40d   : > { %v2643_v31 = vadd.f32 %v2642_v48, %v5751_v55  ;;  %v2504_v55 = vadd.f32 %v5773_v10, %v5599_v28 }
 0x40e   : > { %3063 = vmatmul.bf16.gmra.mxu1 %v2807_v16  ;;  %v5892_v34 = vpop.f32.mrf.mxu0  ;;  %v2582_v48 = vadd.f32 %v5789_v43, %v2509_v46 }
 0x40f   : > { %v2715_v18 = vpop.f32.mrf.mxu3  ;;  %v2577_v33 = vadd.f32 %v5775_v36, %v2504_v55 }
 0x410   : > { %v2716_v20 = vadd.f32 %v2715_v18, %v2643_v31 }
 0x412   : > { %v2773_v1 = vmax.f32 %v2716_v20, 0.0 }
 0x414   : > { %v2644_v42 = vpop.f32.mrf.mxu2 }
 0x415   : > { %v2645_v45 = vadd.f32 %v2644_v42, %v2572_v38 }
 0x416   : > { %v5898_v9 = vpop.f32.mrf.mxu0 }
 0x417   : > { %v2717_v24 = vpop.f32.mrf.mxu3 }
 0x418   : > { %v2718_v22 = vadd.f32 %v2717_v24, %v2645_v45 }
 0x41a   : > { %v2775_v32 = vmax.f32 %v2718_v22, 0.0 }
 0x41c   : > { %v2809_v39 = vpack.c.bf16 %v2775_v32, %v2773_v1  ;;  %v2647_v30 = vpop.f32.mrf.mxu2 }
 0x41d   : > { %v2648_v21 = vadd.f32 %v2647_v30, %v5765_v27  ;;  %v2962_v27 = vadd.f32 %v5910_v26, %v5829_v44  ;;  %v2964_v44 = vadd.f32 %v5910_v26, %v5834_v62  ;;  %v2514_v30 = vadd.f32 %v5801_v4, %v5599_v28 }
 0x41e   : > { %3068 = vmatmul.bf16.gmra.mxu1 %v2809_v39  ;;  %v5900_v13 = vpop.f32.mrf.mxu0  ;;  %v2972_v4 = vadd.f32 %v5910_v26, %v5851_v60 }
 0x41f   : > { %v2720_v61 = vpop.f32.mrf.mxu3 }
 0x420   : > { %v2721_v15 = vadd.f32 %v2720_v61, %v2648_v21  ;;  %v2969_v61 = vadd.f32 %v5910_v26, %v5845_v6  ;;  %v2587_v21 = vadd.f32 %v5803_v52, %v2514_v30 }
 0x422   : > { %v2777_v10 = vmax.f32 %v2721_v15, 0.0 }
 0x424   : > { %v2649_v50 = vpop.f32.mrf.mxu2 }
 0x425   : > { %v2650_v8 = vadd.f32 %v2649_v50, %v2577_v33 }
 0x426   : > { %v5912_v58 = vpop.f32.mrf.mxu0 }
 0x427   : > { %v2722_v11 = vpop.f32.mrf.mxu3 }
 0x428   : > { %v2723_v37 = vadd.f32 %v2722_v11, %v2650_v8 }
 0x42a   : > { %v2779_v36 = vmax.f32 %v2723_v37, 0.0 }
 0x42b   : > { %v3034_v54 = vpop.f32.mrf.mxu1 }
 0x42c   : > { %v2811_v17 = vpack.c.bf16 %v2779_v36, %v2777_v10  ;;  %v3035_v12 = vadd.f32 %v3034_v54, %v2962_v27  ;;  %v2652_v56 = vpop.f32.mrf.mxu2 }
 0x42d   : > { %v2653_v51 = vadd.f32 %v2652_v56, %v5779_v63  ;;  %v2519_v56 = vadd.f32 %v5815_v19, %v5599_v28  ;;  %v2977_v28 = vadd.f32 %v5910_v26, %v5862_v3 }
 0x42e   : > { %3098 = vst [vmem:[%s5918_s28] sm:$0xff] %v3035_v12  ;;  %3073 = vmatmul.bf16.gmra.mxu1 %v2811_v17  ;;  %v5921_v25 = vpop.f32.mrf.mxu0 }
 0x42f   : > { %v2725_v2 = vpop.f32.mrf.mxu3 }
 0x430   : > { %v2726_v31 = vadd.f32 %v2725_v2, %v2653_v51  ;;  %v2974_v2 = vadd.f32 %v5910_v26, %v5856_v40 }
 0x432   : > { %v2781_v24 = vmax.f32 %v2726_v31, 0.0 }
 0x433   : > { %v3036_v16 = vpop.f32.mrf.mxu1 }
 0x434   : > { %v3037_v18 = vadd.f32 %v3036_v16, %v2964_v44  ;;  %v2654_v59 = vpop.f32.mrf.mxu2  ;;  %v2592_v44 = vadd.f32 %v5819_v57, %v2519_v56 }
 0x435   : > { %v2655_v38 = vadd.f32 %v2654_v59, %v2582_v48 }
 0x436   : > { %3099 = vst [vmem:[%s5918_s28 + $0x8] sm:$0xff] %v3037_v18  ;;  %v5930_v20 = vpop.f32.mrf.mxu0 }
 0x437   : > { %v2727_v42 = vpop.f32.mrf.mxu3 }
 0x438   : > { %v2728_v45 = vadd.f32 %v2727_v42, %v2655_v38 }
 0x43a   : > { %v2783_v62 = vmax.f32 %v2728_v45, 0.0 }
 0x43b   : > { %v3039_v22 = vpop.f32.mrf.mxu1 }
 0x43c   : > { %v2813_v63 = vpack.c.bf16 %v2783_v62, %v2781_v24  ;;  %v3040_v1 = vadd.f32 %v3039_v22, %v2967_v23  ;;  %v2657_v43 = vpop.f32.mrf.mxu2  ;;  %v2979_v22 = vadd.f32 %v5910_v26, %v5867_v14 }
 0x43d   : > { %v2658_v53 = vadd.f32 %v2657_v43, %v5793_v0 }
 0x43e   : > { %3100 = vst [vmem:[%s5918_s28 + $0x10] sm:$0xff] %v3040_v1  ;;  %3078 = vmatmul.bf16.gmra.mxu1 %v2813_v63  ;;  %v5935_v39 = vpop.f32.mrf.mxu0 }
 0x43f   : > { %v2730_v32 = vpop.f32.mrf.mxu3 }
 0x440   : > { %v2731_v15 = vadd.f32 %v2730_v32, %v2658_v53  ;;  %v2982_v53 = vadd.f32 %v5910_v26, %v5874_v41 }
 0x442   : > { %v2785_v10 = vmax.f32 %v2731_v15, 0.0 }
 0x443   : > { %v3041_v55 = vpop.f32.mrf.mxu1 }
 0x444   : > { %v3042_v33 = vadd.f32 %v3041_v55, %v2969_v61  ;;  %v2659_v50 = vpop.f32.mrf.mxu2 }
 0x445   : > { %v2660_v8 = vadd.f32 %v2659_v50, %v2587_v21 }
 0x446   : > { %3101 = vst [vmem:[%s5918_s28 + $0x18] sm:$0xff] %v3042_v33  ;;  %v5944_v37 = vpop.f32.mrf.mxu0  ;;  %v2984_v33 = vadd.f32 %v5910_v26, %v5876_v7  ;;  %v2992_v7 = vadd.f32 %v5910_v26, %v5890_v49  ;;  %v2999_v49 = vadd.f32 %v5910_v26, %v5900_v13  ;;  %v3007_v13 = vadd.f32 %v5910_v26, %v5930_v20 }
 0x447   : > { %v2732_v11 = vpop.f32.mrf.mxu3 }
 0x448   : > { %v2733_v27 = vadd.f32 %v2732_v11, %v2660_v8  ;;  %v2987_v8 = vadd.f32 %v5910_v26, %v5882_v35  ;;  %v2994_v35 = vadd.f32 %v5910_v26, %v5892_v34  ;;  %v3002_v34 = vadd.f32 %v5910_v26, %v5912_v58 }
 0x449   : > { %v3009_v58 = vadd.f32 %v5910_v26, %v5935_v39 }
 0x44a   : > { %v2787_v6 = vmax.f32 %v2733_v27, 0.0  ;;  %v2989_v27 = vadd.f32 %v5910_v26, %v5884_v47  ;;  %v2997_v47 = vadd.f32 %v5910_v26, %v5898_v9  ;;  %v3004_v9 = vadd.f32 %v5910_v26, %v5921_v25 }
 0x44b   : > { %v3044_v36 = vpop.f32.mrf.mxu1  ;;  %v3012_v25 = vadd.f32 %v5910_v26, %v5944_v37 }
 0x44c   : > { %v2815_v0 = vpack.c.bf16 %v2787_v6, %v2785_v10  ;;  %v3045_v54 = vadd.f32 %v3044_v36, %v2972_v4  ;;  %v2662_v52 = vpop.f32.mrf.mxu2 }
 0x44d   : > { %v2663_v60 = vadd.f32 %v2662_v52, %v5807_v29 }
 0x44e   : > { %3102 = vst [vmem:[%s5918_s28 + $0x20] sm:$0xff] %v3045_v54  ;;  %3083 = vmatmul.bf16.gmra.mxu1 %v2815_v0  ;;  %v5949_v12 = vpop.f32.mrf.mxu0 }
 0x44f   : > { %v2735_v17 = vpop.f32.mrf.mxu3  ;;  %v3014_v20 = vadd.f32 %v5910_v26, %v5949_v12 }
 0x450   : > { %v2736_v48 = vadd.f32 %v2735_v17, %v2663_v60 }
 0x452   : > { %v2789_v19 = vmax.f32 %v2736_v48, 0.0 }
 0x453   : > { %v3046_v46 = vpop.f32.mrf.mxu1 }
 0x454   : > { %v3047_v51 = vadd.f32 %v3046_v46, %v2974_v2  ;;  %v2664_v16 = vpop.f32.mrf.mxu2 }
 0x455   : > { %v2665_v18 = vadd.f32 %v2664_v16, %v2592_v44 }
 0x456   : > { %3103 = vst [vmem:[%s5918_s28 + $0x28] sm:$0xff] %v3047_v51  ;;  %v5958_v31 = vpop.f32.mrf.mxu0 }
 0x457   : > { %v2737_v59 = vpop.f32.mrf.mxu3  ;;  %v3017_v39 = vadd.f32 %v5910_v26, %v5958_v31 }
 0x458   : > { %v2738_v38 = vadd.f32 %v2737_v59, %v2665_v18 }
 0x45a   : > { %v2791_v40 = vmax.f32 %v2738_v38, 0.0 }
 0x45b   : > { %v3049_v29 = vpop.f32.mrf.mxu1 }
 0x45c   : > { %v2817_v42 = vpack.c.bf16 %v2791_v40, %v2789_v19  ;;  %v3050_v45 = vadd.f32 %v3049_v29, %v2977_v28  ;;  %v2667_v57 = vpop.f32.mrf.mxu2 }
 0x45d   : > { %v2668_v62 = vadd.f32 %v2667_v57, %v5822_v5 }
 0x45e   : > { %3104 = vst [vmem:[%s5918_s28 + $0x30] sm:$0xff] %v3050_v45  ;;  %3088 = vmatmul.bf16.gmra.mxu1 %v2817_v42  ;;  %v5963_v24 = vpop.f32.mrf.mxu0 }
 0x45f   : > { %v2740_v23 = vpop.f32.mrf.mxu3  ;;  %v3019_v37 = vadd.f32 %v5910_v26, %v5963_v24 }
 0x460   : > { %v2741_v3 = vadd.f32 %v2740_v23, %v2668_v62 }
 0x462   : > { %v2793_v61 = vmax.f32 %v2741_v3, 0.0 }
 0x463   : > { %v3051_v63 = vpop.f32.mrf.mxu1 }
 0x464   : > { %v3052_v1 = vadd.f32 %v3051_v63, %v2979_v22  ;;  %v2669_v43 = vpop.f32.mrf.mxu2  ;;  %v2819_v21 = vpack.c.bf16 %v2793_v61, %v2793_v61 }
 0x466   : > { %3105 = vst [vmem:[%s5918_s28 + $0x38] sm:$0xff] %v3052_v1  ;;  %v5969_v30 = vpop.f32.mrf.mxu0 }
 0x467   : > { %v2742_v32 = vpop.f32.mrf.mxu3  ;;  %v3022_v12 = vadd.f32 %v5910_v26, %v5969_v30 }
 0x46b   : > { %v3054_v55 = vpop.f32.mrf.mxu1 }
 0x46c   : > { %v3055_v5 = vadd.f32 %v3054_v55, %v2982_v53 }
 0x46e   : > { %3106 = vst [vmem:[%s5918_s28 + $0x40] sm:$0xff] %v3055_v5  ;;  %3093 = vmatmul.bf16.gmra.mxu1 %v2819_v21  ;;  %v3023_v14 = vpop.f32.mrf.mxu0 }
 0x473   : > { %v3056_v50 = vpop.f32.mrf.mxu1 }
 0x474   : > { %v3057_v15 = vadd.f32 %v3056_v50, %v2984_v33 }
 0x476   : > { %3107 = vst [vmem:[%s5918_s28 + $0x48] sm:$0xff] %v3057_v15 }
 0x47b   : > { %v3059_v11 = vpop.f32.mrf.mxu1 }
 0x47c   : > { %v3060_v41 = vadd.f32 %v3059_v11, %v2987_v8 }
 0x47e   : > { %3108 = vst [vmem:[%s5918_s28 + $0x50] sm:$0xff] %v3060_v41 }
 0x483   : > { %v3061_v4 = vpop.f32.mrf.mxu1 }
 0x484   : > { %v3062_v10 = vadd.f32 %v3061_v4, %v2989_v27 }
 0x486   : > { %3109 = vst [vmem:[%s5918_s28 + $0x58] sm:$0xff] %v3062_v10 }
 0x48b   : > { %v3064_v6 = vpop.f32.mrf.mxu1 }
 0x48c   : > { %v3065_v36 = vadd.f32 %v3064_v6, %v2992_v7 }
 0x48e   : > { %3110 = vst [vmem:[%s5918_s28 + $0x60] sm:$0xff] %v3065_v36 }
 0x493   : > { %v3066_v0 = vpop.f32.mrf.mxu1 }
 0x494   : > { %v3067_v54 = vadd.f32 %v3066_v0, %v2994_v35 }
 0x496   : > { %3111 = vst [vmem:[%s5918_s28 + $0x68] sm:$0xff] %v3067_v54 }
 0x49b   : > { %v3069_v52 = vpop.f32.mrf.mxu1 }
 0x49c   : > { %v3070_v17 = vadd.f32 %v3069_v52, %v2997_v47 }
 0x49e   : > { %3112 = vst [vmem:[%s5918_s28 + $0x70] sm:$0xff] %v3070_v17 }
 0x4a3   : > { %v3071_v56 = vpop.f32.mrf.mxu1 }
 0x4a4   : > { %v3072_v2 = vadd.f32 %v3071_v56, %v2999_v49 }
 0x4a6   : > { %3113 = vst [vmem:[%s5918_s28 + $0x78] sm:$0xff] %v3072_v2 }
 0x4ab   : > { %v3074_v60 = vpop.f32.mrf.mxu1 }
 0x4ac   : > { %v3075_v46 = vadd.f32 %v3074_v60, %v3002_v34 }
 0x4ae   : > { %3114 = vst [vmem:[%s5918_s28 + $0x80] sm:$0xff] %v3075_v46 }
 0x4b3   : > { %v3076_v44 = vpop.f32.mrf.mxu1 }
 0x4b4   : > { %v3077_v51 = vadd.f32 %v3076_v44, %v3004_v9 }
 0x4b6   : > { %3115 = vst [vmem:[%s5918_s28 + $0x88] sm:$0xff] %v3077_v51 }
 0x4bb   : > { %v3079_v16 = vpop.f32.mrf.mxu1 }
 0x4bc   : > { %v3080_v48 = vadd.f32 %v3079_v16, %v3007_v13 }
 0x4be   : > { %3116 = vst [vmem:[%s5918_s28 + $0x90] sm:$0xff] %v3080_v48 }
 0x4c3   : > { %v3081_v18 = vpop.f32.mrf.mxu1 }
 0x4c4   : > { %v3082_v59 = vadd.f32 %v3081_v18, %v3009_v58 }
 0x4c6   : > { %3117 = vst [vmem:[%s5918_s28 + $0x98] sm:$0xff] %v3082_v59 }
 0x4cb   : > { %v3084_v38 = vpop.f32.mrf.mxu1 }
 0x4cc   : > { %v3085_v28 = vadd.f32 %v3084_v38, %v3012_v25 }
 0x4ce   : > { %3118 = vst [vmem:[%s5918_s28 + $0xa0] sm:$0xff] %v3085_v28 }
 0x4d3   : > { %v3086_v19 = vpop.f32.mrf.mxu1 }
 0x4d4   : > { %v3087_v40 = vadd.f32 %v3086_v19, %v3014_v20 }
 0x4d6   : > { %3119 = vst [vmem:[%s5918_s28 + $0xa8] sm:$0xff] %v3087_v40 }
 0x4db   : > { %v3089_v29 = vpop.f32.mrf.mxu1 }
 0x4dc   : > { %v3090_v42 = vadd.f32 %v3089_v29, %v3017_v39 }
 0x4de   : > { %3120 = vst [vmem:[%s5918_s28 + $0xb0] sm:$0xff] %v3090_v42 }
 0x4e3   : > { %v3091_v45 = vpop.f32.mrf.mxu1 }
 0x4e4   : > { %v3092_v57 = vadd.f32 %v3091_v45, %v3019_v37 }
 0x4e6   : > { %3121 = vst [vmem:[%s5918_s28 + $0xb8] sm:$0xff] %v3092_v57 }
 0x4eb   : > { %v3094_v31 = vpop.f32.mrf.mxu1 }
 0x4ec   : > { %v3095_v23 = vadd.f32 %v3094_v31, %v3022_v12 }
 0x4ee   : > { %3122 = vst [vmem:[%s5918_s28 + $0xc0] sm:$0xff] %v3095_v23 }
 0x4ef   : > { %4286 = shalt.err (!%p4283_p8)
}
 0x4f0   : > { %s4340_s17 = smov 128   ;;  %s4341_s22 = smov 8  }
 0x4f1   : > { %4101 = dma.vmem_to_hbm [thread:$0]  (%p4430_p5), %s3137_s15, 3200, %s3139_s20, %s3124_s13, %s4340_s17, %s4340_s17, %s4341_s22  }
 0x4f3   : > { %v3096_v26 = vpop.f32.mrf.mxu1 }
 0x4f4 PF: > { %p4123_p9 = scmp.ge.s32.totalorder %s4329_s12, 2  ;;  %s3153_s25 = sand.u32 1, %s4317_s30  }
 0x4f5   : > { %s3154_s28 = scalar_lea.sflag [#allocation4], %s3153_s25 }
 0x4f6   : > { %p4114_p10 = pnand %p4123_p9, %p4434_p6 }
 0x4f8   : > { %p4115_p11 = pneg %p4114_p10 }
 0x4fa   : > { %4312 = dma.done.wait (%p4115_p11), %s3154_s28, 3200  }
 0x4fb   : > { %4314 = vsyncadd (%p4115_p11), %s3154_s28, 4294964096  ;;  %s6287_s12 = sld [smem:[#allocation13_spill]]  ;;  %s6290_s30 = smov %s4321_s10 }
 0x4fc   : > { %s6288_s3 = sld [smem:[#allocation12_spill]] }
 0x4fd   : > { %s6289_s11 = sld [smem:[#allocation14_spill]] }
 0x501   : > { %p21_p12 = scmp.ge.s32.totalorder %s6287_s12, 5  }
 0x502   : > { %s6291_s10 = smov %s6288_s3 }
 0x503   :  { %23 = sbr.rel (!%p21_p12) target bundleno = 8 (0x8), region = 107 }
 0x508   :  { %3160 = vsyncpa [#allocation3], 1 }
 0x509   :  { %3162 = vsyncpa [#allocation3 + $0x1], 1 }
 0x50a   :  { %3163 = vsyncpa [#allocation6], 1 }
 0x50b   :  { %3164 = vsyncpa [#allocation4], 1 }
 0x50c   :  { %3166 = vsyncpa [#allocation4 + $0x1], 1 }

</bundles_post_ra>
